<compile_context>
chip_gen: v6e
topology: v6e:2x2x1
jax: 0.10.0
libtpu: 0.0.40
codegen_flags: <defaults>
</compile_context>

<pallas_src>
import jax
import jax.numpy as jnp
from jax import lax
from jax.experimental import pallas as pl
from jax.experimental.pallas import tpu as pltpu

_PAD_NEG = -1e30  # bias on padded tag columns -> exp() underflows to 0 in the LSE


def lstm_tagger_kernel(ids_ref,     # [B, S]   int32 token ids (one batch tile)
                       emb_ref,     # [V, E]   embedding table
                       wih_ref,     # [E, 4H]  weight_ih.T, i/f/o columns pre-scaled by 0.5
                       whh_ref,     # [H, 4H]  weight_hh.T, i/f/o columns pre-scaled by 0.5
                       b_ref,       # [1, 4H]  (bias_ih + bias_hh), i/f/o entries pre-scaled by 0.5
                       wout_ref,    # [H, TP]  hidden2tag.weight.T zero-padded to TP lanes
                       bout_ref,    # [1, TP]  hidden2tag.bias, -1e30 on pad lanes
                       out_ref):    # [B, S, TP] padded log_softmax scores
    B, S = ids_ref.shape
    V, _E = emb_ref.shape
    H = whh_ref.shape[0]
    TP = wout_ref.shape[1]

    # ---- Fused embedding gather: one-hot @ table on the MXU (exact) ---------
    ids = ids_ref[...]                                               # [B, S] int32
    onehot = (ids[:, :, None] ==
              lax.broadcasted_iota(jnp.int32, (B, S, V), 2)
              ).astype(jnp.float32)                                  # [B, S, V]
    embeds = jnp.dot(onehot.reshape(B * S, V), emb_ref[...],
                     preferred_element_type=jnp.float32)             # [B*S, E]

    # ---- Batched input projection for all sentences & timesteps -------------
    gates_all = (jnp.dot(embeds, wih_ref[...],
                         preferred_element_type=jnp.float32)
                 + b_ref[...]).reshape(B, S, 4 * H)                  # [B, S, 4H]
    # Pre-slice per-step gate inputs; these don't depend on h, so they sit off
    # the serial recurrence chain.
    g_in = [gates_all[:, t, :] for t in range(S)]

    whh = whh_ref[...]                                               # stays in vregs

    # ---- Recurrence: fully unrolled (S is a static Python int) --------------
    h = jnp.zeros((B, H), jnp.float32)
    c = jnp.zeros((B, H), jnp.float32)
    hs = []
    for t in range(S):
        gates = g_in[t] + jnp.dot(h, whh,
                                  preferred_element_type=jnp.float32)  # [B, 4H]

        # Single EUP pass on the full gates vreg.  i/f/o pre-activations were
        # pre-scaled by 0.5 at prep time, so sigmoid(x) = 0.5*tanh(x/2) + 0.5.
        tnh = jnp.tanh(gates)
        i_g = 0.5 * tnh[:, 0 * H:1 * H] + 0.5
        f_g = 0.5 * tnh[:, 1 * H:2 * H] + 0.5
        g_g = tnh[:, 2 * H:3 * H]
        o_g = 0.5 * tnh[:, 3 * H:4 * H] + 0.5

        c = f_g * c + i_g * g_g
        h = o_g * jnp.tanh(c)
        hs.append(h)                                                 # kept in vregs

    # ---- Batched hidden2tag + log_softmax (outside the recurrence) ----------
    hs_all = jnp.stack(hs, axis=1).reshape(B * S, H)                 # [B*S, H]
    tag = (jnp.dot(hs_all, wout_ref[...],
                   preferred_element_type=jnp.float32)
           + bout_ref[...])                                          # [B*S, TP]
    m = jnp.max(tag, axis=1, keepdims=True)
    lse = m + jnp.log(jnp.sum(jnp.exp(tag - m), axis=1, keepdims=True))
    out_ref[...] = (tag - lse).reshape(B, S, TP)                     # lane-dense store


def prepare_params(params):
    """One-time weight layout prep -- off the per-call inference path."""
    emb = params["embedding"].astype(jnp.float32)                    # [V, E]
    w_ih = params["weight_ih"].astype(jnp.float32)                   # [4H, E]
    w_hh = params["weight_hh"].astype(jnp.float32)                   # [4H, H]
    b_sum = (params["bias_ih"] + params["bias_hh"]).astype(jnp.float32)  # [4H]
    w_out = params["hidden2tag_w"].astype(jnp.float32)               # [T, H]
    b_out = params["hidden2tag_b"].astype(jnp.float32)               # [T]

    H = w_hh.shape[1]
    T = w_out.shape[0]
    TP = max(128, ((T + 127) // 128) * 128)                          # lane-dense tag width

    # Fold the sigmoid-via-tanh 0.5 pre-scale into the i/f/o gate weights/bias.
    scale = jnp.concatenate([jnp.full((H,), 0.5, jnp.float32),       # i
                             jnp.full((H,), 0.5, jnp.float32),       # f
                             jnp.ones((H,), jnp.float32),            # g
                             jnp.full((H,), 0.5, jnp.float32)])      # o

    wih_t = w_ih.T * scale[None, :]                                  # [E, 4H]
    whh_t = w_hh.T * scale[None, :]                                  # [H, 4H]
    bias = (b_sum * scale).reshape(1, 4 * H)                         # [1, 4H]
    wout_t = jnp.zeros((H, TP), jnp.float32).at[:, :T].set(w_out.T)  # [H, TP]
    bout = jnp.full((1, TP), _PAD_NEG, jnp.float32).at[0, :T].set(b_out)  # [1, TP]

    return {"emb": emb, "wih_t": wih_t, "whh_t": whh_t, "bias": bias,
            "wout_t": wout_t, "bout": bout, "H": H, "T": T, "TP": TP}


def lstm_tagger_forward(sentences, prepped, *, b_tile=8):
    """sentences: [B, S] int32 token ids.  Returns [B, S, T] log-probabilities."""
    B, S = sentences.shape
    assert B % b_tile == 0, "batch must be a multiple of the batch tile"
    V, E = prepped["emb"].shape
    H, T, TP = prepped["H"], prepped["T"], prepped["TP"]

    out_padded = pl.pallas_call(
        lstm_tagger_kernel,
        out_shape=jax.ShapeDtypeStruct((B, S, TP), jnp.float32),
        grid=(B // b_tile,),
        in_specs=[
            pl.BlockSpec((b_tile, S), lambda i: (i, 0)),     # token ids (per tile)
            pl.BlockSpec((V, E), lambda i: (0, 0)),          # embedding table
            pl.BlockSpec((E, 4 * H), lambda i: (0, 0)),      # W_ih^T (scaled)
            pl.BlockSpec((H, 4 * H), lambda i: (0, 0)),      # W_hh^T (scaled)
            pl.BlockSpec((1, 4 * H), lambda i: (0, 0)),      # bias (scaled)
            pl.BlockSpec((H, TP), lambda i: (0, 0)),         # hidden2tag W^T (padded)
            pl.BlockSpec((1, TP), lambda i: (0, 0)),         # hidden2tag b (padded)
        ],
        out_specs=pl.BlockSpec((b_tile, S, TP), lambda i: (i, 0, 0)),
        compiler_params=pltpu.CompilerParams(
            dimension_semantics=("parallel",)),               # 2 TCs on v7x split the batch
    )(sentences, prepped["emb"], prepped["wih_t"], prepped["whh_t"],
      prepped["bias"], prepped["wout_t"], prepped["bout"])

    return out_padded[:, :, :T]


def _reference_forward(sentence, params):
    """Pure-JAX reference matching the PyTorch forward for one sentence."""
    emb = jnp.take(params["embedding"], sentence, axis=0)             # [S, E]
    H = params["weight_hh"].shape[1]

    def step(carry, x):
        h, c = carry
        gates = (params["weight_ih"] @ x + params["bias_ih"]
                 + params["weight_hh"] @ h + params["bias_hh"])
        i = jax.nn.sigmoid(gates[0 * H:1 * H])
        f = jax.nn.sigmoid(gates[1 * H:2 * H])
        g = jnp.tanh(gates[2 * H:3 * H])
        o = jax.nn.sigmoid(gates[3 * H:4 * H])
        c = f * c + i * g
        h = o * jnp.tanh(c)
        return (h, c), h

    (_, _), hs = lax.scan(step, (jnp.zeros(H), jnp.zeros(H)), emb)
    tag = hs @ params["hidden2tag_w"].T + params["hidden2tag_b"]
    return jax.nn.log_softmax(tag, axis=1)


if __name__ == "__main__":
    EMBEDDING_DIM = 32
    HIDDEN_DIM = 32
    VOCAB_SIZE = 16
    TAGSET_SIZE = 8
    SEQ_LEN = 8
    BATCH = 16          # two batch tiles of 8 -> "parallel" grid axis
    B_TILE = 8

    key = jax.random.PRNGKey(0)
    keys = jax.random.split(key, 8)
    params = {
        "embedding": jax.random.normal(keys[0], (VOCAB_SIZE, EMBEDDING_DIM),
                                       jnp.float32) * 0.1,
        "weight_ih": jax.random.normal(keys[1], (4 * HIDDEN_DIM, EMBEDDING_DIM),
                                       jnp.float32) * 0.1,
        "weight_hh": jax.random.normal(keys[2], (4 * HIDDEN_DIM, HIDDEN_DIM),
                                       jnp.float32) * 0.1,
        "bias_ih": jax.random.normal(keys[3], (4 * HIDDEN_DIM,),
                                     jnp.float32) * 0.1,
        "bias_hh": jax.random.normal(keys[4], (4 * HIDDEN_DIM,),
                                     jnp.float32) * 0.1,
        "hidden2tag_w": jax.random.normal(keys[5], (TAGSET_SIZE, HIDDEN_DIM),
                                          jnp.float32) * 0.1,
        "hidden2tag_b": jax.random.normal(keys[6], (TAGSET_SIZE,),
                                          jnp.float32) * 0.1,
    }
    sentences = jax.random.randint(keys[7], (BATCH, SEQ_LEN), 0, VOCAB_SIZE,
                                   dtype=jnp.int32)

    # One-time parameter layout prep (off the inference path).
    prepped = prepare_params(params)
    prepped = jax.tree_util.tree_map(
        lambda x: jax.device_put(x) if isinstance(x, jnp.ndarray) else x, prepped)

    fwd = jax.jit(lambda s: lstm_tagger_forward(s, prepped, b_tile=B_TILE))
    out = jax.block_until_ready(fwd(sentences))

    ref = jax.block_until_ready(
        jax.vmap(lambda s: _reference_forward(s, params))(sentences))

    assert out.shape == (BATCH, SEQ_LEN, TAGSET_SIZE)
    assert jnp.allclose(out, ref, atol=1e-5, rtol=1e-5), "mismatch vs reference"

    print("KERNEL_OK")
</pallas_src>

<mosaic_0001>
module attributes {stable_mosaic.version = 11 : i64} {
  func.func @lstm_tagger_kernel(%arg0: i32, %arg1: memref<8x8xi32, #tpu.memory_space<vmem>>, %arg2: memref<16x32xf32, #tpu.memory_space<vmem>>, %arg3: memref<32x128xf32, #tpu.memory_space<vmem>>, %arg4: memref<32x128xf32, #tpu.memory_space<vmem>>, %arg5: memref<1x128xf32, #tpu.memory_space<vmem>>, %arg6: memref<32x128xf32, #tpu.memory_space<vmem>>, %arg7: memref<1x128xf32, #tpu.memory_space<vmem>>, %arg8: memref<8x8x128xf32, #tpu.memory_space<vmem>>) attributes {dimension_semantics = [#tpu.dimension_semantics<parallel>], iteration_bounds = array<i64: 2>, scalar_prefetch = 0 : i64, scratch_operands = 0 : i64, tpu.core_type = #tpu.core_type<tc>, window_params = [{transform_indices = @transform_0, window_bounds = array<i64: 8, 8>}, {pipeline_mode = #tpu.pipeline_mode<synchronous>, transform_indices = @transform_1, window_bounds = array<i64: 16, 32>}, {pipeline_mode = #tpu.pipeline_mode<synchronous>, transform_indices = @transform_2, window_bounds = array<i64: 32, 128>}, {pipeline_mode = #tpu.pipeline_mode<synchronous>, transform_indices = @transform_3, window_bounds = array<i64: 32, 128>}, {pipeline_mode = #tpu.pipeline_mode<synchronous>, transform_indices = @transform_4, window_bounds = array<i64: 1, 128>}, {pipeline_mode = #tpu.pipeline_mode<synchronous>, transform_indices = @transform_5, window_bounds = array<i64: 32, 128>}, {pipeline_mode = #tpu.pipeline_mode<synchronous>, transform_indices = @transform_6, window_bounds = array<i64: 1, 128>}, {transform_indices = @transform_7, window_bounds = array<i64: 8, 8, 128>}]} {
    %c0 = arith.constant 0 : index
    %c0_0 = arith.constant 0 : index
    %0 = vector.load %arg1[%c0, %c0_0] : memref<8x8xi32, #tpu.memory_space<vmem>>, vector<8x8xi32>
    %1 = vector.shape_cast %0 : vector<8x8xi32> to vector<8x8x1xi32>
    %2 = tpu.iota {dimensions = array<i32: 2>} : vector<8x8x16xi32>
    %3 = vector.broadcast %1 : vector<8x8x1xi32> to vector<8x8x16xi32>
    %4 = arith.cmpi eq, %3, %2 : vector<8x8x16xi32>
    %5 = arith.extui %4 : vector<8x8x16xi1> to vector<8x8x16xi32>
    %6 = arith.sitofp %5 : vector<8x8x16xi32> to vector<8x8x16xf32>
    %7 = vector.shape_cast %6 : vector<8x8x16xf32> to vector<64x16xf32>
    %c0_1 = arith.constant 0 : index
    %c0_2 = arith.constant 0 : index
    %8 = vector.load %arg2[%c0_1, %c0_2] : memref<16x32xf32, #tpu.memory_space<vmem>>, vector<16x32xf32>
    %cst = arith.constant dense<0.000000e+00> : vector<64x32xf32>
    %9 = tpu.matmul %7, %8, %cst {dimension_numbers = #tpu.dot_dimension_numbers<[1], [0], [0], [1], [0, 0, 1, 1], [], []>} : vector<64x16xf32>, vector<16x32xf32>, vector<64x32xf32> -> vector<64x32xf32>
    %c0_3 = arith.constant 0 : index
    %c0_4 = arith.constant 0 : index
    %10 = vector.load %arg3[%c0_3, %c0_4] : memref<32x128xf32, #tpu.memory_space<vmem>>, vector<32x128xf32>
    %cst_5 = arith.constant dense<0.000000e+00> : vector<64x128xf32>
    %11 = tpu.matmul %9, %10, %cst_5 {dimension_numbers = #tpu.dot_dimension_numbers<[1], [0], [0], [1], [0, 0, 1, 1], [], []>} : vector<64x32xf32>, vector<32x128xf32>, vector<64x128xf32> -> vector<64x128xf32>
    %c0_6 = arith.constant 0 : index
    %c0_7 = arith.constant 0 : index
    %12 = vector.load %arg5[%c0_6, %c0_7] : memref<1x128xf32, #tpu.memory_space<vmem>>, vector<1x128xf32>
    %13 = vector.broadcast %12 : vector<1x128xf32> to vector<64x128xf32>
    %14 = arith.addf %11, %13 : vector<64x128xf32>
    %15 = vector.shape_cast %14 : vector<64x128xf32> to vector<8x8x128xf32>
    %16 = vector.extract_strided_slice %15 {offsets = [0, 0, 0], sizes = [8, 1, 128], strides = [1, 1, 1]} : vector<8x8x128xf32> to vector<8x1x128xf32>
    %17 = vector.shape_cast %16 : vector<8x1x128xf32> to vector<8x128xf32>
    %18 = vector.extract_strided_slice %15 {offsets = [0, 1, 0], sizes = [8, 1, 128], strides = [1, 1, 1]} : vector<8x8x128xf32> to vector<8x1x128xf32>
    %19 = vector.shape_cast %18 : vector<8x1x128xf32> to vector<8x128xf32>
    %20 = vector.extract_strided_slice %15 {offsets = [0, 2, 0], sizes = [8, 1, 128], strides = [1, 1, 1]} : vector<8x8x128xf32> to vector<8x1x128xf32>
    %21 = vector.shape_cast %20 : vector<8x1x128xf32> to vector<8x128xf32>
    %22 = vector.extract_strided_slice %15 {offsets = [0, 3, 0], sizes = [8, 1, 128], strides = [1, 1, 1]} : vector<8x8x128xf32> to vector<8x1x128xf32>
    %23 = vector.shape_cast %22 : vector<8x1x128xf32> to vector<8x128xf32>
    %24 = vector.extract_strided_slice %15 {offsets = [0, 4, 0], sizes = [8, 1, 128], strides = [1, 1, 1]} : vector<8x8x128xf32> to vector<8x1x128xf32>
    %25 = vector.shape_cast %24 : vector<8x1x128xf32> to vector<8x128xf32>
    %26 = vector.extract_strided_slice %15 {offsets = [0, 5, 0], sizes = [8, 1, 128], strides = [1, 1, 1]} : vector<8x8x128xf32> to vector<8x1x128xf32>
    %27 = vector.shape_cast %26 : vector<8x1x128xf32> to vector<8x128xf32>
    %28 = vector.extract_strided_slice %15 {offsets = [0, 6, 0], sizes = [8, 1, 128], strides = [1, 1, 1]} : vector<8x8x128xf32> to vector<8x1x128xf32>
    %29 = vector.shape_cast %28 : vector<8x1x128xf32> to vector<8x128xf32>
    %30 = vector.extract_strided_slice %15 {offsets = [0, 7, 0], sizes = [8, 1, 128], strides = [1, 1, 1]} : vector<8x8x128xf32> to vector<8x1x128xf32>
    %31 = vector.shape_cast %30 : vector<8x1x128xf32> to vector<8x128xf32>
    %c0_8 = arith.constant 0 : index
    %c0_9 = arith.constant 0 : index
    %32 = vector.load %arg4[%c0_8, %c0_9] : memref<32x128xf32, #tpu.memory_space<vmem>>, vector<32x128xf32>
    %cst_10 = arith.constant 0.000000e+00 : f32
    %33 = vector.broadcast %cst_10 : f32 to vector<8x32xf32>
    %cst_11 = arith.constant 0.000000e+00 : f32
    %34 = vector.broadcast %cst_11 : f32 to vector<8x32xf32>
    %cst_12 = arith.constant dense<0.000000e+00> : vector<8x128xf32>
    %35 = tpu.matmul %33, %32, %cst_12 {dimension_numbers = #tpu.dot_dimension_numbers<[1], [0], [0], [1], [0, 0, 1, 1], [], []>} : vector<8x32xf32>, vector<32x128xf32>, vector<8x128xf32> -> vector<8x128xf32>
    %36 = arith.addf %17, %35 : vector<8x128xf32>
    %37 = math.tanh %36 : vector<8x128xf32>
    %38 = vector.extract_strided_slice %37 {offsets = [0, 0], sizes = [8, 32], strides = [1, 1]} : vector<8x128xf32> to vector<8x32xf32>
    %cst_13 = arith.constant 5.000000e-01 : f32
    %39 = vector.broadcast %cst_13 : f32 to vector<8x32xf32>
    %40 = arith.mulf %39, %38 : vector<8x32xf32>
    %cst_14 = arith.constant 5.000000e-01 : f32
    %41 = vector.broadcast %cst_14 : f32 to vector<8x32xf32>
    %42 = arith.addf %40, %41 : vector<8x32xf32>
    %43 = vector.extract_strided_slice %37 {offsets = [0, 32], sizes = [8, 32], strides = [1, 1]} : vector<8x128xf32> to vector<8x32xf32>
    %cst_15 = arith.constant 5.000000e-01 : f32
    %44 = vector.broadcast %cst_15 : f32 to vector<8x32xf32>
    %45 = arith.mulf %44, %43 : vector<8x32xf32>
    %cst_16 = arith.constant 5.000000e-01 : f32
    %46 = vector.broadcast %cst_16 : f32 to vector<8x32xf32>
    %47 = arith.addf %45, %46 : vector<8x32xf32>
    %48 = vector.extract_strided_slice %37 {offsets = [0, 64], sizes = [8, 32], strides = [1, 1]} : vector<8x128xf32> to vector<8x32xf32>
    %49 = vector.extract_strided_slice %37 {offsets = [0, 96], sizes = [8, 32], strides = [1, 1]} : vector<8x128xf32> to vector<8x32xf32>
    %cst_17 = arith.constant 5.000000e-01 : f32
    %50 = vector.broadcast %cst_17 : f32 to vector<8x32xf32>
    %51 = arith.mulf %50, %49 : vector<8x32xf32>
    %cst_18 = arith.constant 5.000000e-01 : f32
    %52 = vector.broadcast %cst_18 : f32 to vector<8x32xf32>
    %53 = arith.addf %51, %52 : vector<8x32xf32>
    %54 = arith.mulf %47, %34 : vector<8x32xf32>
    %55 = arith.mulf %42, %48 : vector<8x32xf32>
    %56 = arith.addf %54, %55 : vector<8x32xf32>
    %57 = math.tanh %56 : vector<8x32xf32>
    %58 = arith.mulf %53, %57 : vector<8x32xf32>
    %cst_19 = arith.constant dense<0.000000e+00> : vector<8x128xf32>
    %59 = tpu.matmul %58, %32, %cst_19 {dimension_numbers = #tpu.dot_dimension_numbers<[1], [0], [0], [1], [0, 0, 1, 1], [], []>} : vector<8x32xf32>, vector<32x128xf32>, vector<8x128xf32> -> vector<8x128xf32>
    %60 = arith.addf %19, %59 : vector<8x128xf32>
    %61 = math.tanh %60 : vector<8x128xf32>
    %62 = vector.extract_strided_slice %61 {offsets = [0, 0], sizes = [8, 32], strides = [1, 1]} : vector<8x128xf32> to vector<8x32xf32>
    %cst_20 = arith.constant 5.000000e-01 : f32
    %63 = vector.broadcast %cst_20 : f32 to vector<8x32xf32>
    %64 = arith.mulf %63, %62 : vector<8x32xf32>
    %cst_21 = arith.constant 5.000000e-01 : f32
    %65 = vector.broadcast %cst_21 : f32 to vector<8x32xf32>
    %66 = arith.addf %64, %65 : vector<8x32xf32>
    %67 = vector.extract_strided_slice %61 {offsets = [0, 32], sizes = [8, 32], strides = [1, 1]} : vector<8x128xf32> to vector<8x32xf32>
    %cst_22 = arith.constant 5.000000e-01 : f32
    %68 = vector.broadcast %cst_22 : f32 to vector<8x32xf32>
    %69 = arith.mulf %68, %67 : vector<8x32xf32>
    %cst_23 = arith.constant 5.000000e-01 : f32
    %70 = vector.broadcast %cst_23 : f32 to vector<8x32xf32>
    %71 = arith.addf %69, %70 : vector<8x32xf32>
    %72 = vector.extract_strided_slice %61 {offsets = [0, 64], sizes = [8, 32], strides = [1, 1]} : vector<8x128xf32> to vector<8x32xf32>
    %73 = vector.extract_strided_slice %61 {offsets = [0, 96], sizes = [8, 32], strides = [1, 1]} : vector<8x128xf32> to vector<8x32xf32>
    %cst_24 = arith.constant 5.000000e-01 : f32
    %74 = vector.broadcast %cst_24 : f32 to vector<8x32xf32>
    %75 = arith.mulf %74, %73 : vector<8x32xf32>
    %cst_25 = arith.constant 5.000000e-01 : f32
    %76 = vector.broadcast %cst_25 : f32 to vector<8x32xf32>
    %77 = arith.addf %75, %76 : vector<8x32xf32>
    %78 = arith.mulf %71, %56 : vector<8x32xf32>
    %79 = arith.mulf %66, %72 : vector<8x32xf32>
    %80 = arith.addf %78, %79 : vector<8x32xf32>
    %81 = math.tanh %80 : vector<8x32xf32>
    %82 = arith.mulf %77, %81 : vector<8x32xf32>
    %cst_26 = arith.constant dense<0.000000e+00> : vector<8x128xf32>
    %83 = tpu.matmul %82, %32, %cst_26 {dimension_numbers = #tpu.dot_dimension_numbers<[1], [0], [0], [1], [0, 0, 1, 1], [], []>} : vector<8x32xf32>, vector<32x128xf32>, vector<8x128xf32> -> vector<8x128xf32>
    %84 = arith.addf %21, %83 : vector<8x128xf32>
    %85 = math.tanh %84 : vector<8x128xf32>
    %86 = vector.extract_strided_slice %85 {offsets = [0, 0], sizes = [8, 32], strides = [1, 1]} : vector<8x128xf32> to vector<8x32xf32>
    %cst_27 = arith.constant 5.000000e-01 : f32
    %87 = vector.broadcast %cst_27 : f32 to vector<8x32xf32>
    %88 = arith.mulf %87, %86 : vector<8x32xf32>
    %cst_28 = arith.constant 5.000000e-01 : f32
    %89 = vector.broadcast %cst_28 : f32 to vector<8x32xf32>
    %90 = arith.addf %88, %89 : vector<8x32xf32>
    %91 = vector.extract_strided_slice %85 {offsets = [0, 32], sizes = [8, 32], strides = [1, 1]} : vector<8x128xf32> to vector<8x32xf32>
    %cst_29 = arith.constant 5.000000e-01 : f32
    %92 = vector.broadcast %cst_29 : f32 to vector<8x32xf32>
    %93 = arith.mulf %92, %91 : vector<8x32xf32>
    %cst_30 = arith.constant 5.000000e-01 : f32
    %94 = vector.broadcast %cst_30 : f32 to vector<8x32xf32>
    %95 = arith.addf %93, %94 : vector<8x32xf32>
    %96 = vector.extract_strided_slice %85 {offsets = [0, 64], sizes = [8, 32], strides = [1, 1]} : vector<8x128xf32> to vector<8x32xf32>
    %97 = vector.extract_strided_slice %85 {offsets = [0, 96], sizes = [8, 32], strides = [1, 1]} : vector<8x128xf32> to vector<8x32xf32>
    %cst_31 = arith.constant 5.000000e-01 : f32
    %98 = vector.broadcast %cst_31 : f32 to vector<8x32xf32>
    %99 = arith.mulf %98, %97 : vector<8x32xf32>
    %cst_32 = arith.constant 5.000000e-01 : f32
    %100 = vector.broadcast %cst_32 : f32 to vector<8x32xf32>
    %101 = arith.addf %99, %100 : vector<8x32xf32>
    %102 = arith.mulf %95, %80 : vector<8x32xf32>
    %103 = arith.mulf %90, %96 : vector<8x32xf32>
    %104 = arith.addf %102, %103 : vector<8x32xf32>
    %105 = math.tanh %104 : vector<8x32xf32>
    %106 = arith.mulf %101, %105 : vector<8x32xf32>
    %cst_33 = arith.constant dense<0.000000e+00> : vector<8x128xf32>
    %107 = tpu.matmul %106, %32, %cst_33 {dimension_numbers = #tpu.dot_dimension_numbers<[1], [0], [0], [1], [0, 0, 1, 1], [], []>} : vector<8x32xf32>, vector<32x128xf32>, vector<8x128xf32> -> vector<8x128xf32>
    %108 = arith.addf %23, %107 : vector<8x128xf32>
    %109 = math.tanh %108 : vector<8x128xf32>
    %110 = vector.extract_strided_slice %109 {offsets = [0, 0], sizes = [8, 32], strides = [1, 1]} : vector<8x128xf32> to vector<8x32xf32>
    %cst_34 = arith.constant 5.000000e-01 : f32
    %111 = vector.broadcast %cst_34 : f32 to vector<8x32xf32>
    %112 = arith.mulf %111, %110 : vector<8x32xf32>
    %cst_35 = arith.constant 5.000000e-01 : f32
    %113 = vector.broadcast %cst_35 : f32 to vector<8x32xf32>
    %114 = arith.addf %112, %113 : vector<8x32xf32>
    %115 = vector.extract_strided_slice %109 {offsets = [0, 32], sizes = [8, 32], strides = [1, 1]} : vector<8x128xf32> to vector<8x32xf32>
    %cst_36 = arith.constant 5.000000e-01 : f32
    %116 = vector.broadcast %cst_36 : f32 to vector<8x32xf32>
    %117 = arith.mulf %116, %115 : vector<8x32xf32>
    %cst_37 = arith.constant 5.000000e-01 : f32
    %118 = vector.broadcast %cst_37 : f32 to vector<8x32xf32>
    %119 = arith.addf %117, %118 : vector<8x32xf32>
    %120 = vector.extract_strided_slice %109 {offsets = [0, 64], sizes = [8, 32], strides = [1, 1]} : vector<8x128xf32> to vector<8x32xf32>
    %121 = vector.extract_strided_slice %109 {offsets = [0, 96], sizes = [8, 32], strides = [1, 1]} : vector<8x128xf32> to vector<8x32xf32>
    %cst_38 = arith.constant 5.000000e-01 : f32
    %122 = vector.broadcast %cst_38 : f32 to vector<8x32xf32>
    %123 = arith.mulf %122, %121 : vector<8x32xf32>
    %cst_39 = arith.constant 5.000000e-01 : f32
    %124 = vector.broadcast %cst_39 : f32 to vector<8x32xf32>
    %125 = arith.addf %123, %124 : vector<8x32xf32>
    %126 = arith.mulf %119, %104 : vector<8x32xf32>
    %127 = arith.mulf %114, %120 : vector<8x32xf32>
    %128 = arith.addf %126, %127 : vector<8x32xf32>
    %129 = math.tanh %128 : vector<8x32xf32>
    %130 = arith.mulf %125, %129 : vector<8x32xf32>
    %cst_40 = arith.constant dense<0.000000e+00> : vector<8x128xf32>
    %131 = tpu.matmul %130, %32, %cst_40 {dimension_numbers = #tpu.dot_dimension_numbers<[1], [0], [0], [1], [0, 0, 1, 1], [], []>} : vector<8x32xf32>, vector<32x128xf32>, vector<8x128xf32> -> vector<8x128xf32>
    %132 = arith.addf %25, %131 : vector<8x128xf32>
    %133 = math.tanh %132 : vector<8x128xf32>
    %134 = vector.extract_strided_slice %133 {offsets = [0, 0], sizes = [8, 32], strides = [1, 1]} : vector<8x128xf32> to vector<8x32xf32>
    %cst_41 = arith.constant 5.000000e-01 : f32
    %135 = vector.broadcast %cst_41 : f32 to vector<8x32xf32>
    %136 = arith.mulf %135, %134 : vector<8x32xf32>
    %cst_42 = arith.constant 5.000000e-01 : f32
    %137 = vector.broadcast %cst_42 : f32 to vector<8x32xf32>
    %138 = arith.addf %136, %137 : vector<8x32xf32>
    %139 = vector.extract_strided_slice %133 {offsets = [0, 32], sizes = [8, 32], strides = [1, 1]} : vector<8x128xf32> to vector<8x32xf32>
    %cst_43 = arith.constant 5.000000e-01 : f32
    %140 = vector.broadcast %cst_43 : f32 to vector<8x32xf32>
    %141 = arith.mulf %140, %139 : vector<8x32xf32>
    %cst_44 = arith.constant 5.000000e-01 : f32
    %142 = vector.broadcast %cst_44 : f32 to vector<8x32xf32>
    %143 = arith.addf %141, %142 : vector<8x32xf32>
    %144 = vector.extract_strided_slice %133 {offsets = [0, 64], sizes = [8, 32], strides = [1, 1]} : vector<8x128xf32> to vector<8x32xf32>
    %145 = vector.extract_strided_slice %133 {offsets = [0, 96], sizes = [8, 32], strides = [1, 1]} : vector<8x128xf32> to vector<8x32xf32>
    %cst_45 = arith.constant 5.000000e-01 : f32
    %146 = vector.broadcast %cst_45 : f32 to vector<8x32xf32>
    %147 = arith.mulf %146, %145 : vector<8x32xf32>
    %cst_46 = arith.constant 5.000000e-01 : f32
    %148 = vector.broadcast %cst_46 : f32 to vector<8x32xf32>
    %149 = arith.addf %147, %148 : vector<8x32xf32>
    %150 = arith.mulf %143, %128 : vector<8x32xf32>
    %151 = arith.mulf %138, %144 : vector<8x32xf32>
    %152 = arith.addf %150, %151 : vector<8x32xf32>
    %153 = math.tanh %152 : vector<8x32xf32>
    %154 = arith.mulf %149, %153 : vector<8x32xf32>
    %cst_47 = arith.constant dense<0.000000e+00> : vector<8x128xf32>
    %155 = tpu.matmul %154, %32, %cst_47 {dimension_numbers = #tpu.dot_dimension_numbers<[1], [0], [0], [1], [0, 0, 1, 1], [], []>} : vector<8x32xf32>, vector<32x128xf32>, vector<8x128xf32> -> vector<8x128xf32>
    %156 = arith.addf %27, %155 : vector<8x128xf32>
    %157 = math.tanh %156 : vector<8x128xf32>
    %158 = vector.extract_strided_slice %157 {offsets = [0, 0], sizes = [8, 32], strides = [1, 1]} : vector<8x128xf32> to vector<8x32xf32>
    %cst_48 = arith.constant 5.000000e-01 : f32
    %159 = vector.broadcast %cst_48 : f32 to vector<8x32xf32>
    %160 = arith.mulf %159, %158 : vector<8x32xf32>
    %cst_49 = arith.constant 5.000000e-01 : f32
    %161 = vector.broadcast %cst_49 : f32 to vector<8x32xf32>
    %162 = arith.addf %160, %161 : vector<8x32xf32>
    %163 = vector.extract_strided_slice %157 {offsets = [0, 32], sizes = [8, 32], strides = [1, 1]} : vector<8x128xf32> to vector<8x32xf32>
    %cst_50 = arith.constant 5.000000e-01 : f32
    %164 = vector.broadcast %cst_50 : f32 to vector<8x32xf32>
    %165 = arith.mulf %164, %163 : vector<8x32xf32>
    %cst_51 = arith.constant 5.000000e-01 : f32
    %166 = vector.broadcast %cst_51 : f32 to vector<8x32xf32>
    %167 = arith.addf %165, %166 : vector<8x32xf32>
    %168 = vector.extract_strided_slice %157 {offsets = [0, 64], sizes = [8, 32], strides = [1, 1]} : vector<8x128xf32> to vector<8x32xf32>
    %169 = vector.extract_strided_slice %157 {offsets = [0, 96], sizes = [8, 32], strides = [1, 1]} : vector<8x128xf32> to vector<8x32xf32>
    %cst_52 = arith.constant 5.000000e-01 : f32
    %170 = vector.broadcast %cst_52 : f32 to vector<8x32xf32>
    %171 = arith.mulf %170, %169 : vector<8x32xf32>
    %cst_53 = arith.constant 5.000000e-01 : f32
    %172 = vector.broadcast %cst_53 : f32 to vector<8x32xf32>
    %173 = arith.addf %171, %172 : vector<8x32xf32>
    %174 = arith.mulf %167, %152 : vector<8x32xf32>
    %175 = arith.mulf %162, %168 : vector<8x32xf32>
    %176 = arith.addf %174, %175 : vector<8x32xf32>
    %177 = math.tanh %176 : vector<8x32xf32>
    %178 = arith.mulf %173, %177 : vector<8x32xf32>
    %cst_54 = arith.constant dense<0.000000e+00> : vector<8x128xf32>
    %179 = tpu.matmul %178, %32, %cst_54 {dimension_numbers = #tpu.dot_dimension_numbers<[1], [0], [0], [1], [0, 0, 1, 1], [], []>} : vector<8x32xf32>, vector<32x128xf32>, vector<8x128xf32> -> vector<8x128xf32>
    %180 = arith.addf %29, %179 : vector<8x128xf32>
    %181 = math.tanh %180 : vector<8x128xf32>
    %182 = vector.extract_strided_slice %181 {offsets = [0, 0], sizes = [8, 32], strides = [1, 1]} : vector<8x128xf32> to vector<8x32xf32>
    %cst_55 = arith.constant 5.000000e-01 : f32
    %183 = vector.broadcast %cst_55 : f32 to vector<8x32xf32>
    %184 = arith.mulf %183, %182 : vector<8x32xf32>
    %cst_56 = arith.constant 5.000000e-01 : f32
    %185 = vector.broadcast %cst_56 : f32 to vector<8x32xf32>
    %186 = arith.addf %184, %185 : vector<8x32xf32>
    %187 = vector.extract_strided_slice %181 {offsets = [0, 32], sizes = [8, 32], strides = [1, 1]} : vector<8x128xf32> to vector<8x32xf32>
    %cst_57 = arith.constant 5.000000e-01 : f32
    %188 = vector.broadcast %cst_57 : f32 to vector<8x32xf32>
    %189 = arith.mulf %188, %187 : vector<8x32xf32>
    %cst_58 = arith.constant 5.000000e-01 : f32
    %190 = vector.broadcast %cst_58 : f32 to vector<8x32xf32>
    %191 = arith.addf %189, %190 : vector<8x32xf32>
    %192 = vector.extract_strided_slice %181 {offsets = [0, 64], sizes = [8, 32], strides = [1, 1]} : vector<8x128xf32> to vector<8x32xf32>
    %193 = vector.extract_strided_slice %181 {offsets = [0, 96], sizes = [8, 32], strides = [1, 1]} : vector<8x128xf32> to vector<8x32xf32>
    %cst_59 = arith.constant 5.000000e-01 : f32
    %194 = vector.broadcast %cst_59 : f32 to vector<8x32xf32>
    %195 = arith.mulf %194, %193 : vector<8x32xf32>
    %cst_60 = arith.constant 5.000000e-01 : f32
    %196 = vector.broadcast %cst_60 : f32 to vector<8x32xf32>
    %197 = arith.addf %195, %196 : vector<8x32xf32>
    %198 = arith.mulf %191, %176 : vector<8x32xf32>
    %199 = arith.mulf %186, %192 : vector<8x32xf32>
    %200 = arith.addf %198, %199 : vector<8x32xf32>
    %201 = math.tanh %200 : vector<8x32xf32>
    %202 = arith.mulf %197, %201 : vector<8x32xf32>
    %cst_61 = arith.constant dense<0.000000e+00> : vector<8x128xf32>
    %203 = tpu.matmul %202, %32, %cst_61 {dimension_numbers = #tpu.dot_dimension_numbers<[1], [0], [0], [1], [0, 0, 1, 1], [], []>} : vector<8x32xf32>, vector<32x128xf32>, vector<8x128xf32> -> vector<8x128xf32>
    %204 = arith.addf %31, %203 : vector<8x128xf32>
    %205 = math.tanh %204 : vector<8x128xf32>
    %206 = vector.extract_strided_slice %205 {offsets = [0, 0], sizes = [8, 32], strides = [1, 1]} : vector<8x128xf32> to vector<8x32xf32>
    %cst_62 = arith.constant 5.000000e-01 : f32
    %207 = vector.broadcast %cst_62 : f32 to vector<8x32xf32>
    %208 = arith.mulf %207, %206 : vector<8x32xf32>
    %cst_63 = arith.constant 5.000000e-01 : f32
    %209 = vector.broadcast %cst_63 : f32 to vector<8x32xf32>
    %210 = arith.addf %208, %209 : vector<8x32xf32>
    %211 = vector.extract_strided_slice %205 {offsets = [0, 32], sizes = [8, 32], strides = [1, 1]} : vector<8x128xf32> to vector<8x32xf32>
    %cst_64 = arith.constant 5.000000e-01 : f32
    %212 = vector.broadcast %cst_64 : f32 to vector<8x32xf32>
    %213 = arith.mulf %212, %211 : vector<8x32xf32>
    %cst_65 = arith.constant 5.000000e-01 : f32
    %214 = vector.broadcast %cst_65 : f32 to vector<8x32xf32>
    %215 = arith.addf %213, %214 : vector<8x32xf32>
    %216 = vector.extract_strided_slice %205 {offsets = [0, 64], sizes = [8, 32], strides = [1, 1]} : vector<8x128xf32> to vector<8x32xf32>
    %217 = vector.extract_strided_slice %205 {offsets = [0, 96], sizes = [8, 32], strides = [1, 1]} : vector<8x128xf32> to vector<8x32xf32>
    %cst_66 = arith.constant 5.000000e-01 : f32
    %218 = vector.broadcast %cst_66 : f32 to vector<8x32xf32>
    %219 = arith.mulf %218, %217 : vector<8x32xf32>
    %cst_67 = arith.constant 5.000000e-01 : f32
    %220 = vector.broadcast %cst_67 : f32 to vector<8x32xf32>
    %221 = arith.addf %219, %220 : vector<8x32xf32>
    %222 = arith.mulf %215, %200 : vector<8x32xf32>
    %223 = arith.mulf %210, %216 : vector<8x32xf32>
    %224 = arith.addf %222, %223 : vector<8x32xf32>
    %225 = math.tanh %224 : vector<8x32xf32>
    %226 = arith.mulf %221, %225 : vector<8x32xf32>
    %227 = vector.shape_cast %58 : vector<8x32xf32> to vector<8x1x32xf32>
    %228 = vector.shape_cast %82 : vector<8x32xf32> to vector<8x1x32xf32>
    %229 = vector.shape_cast %106 : vector<8x32xf32> to vector<8x1x32xf32>
    %230 = vector.shape_cast %130 : vector<8x32xf32> to vector<8x1x32xf32>
    %231 = vector.shape_cast %154 : vector<8x32xf32> to vector<8x1x32xf32>
    %232 = vector.shape_cast %178 : vector<8x32xf32> to vector<8x1x32xf32>
    %233 = vector.shape_cast %202 : vector<8x32xf32> to vector<8x1x32xf32>
    %234 = vector.shape_cast %226 : vector<8x32xf32> to vector<8x1x32xf32>
    %235 = tpu.concatenate %227, %228, %229, %230, %231, %232, %233, %234 in 1 : vector<8x1x32xf32>, vector<8x1x32xf32>, vector<8x1x32xf32>, vector<8x1x32xf32>, vector<8x1x32xf32>, vector<8x1x32xf32>, vector<8x1x32xf32>, vector<8x1x32xf32> -> vector<8x8x32xf32>
    %236 = vector.shape_cast %235 : vector<8x8x32xf32> to vector<64x32xf32>
    %c0_68 = arith.constant 0 : index
    %c0_69 = arith.constant 0 : index
    %237 = vector.load %arg6[%c0_68, %c0_69] : memref<32x128xf32, #tpu.memory_space<vmem>>, vector<32x128xf32>
    %cst_70 = arith.constant dense<0.000000e+00> : vector<64x128xf32>
    %238 = tpu.matmul %236, %237, %cst_70 {dimension_numbers = #tpu.dot_dimension_numbers<[1], [0], [0], [1], [0, 0, 1, 1], [], []>} : vector<64x32xf32>, vector<32x128xf32>, vector<64x128xf32> -> vector<64x128xf32>
    %c0_71 = arith.constant 0 : index
    %c0_72 = arith.constant 0 : index
    %239 = vector.load %arg7[%c0_71, %c0_72] : memref<1x128xf32, #tpu.memory_space<vmem>>, vector<1x128xf32>
    %240 = vector.broadcast %239 : vector<1x128xf32> to vector<64x128xf32>
    %241 = arith.addf %238, %240 : vector<64x128xf32>
    %cst_73 = arith.constant dense<0xFF800000> : vector<64xf32>
    %242 = vector.multi_reduction <maximumf>, %241, %cst_73 [1] : vector<64x128xf32> to vector<64xf32>
    %243 = vector.shape_cast %242 : vector<64xf32> to vector<64x1xf32>
    %244 = vector.broadcast %243 : vector<64x1xf32> to vector<64x128xf32>
    %245 = arith.subf %241, %244 : vector<64x128xf32>
    %246 = math.exp %245 : vector<64x128xf32>
    %cst_74 = arith.constant dense<0.000000e+00> : vector<64xf32>
    %247 = vector.multi_reduction <add>, %246, %cst_74 [1] : vector<64x128xf32> to vector<64xf32>
    %248 = vector.shape_cast %247 : vector<64xf32> to vector<64x1xf32>
    %249 = math.log %248 : vector<64x1xf32>
    %250 = arith.addf %243, %249 : vector<64x1xf32>
    %251 = vector.broadcast %250 : vector<64x1xf32> to vector<64x128xf32>
    %252 = arith.subf %241, %251 : vector<64x128xf32>
    %253 = vector.shape_cast %252 : vector<64x128xf32> to vector<8x8x128xf32>
    %c0_75 = arith.constant 0 : index
    %c0_76 = arith.constant 0 : index
    %c0_77 = arith.constant 0 : index
    %254 = vector.load %arg8[%c0_75, %c0_76, %c0_77] : memref<8x8x128xf32, #tpu.memory_space<vmem>>, vector<8x8x128xf32>
    tpu.vector_store %arg8[%c0_75, %c0_76, %c0_77], %253 {strides = array<i32>} : memref<8x8x128xf32, #tpu.memory_space<vmem>>, vector<8x8x128xf32>,
    return
  }
  func.func @transform_0(%arg0: i32) -> (i32, i32) {
    %c0_i32 = arith.constant 0 : i32
    %c0_i32_0 = arith.constant 0 : i32
    return %arg0, %c0_i32 : i32, i32
  }
  func.func @transform_1(%arg0: i32) -> (i32, i32) {
    %c0_i32 = arith.constant 0 : i32
    %c0_i32_0 = arith.constant 0 : i32
    %c0_i32_1 = arith.constant 0 : i32
    return %c0_i32, %c0_i32_0 : i32, i32
  }
  func.func @transform_2(%arg0: i32) -> (i32, i32) {
    %c0_i32 = arith.constant 0 : i32
    %c0_i32_0 = arith.constant 0 : i32
    %c0_i32_1 = arith.constant 0 : i32
    return %c0_i32, %c0_i32_0 : i32, i32
  }
  func.func @transform_3(%arg0: i32) -> (i32, i32) {
    %c0_i32 = arith.constant 0 : i32
    %c0_i32_0 = arith.constant 0 : i32
    %c0_i32_1 = arith.constant 0 : i32
    return %c0_i32, %c0_i32_0 : i32, i32
  }
  func.func @transform_4(%arg0: i32) -> (i32, i32) {
    %c0_i32 = arith.constant 0 : i32
    %c0_i32_0 = arith.constant 0 : i32
    %c0_i32_1 = arith.constant 0 : i32
    return %c0_i32, %c0_i32_0 : i32, i32
  }
  func.func @transform_5(%arg0: i32) -> (i32, i32) {
    %c0_i32 = arith.constant 0 : i32
    %c0_i32_0 = arith.constant 0 : i32
    %c0_i32_1 = arith.constant 0 : i32
    return %c0_i32, %c0_i32_0 : i32, i32
  }
  func.func @transform_6(%arg0: i32) -> (i32, i32) {
    %c0_i32 = arith.constant 0 : i32
    %c0_i32_0 = arith.constant 0 : i32
    %c0_i32_1 = arith.constant 0 : i32
    return %c0_i32, %c0_i32_0 : i32, i32
  }
  func.func @transform_7(%arg0: i32) -> (i32, i32, i32) {
    %c0_i32 = arith.constant 0 : i32
    %c0_i32_0 = arith.constant 0 : i32
    %c0_i32_1 = arith.constant 0 : i32
    return %arg0, %c0_i32, %c0_i32_0 : i32, i32, i32
  }
}

</mosaic_0001>

<bundles_post_ra>
// kernel: _lambda_.1
= control target key start
LH: loop header
LB: loop body
LE: loop exit
PB: predicated region body
PF: predicated region fallthrough
CT: control target
= control target key end

     0   :  { %12 = vsyncpa [#allocation3], 0  ;;  %s5753_s0 = inlined_call_operand.vmem [shape: s32[16,8], index: 0, kind: input, shape index: {}]   ;;  %s5754_s1 = inlined_call_operand.hbm [shape: f32[16,32], index: 1, kind: input, shape index: {}]   ;;  %s5755_s2 = inlined_call_operand.hbm [shape: f32[32,128], index: 2, kind: input, shape index: {}]   ;;  %s5756_s3 = inlined_call_operand.hbm [shape: f32[32,128], index: 3, kind: input, shape index: {}]   ;;  %s5757_s4 = inlined_call_operand.hbm [shape: f32[1,128], index: 4, kind: input, shape index: {}]   ;;  %s5758_s5 = inlined_call_operand.vmem [shape: f32[32,128], index: 5, kind: input, shape index: {}]   ;;  %s5759_s6 = inlined_call_operand.vmem [shape: f32[1,128], index: 6, kind: input, shape index: {}]   ;;  %s5760_s7 = inlined_call_operand.vmem [shape: f32[16,8,128], index: 7, kind: output, shape index: {}]  }
   0x1   :  { %13 = vsyncpa [#allocation5], 0 }
   0x2   :  { %14 = vsyncpa [#allocation8], 0  ;;  %s4300_s24 = smov 0  }
   0x3 LB: > { %s4306_s25 = sadd.s32 4294967295, %s4248_s24   ;;  %p3500_p0 = scmp.ge.s32.totalorder %s4248_s24, 1  ;;  %s4248_s24 = sphi %s4300_s24, %s20_s24  }
   0x4   : > { %p203_p1 = scmp.lt.s32.totalorder %s4248_s24, 3  ;;  %p3808_p2 = scmp.eq.s32.totalorder %s4306_s25, 0 }
   0x5   : > { %s4250_s27 = smov [#allocation4]   ;;  %s4251_s29 = smov [#allocation2]  }
   0x6   : > { %p4311_p3 = pnand %p3500_p0, %p203_p1  ;;  %s228_s28 = sshll.u32 %s4250_s27, 4  ;;  %s229_s28 = int_to_ptr.vmem [resolvable:$true] %s228_s28 }
   0x7   : > { %s215_s30 = sshll.u32 %s4251_s29, 4  ;;  %s4252_s9 = smov [#allocation6]   ;;  %s4317_s30 = int_to_ptr.vmem [resolvable:$true] %s215_s30 }
   0x8   : > { %p3795_p4 = pneg %p4311_p3  ;;  %s241_s10 = sshll.u32 %s4252_s9, 4  ;;  %s4325_s10 = int_to_ptr.vmem [resolvable:$true] %s241_s10 }
   0x9   : > { %s4253_s11 = smov [#allocation7]   ;;  %s4137_s13 = scalar_lea.vmem %s229_s28, 512 }
   0xa   : > { %p4321_p5 = pnand %p3808_p2, %p3795_p4  ;;  %s4327_s12 = sshll.u32 %s4253_s11, 4  ;;  %s256_s12 = int_to_ptr.vmem [resolvable:$true] %s4327_s12 }
   0xb   : > { %p4138_p7 = scmp.ne.s32.totalorder %s229_s28, %s4137_s13  ;;  %p4145_p10 = scmp.lt.s32.totalorder %s229_s28, %s229_s28 }
   0xc   : > { %p4128_p6 = pneg %p4321_p5  ;;  %p4146_p11 = scmp.lt.s32.totalorder %s4137_s13, %s4137_s13 }
   0xe   : > { %p4140_p8 = pnand %p4138_p7, %p4128_p6  ;;  %p4147_p12 = por %p4146_p11, %p4145_p10 }
  0x10   : > { %p4141_p9 = pneg %p4140_p8 }
  0x12   : > { %p4148_p13 = pnand %p4147_p12, %p4141_p9 }
  0x14   : > { %4151 = shalt.err (!%p4148_p13)
}
  0x15   : > { %s4254_s14 = smov 128   ;;  %s4255_s15 = smov 8  }
  0x16   : > { %3801 = dma.hbm_to_vmem [thread:$0]  (!%p4321_p5), %s5755_s2, 512, %s229_s28, [#allocation5], %s4254_s14, %s4254_s14, %s4255_s15  }
  0x17   : > { %s4163_s18 = scalar_lea.vmem %s4317_s30, 256  ;;  %p4171_p7 = scmp.lt.s32.totalorder %s4317_s30, %s4317_s30 }
  0x18   : > { %p4164_p0 = scmp.ne.s32.totalorder %s4317_s30, %s4163_s18  ;;  %p4172_p8 = scmp.lt.s32.totalorder %s4163_s18, %s4163_s18 }
  0x1a   : > { %p4166_p1 = pnand %p4164_p0, %p4128_p6  ;;  %p4173_p9 = por %p4172_p8, %p4171_p7 }
  0x1c   : > { %p4167_p4 = pneg %p4166_p1 }
  0x1e   : > { %p4174_p10 = pnand %p4173_p9, %p4167_p4 }
  0x20   : > { %4177 = shalt.err (!%p4174_p10)
}
  0x21   : > { %3798 = dma.hbm_to_vmem [thread:$0]  (!%p4321_p5), %s5754_s1, 256, %s4317_s30, [#allocation3], %s4254_s14, %s4254_s14, %s4255_s15  }
  0x22   : > { %s4189_s21 = scalar_lea.vmem %s4325_s10, 512  ;;  %p4197_p0 = scmp.lt.s32.totalorder %s4325_s10, %s4325_s10 }
  0x23   : > { %p4190_p11 = scmp.ne.s32.totalorder %s4325_s10, %s4189_s21  ;;  %p4198_p1 = scmp.lt.s32.totalorder %s4189_s21, %s4189_s21 }
  0x25   : > { %p4192_p12 = pnand %p4190_p11, %p4128_p6  ;;  %p4199_p4 = por %p4198_p1, %p4197_p0 }
  0x27   : > { %p4193_p13 = pneg %p4192_p12 }
  0x29   : > { %p4200_p7 = pnand %p4199_p4, %p4193_p13 }
  0x2b   : > { %4203 = shalt.err (!%p4200_p7)
}
  0x2c   : > { %3804 = dma.hbm_to_vmem [thread:$0]  (!%p4321_p5), %s5756_s3, 512, %s4325_s10, [#allocation5], %s4254_s14, %s4254_s14, %s4255_s15  }
  0x2d   : > { %s4215_s27 = scalar_lea.vmem %s256_s12, 16  ;;  %s4222_s28 = scalar_lea.vmem %s256_s12, 32 }
  0x2e   : > { %p4216_p8 = scmp.ne.s32.totalorder %s256_s12, %s4215_s27  ;;  %p4223_p11 = scmp.lt.s32.totalorder %s256_s12, %s256_s12 }
  0x2f   : > { %p4224_p12 = scmp.lt.s32.totalorder %s4222_s28, %s4215_s27 }
  0x30   : > { %p4218_p9 = pnand %p4216_p8, %p4128_p6 }
  0x31   : > { %p4225_p13 = por %p4224_p12, %p4223_p11 }
  0x32   : > { %p4219_p10 = pneg %p4218_p9 }
  0x34   : > { %p4226_p0 = pnand %p4225_p13, %p4219_p10 }
  0x36   : > { %4229 = shalt.err (!%p4226_p0)
}
  0x37   : > { %3807 = dma.hbm_to_vmem [thread:$0]  (!%p4321_p5), %s5757_s4, 16, %s256_s12, [#allocation8]  }
  0x38   : > { %281 = sbr.rel (%p4311_p3) target bundleno = 6559 (0x199f), region = 48 }
  0x3d   : > { %4235 = dma.done.wait (%p3808_p2), [#allocation3], 256  }
  0x3e   : > { %4237 = vsyncadd (%p3808_p2), [#allocation3], 4294967040 }
  0x3f   : > { %4239 = dma.done.wait (%p3808_p2), [#allocation5], 1024  }
  0x40   : > { %4241 = vsyncadd (%p3808_p2), [#allocation5], 4294966272 }
  0x41   : > { %4243 = dma.done.wait (%p3808_p2), [#allocation8], 16  }
  0x42   : > { %4245 = vsyncadd (%p3808_p2), [#allocation8], 4294967280  ;;  %p324_p3 = scmp.lt.s32.totalorder %s4306_s25, 1  ;;  %v335_v0 = vlaneseq  ;;  %v418_v7 = vld [vmem:[#allocation2 + $0x8] sm:$0xff]  ;;  %v417_v10 = vld [vmem:[#allocation2] sm:$0xff]  ;;  %v4256_v16 = vmov 0.0  }
  0x43   : > { %3631 = vmatprep.subr.mxu0 %v418_v7  ;;  %3775 = vmatprep.subr.mxu1 %v418_v7  ;;  %v552_v15 = vld [vmem:[#allocation4 + $0x18] sm:$0xff]  ;;  %vm419_vm0 = vcmask 130048   ;;  %v4401_v32 = vld [vmem:[#allocation6 + $0x10] sm:$0xff]  ;;  %v550_v41 = vld [vmem:[#allocation4 + $0x8] sm:$0xff]  ;;  %vm4257_vm9 = vmmov 0   ;;  %vm560_vm10 = vcmask 261120  }
  0x44   : > { %s325_s26 = scalar_select %p324_p3, %s4306_s25, 1  ;;  %v336_v1 = vshrl.u32 %v335_v0, 7  ;;  %3632 = vmatpush3.msra.mxu0 %v418_v7  ;;  %3777 = vmatpush3.msra.mxu1 %v418_v7  ;;  %v392_v23 = vand.u32 127, %v335_v0  ;;  %v4397_v30 = vld [vmem:[#allocation6 + $0x18] sm:$0xff]  ;;  %v551_v38 = vld [vmem:[#allocation4 + $0x10] sm:$0xff]  ;;  %v549_v44 = vld [vmem:[#allocation4] sm:$0xff] }
  0x45   : > { %3633 = vmatprep.subr.mxu0 %v417_v10  ;;  %3776 = vmatprep.subr.mxu1 %v417_v10  ;;  %v4418_v45 = vld [vmem:[#allocation6 + $0x8] sm:$0xff]  ;;  %v4422_v46 = vld [vmem:[#allocation6] sm:$0xff]  ;;  %s4258_s12 = smov 64   ;;  %s4259_s13 = smov 32   ;;  %vm960_vm11 = vcmask 1041409   ;;  %vm963_vm12 = vcmask 1042434  }
  0x46   : > { %s3511_s8 = sshll.u32 %s325_s26, 3  ;;  %v337_v2 = vsub.s32 0, %v336_v1  ;;  %v351_v3 = vsub.s32 2, %v336_v1  ;;  %v344_v4 = vsub.s32 1, %v336_v1  ;;  %v358_v5 = vsub.s32 3, %v336_v1  ;;  %3634 = vmatpush3.msra.mxu0 %v417_v10  ;;  %3778 = vmatpush3.msra.mxu1 %v417_v10  ;;  %s3512_s27 = sshll.u32 %s4306_s25, 3 }
  0x47   : > { %s327_s11 = scalar_lea.vmem %s5753_s0, %s3511_s8  ;;  %v365_v13 = vsub.s32 4, %v336_v1  ;;  %v372_v14 = vsub.s32 5, %v336_v1  ;;  %3667 = vmatprep.subr.mxu0 %v4256_v16  ;;  %v379_v19 = vsub.s32 6, %v336_v1  ;;  %v386_v20 = vsub.s32 7, %v336_v1  ;;  %3647 = vmatprep.subr.mxu1 %v552_v15  ;;  %v3530_v57 = vld [vmem:[#allocation7] ss:$0 sm:$0xff] }
  0x48   : > { %v334_v6 = vld [vmem:[%s327_s11] sm:$0xff]  ;;  %vm966_vm13 = vcmask 1043459   ;;  %vm969_vm14 = vcmask 1044484   ;;  %vm972_vm15 = vcmask 1045509   ;;  %p329_p2 = scmp.lt.s32.totalorder %s3512_s27, 15 }
  0x49   : > { %v338_v8 = vrot.slane %v334_v6, %v337_v2  ;;  %v352_v9 = vrot.slane %v334_v6, %v351_v3  ;;  %v345_v11 = vrot.slane %v334_v6, %v344_v4  ;;  %v359_v12 = vrot.slane %v334_v6, %v358_v5 }
  0x4a   : > { %v366_v17 = vrot.slane %v334_v6, %v365_v13  ;;  %v373_v18 = vrot.slane %v334_v6, %v372_v14  ;;  %v380_v21 = vrot.slane %v334_v6, %v379_v19  ;;  %v387_v22 = vrot.slane %v334_v6, %v386_v20  ;;  %s5764_s27 = smov (!%p329_p2, %s3512_s27), 15 }
  0x4b   : > { %340 = vbcast.lane.b32.xlu0 %v338_v8, 256  ;;  %354 = vbcast.lane.b32.xlu1 %v352_v9, 256  ;;  %s3513_s28 = sshll.u32 %s5764_s27, 3 }
  0x4c   : > { %s5725_s30 = scalar_lea.vmem %s5760_s7, %s3513_s28 }
  0x4f   : > { %347 = vbcast.lane.b32.xlu0 %v345_v11, 256  ;;  %361 = vbcast.lane.b32.xlu1 %v359_v12, 256 }
  0x53   : > { %368 = vbcast.lane.b32.xlu0 %v366_v17, 256  ;;  %375 = vbcast.lane.b32.xlu1 %v373_v18, 256 }
  0x57   : > { %382 = vbcast.lane.b32.xlu0 %v380_v21, 256  ;;  %389 = vbcast.lane.b32.xlu1 %v387_v22, 256 }
  0xbd   : > { %v341_v24 = vpop.permute.xlu0 %340  ;;  %v355_v25 = vpop.permute.xlu1 %354 }
  0xbe   : > { %vm393_vm1 = vcmp.eq.s32.totalorder %v341_v24, %v392_v23  ;;  %vm395_vm2 = vcmp.eq.s32.totalorder %v355_v25, %v392_v23 }
  0xbf   : > { %v3514_v26 = vsel %vm393_vm1, 1.0, %v4256_v16  ;;  %v3516_v29 = vsel %vm395_vm2, 1.0, %v4256_v16  ;;  %vm978_vm1 = vcmask 1047559   ;;  %vm3095_vm2 = vcmask 1041408  }
  0xc0   : > { %3635 = vmatprep.mubr.msk.f32.mxu0 %vm419_vm0, %v3514_v26 }
  0xc1   : > { %v348_v27 = vpop.permute.xlu0 %347  ;;  %v362_v28 = vpop.permute.xlu1 %361 }
  0xc2   : > { %vm394_vm3 = vcmp.eq.s32.totalorder %v348_v27, %v392_v23  ;;  %vm396_vm4 = vcmp.eq.s32.totalorder %v362_v28, %v392_v23 }
  0xc3   : > { %v3515_v31 = vsel %vm394_vm3, 1.0, %v4256_v16  ;;  %v3517_v33 = vsel %vm396_vm4, 1.0, %v4256_v16  ;;  %vm3086_vm3 = vcmask 1040384   ;;  %vm3104_vm4 = vcmask 1042432  }
  0xc4   : > { %3636 = vmatmul.mubr.msk.f32.vlgmr.msra.gmra.mxu0 %vm419_vm0, %v3515_v31 }
  0xc5   : > { %3638 = vmatprep.mubr.msk.f32.mxu0 %vm419_vm0, %v3516_v29  ;;  %v369_v34 = vpop.permute.xlu0 %368  ;;  %v376_v35 = vpop.permute.xlu1 %375  ;;  %3668 = vmatpush3.msra.mxu0 %v4397_v30 }
  0xc6   : > { %vm398_vm5 = vcmp.eq.s32.totalorder %v376_v35, %v392_v23  ;;  %vm397_vm6 = vcmp.eq.s32.totalorder %v369_v34, %v392_v23  ;;  %3669 = vmatprep.subr.mxu0 %v4256_v16 }
  0xc7   : > { %v3519_v36 = vsel %vm398_vm5, 1.0, %v4256_v16  ;;  %v3518_v37 = vsel %vm397_vm6, 1.0, %v4256_v16  ;;  %3670 = vmatpush3.msra.mxu0 %v4401_v32  ;;  %vm3113_vm5 = vcmask 1043456   ;;  %vm3122_vm6 = vcmask 1044480  }
  0xc8   : > { %3639 = vmatmul.mubr.msk.f32.gmra.mxu0 %vm419_vm0, %v3517_v33  ;;  %3641 = vmatprep.mubr.msk.f32.mxu1 %vm419_vm0, %v3518_v37 }
  0xc9   : > { %3642 = vmatmul.mubr.msk.f32.vlgmr.msra.gmra.mxu1 %vm419_vm0, %v3519_v36  ;;  %v383_v39 = vpop.permute.xlu0 %382  ;;  %v390_v40 = vpop.permute.xlu1 %389  ;;  %3671 = vmatprep.subr.mxu0 %v4256_v16 }
  0xca   : > { %vm399_vm7 = vcmp.eq.s32.totalorder %v383_v39, %v392_v23  ;;  %vm400_vm8 = vcmp.eq.s32.totalorder %v390_v40, %v392_v23  ;;  %3648 = vmatpush3.msra.mxu1 %v552_v15  ;;  %3672 = vmatpush3.msra.mxu0 %v4418_v45 }
  0xcb   : > { %v3520_v42 = vsel %vm399_vm7, 1.0, %v4256_v16  ;;  %v3521_v43 = vsel %vm400_vm8, 1.0, %v4256_v16  ;;  %3649 = vmatprep.subr.mxu1 %v551_v38  ;;  %3673 = vmatprep.subr.mxu0 %v4256_v16  ;;  %vm3131_vm7 = vcmask 1045504   ;;  %vm3140_vm8 = vcmask 1046528  }
  0xcc   : > { %3644 = vmatprep.mubr.msk.f32.mxu1 %vm419_vm0, %v3520_v42  ;;  %3650 = vmatpush3.msra.mxu1 %v551_v38 }
  0xcd   : > { %3645 = vmatmul.mubr.msk.f32.gmra.mxu1 %vm419_vm0, %v3521_v43  ;;  %3651 = vmatprep.subr.mxu1 %v550_v41  ;;  %vm975_vm0 = vcmask 1046534  }
  0xce   : > { %3652 = vmatpush3.msra.mxu1 %v550_v41  ;;  %3674 = vmatpush3.msra.mxu0 %v4422_v46 }
  0xcf   : > { %3653 = vmatprep.subr.mxu1 %v549_v44  ;;  %3675 = vmatprep.mubr.msk.f32.mxu0 %vm4257_vm9, %v4256_v16 }
  0xd0   : > { %3654 = vmatpush3.msra.mxu1 %v549_v44  ;;  %3676 = vmatmul.mubr.f32.vlgmr.msra.gmra.mxu0 %v4256_v16 }
  0xd1   : > { %3678 = vmatprep.subr.mxu1 %v4256_v16  ;;  %3689 = vmatprep.subr.mxu0 %v4256_v16 }
  0xd2   : > { %3697 = vmatprep.mubr.msk.f32.mxu0 %vm4257_vm9, %v4256_v16  ;;  %3690 = vmatpush3.msra.mxu0 %v4397_v30 }
  0xd3   : > { %3691 = vmatprep.subr.mxu0 %v4256_v16 }
  0xd4   : > { %3692 = vmatpush3.msra.mxu0 %v4401_v32 }
  0xd5   : > { %3693 = vmatprep.subr.mxu0 %v4256_v16 }
  0xd6   : > { %3694 = vmatpush3.msra.mxu0 %v4418_v45 }
  0xd7   : > { %3695 = vmatprep.subr.mxu0 %v4256_v16 }
  0xd8   : > { %3696 = vmatpush3.msra.mxu0 %v4422_v46 }
  0xd9   : > { %3711 = vmatprep.subr.mxu0 %v4256_v16 }
 0x184   : > { %v3637_v47 = vpop.f32.mrf.mxu0 }
 0x186   : > { %v510_v48 = vpop.f32.mrf.mxu0 }
 0x187   : > { %3655 = vmatprep.mubr.msk.f32.mxu1 %vm560_vm10, %v510_v48 }
 0x188   : > { %v3640_v49 = vpop.f32.mrf.mxu0  ;;  %3656 = vmatmul.mubr.msk.f32.vlgmr.msra.gmra.mxu1 %vm560_vm10, %v3637_v47 }
 0x189   : > { %v3643_v50 = vpop.f32.mrf.mxu1  ;;  %3679 = vmatpush3.msra.mxu1 %v4397_v30 }
 0x18a   : > { %v520_v51 = vpop.f32.mrf.mxu0  ;;  %3680 = vmatprep.subr.mxu1 %v4256_v16 }
 0x18b   : > { %3658 = vmatprep.mubr.msk.f32.mxu1 %vm560_vm10, %v520_v51  ;;  %v530_v52 = vpop.f32.mrf.mxu1  ;;  %3681 = vmatpush3.msra.mxu1 %v4401_v32 }
 0x18c   : > { %3659 = vmatmul.mubr.msk.f32.gmra.mxu1 %vm560_vm10, %v3640_v49  ;;  %3682 = vmatprep.subr.mxu1 %v4256_v16 }
 0x18d   : > { %3661 = vmatprep.mubr.msk.f32.mxu1 %vm560_vm10, %v530_v52  ;;  %v3646_v53 = vpop.f32.mrf.mxu1  ;;  %3683 = vmatpush3.msra.mxu1 %v4418_v45 }
 0x18e   : > { %3684 = vmatprep.subr.mxu1 %v4256_v16 }
 0x18f   : > { %v540_v54 = vpop.f32.mrf.mxu1  ;;  %3685 = vmatpush3.msra.mxu1 %v4422_v46 }
 0x190   : > { %3662 = vmatmul.mubr.msk.f32.gmra.mxu1 %vm560_vm10, %v3643_v50  ;;  %3700 = vmatprep.subr.mxu1 %v4256_v16  ;;  %v763_v55 = vpop.f32.mrf.mxu0 }
 0x191   : > { %3664 = vmatprep.mubr.msk.f32.mxu1 %vm560_vm10, %v540_v54  ;;  %v768_v58 = vrot.slane %v763_v55, 1  ;;  %v770_v62 = vrot.slane %v763_v55, 3  ;;  %v769_v5 = vrot.slane %v763_v55, 2  ;;  %v771_v12 = vrot.slane %v763_v55, 4 }
 0x192   : > { %v3677_v56 = vpop.f32.mrf.mxu0  ;;  %v772_v13 = vrot.slane %v763_v55, 5  ;;  %v773_v21 = vrot.slane %v763_v55, 6  ;;  %v774_v22 = vrot.slane %v763_v55, 7 }
 0x194   : > { %3665 = vmatmul.mubr.msk.f32.gmra.mxu1 %vm560_vm10, %v3646_v53 }
 0x195   : > { %3686 = vmatprep.mubr.msk.f32.mxu1 %vm4257_vm9, %v4256_v16 }
 0x248   : > { %v3657_v59 = vpop.f32.mrf.mxu1 }
 0x249   : > { %v4458_v60 = vadd.f32 %v3657_v59, %v3530_v57 }
 0x24a   : > { %v651_v61 = vpop.f32.mrf.mxu1 }
 0x24b   : > { %v784_v63 = vadd.f32 %v768_v58, %v4458_v60  ;;  %v4461_v0 = vadd.f32 %v3530_v57, %v651_v61 }
 0x24c   : > { %v3660_v1 = vpop.f32.mrf.mxu1 }
 0x24d   : > { %3834 = vtanh.f32 %v784_v63  ;;  %v4463_v2 = vadd.f32 %v3660_v1, %v3530_v57  ;;  %v783_v3 = vadd.f32 %v763_v55, %v4461_v0 }
 0x24e   : > { %v661_v4 = vpop.f32.mrf.mxu1 }
 0x24f   : > { %v4466_v6 = vadd.f32 %v3530_v57, %v661_v4  ;;  %v786_v7 = vadd.f32 %v770_v62, %v4463_v2  ;;  %3836 = vtanh.f32 %v783_v3 }
 0x250   : > { %v3663_v8 = vpop.f32.mrf.mxu1 }
 0x251   : > { %v4469_v9 = vadd.f32 %v3663_v8, %v3530_v57  ;;  %3838 = vtanh.f32 %v786_v7  ;;  %v785_v10 = vadd.f32 %v769_v5, %v4466_v6 }
 0x252   : > { %v671_v11 = vpop.f32.mrf.mxu1 }
 0x253   : > { %v4472_v14 = vadd.f32 %v3530_v57, %v671_v11  ;;  %3840 = vtanh.f32 %v785_v10  ;;  %v788_v19 = vadd.f32 %v772_v13, %v4469_v9 }
 0x254   : > { %v3666_v15 = vpop.f32.mrf.mxu1 }
 0x255   : > { %v4474_v17 = vadd.f32 %v3666_v15, %v3530_v57  ;;  %v787_v18 = vadd.f32 %v771_v12, %v4472_v14 }
 0x256   : > { %v681_v20 = vpop.f32.mrf.mxu1 }
 0x257   : > { %v4478_v23 = vadd.f32 %v3530_v57, %v681_v20  ;;  %3842 = vtanh.f32 %v787_v18  ;;  %v790_v25 = vadd.f32 %v774_v22, %v4474_v17 }
 0x258   : > { %3844 = vtanh.f32 %v788_v19 }
 0x259   : > { %v789_v24 = vadd.f32 %v773_v21, %v4478_v23 }
 0x25a   : > { %v3835_v26 = vpop.eup %3834 }
 0x25b   : > { %833 = vrot.lane.b32.xlu0 %v3835_v26, %s4258_s12  ;;  %3846 = vtanh.f32 %v789_v24  ;;  %v800_v36 = vmul.f32 0.5, %v3835_v26 }
 0x25c   : > { %v3837_v27 = vpop.eup %3836  ;;  %3848 = vtanh.f32 %v790_v25 }
 0x25d   : > { %v4490_v37 = vadd.f32 0.5, %v800_v36  ;;  %v799_v39 = vmul.f32 0.5, %v3837_v27 }
 0x25e   : > { %v3839_v28 = vpop.eup %3838 }
 0x25f   : > { %837 = vrot.lane.b32.xlu1 %v3839_v28, %s4258_s12  ;;  %831 = vrot.lane.b32.xlu0 %v3837_v27, %s4258_s12  ;;  %v802_v38 = vmul.f32 0.5, %v3839_v28  ;;  %v4496_v43 = vadd.f32 0.5, %v799_v39  ;;  %v816_v11 = vmul.f32 0.0, %v4490_v37 }
 0x260   : > { %v3841_v29 = vpop.eup %3840 }
 0x261   : > { %v4494_v42 = vadd.f32 0.5, %v802_v38  ;;  %v801_v44 = vmul.f32 0.5, %v3841_v29  ;;  %v815_v18 = vmul.f32 0.0, %v4496_v43 }
 0x263   : > { %835 = vrot.lane.b32.xlu1 %v3841_v29, %s4258_s12  ;;  %v4502_v52 = vadd.f32 0.5, %v801_v44  ;;  %v818_v15 = vmul.f32 0.0, %v4494_v42 }
 0x264   : > { %v3843_v31 = vpop.eup %3842 }
 0x265   : > { %839 = vrot.lane.b32.xlu0 %v3843_v31, %s4258_s12  ;;  %v3845_v33 = vpop.eup %3844  ;;  %v803_v51 = vmul.f32 0.5, %v3843_v31  ;;  %v817_v24 = vmul.f32 0.0, %v4502_v52 }
 0x266   : > { %v804_v53 = vmul.f32 0.5, %v3845_v33 }
 0x267   : > { %841 = vrot.lane.b32.xlu1 %v3845_v33, %s4258_s12  ;;  %v4505_v56 = vadd.f32 0.5, %v803_v51 }
 0x268   : > { %v3847_v34 = vpop.eup %3846  ;;  %v4509_v61 = vadd.f32 0.5, %v804_v53 }
 0x269   : > { %843 = vrot.lane.b32.xlu0 %v3847_v34, %s4258_s12  ;;  %v3849_v35 = vpop.eup %3848  ;;  %v805_v57 = vmul.f32 0.5, %v3847_v34  ;;  %v819_v27 = vmul.f32 0.0, %v4505_v56 }
 0x26a   : > { %v806_v62 = vmul.f32 0.5, %v3849_v35  ;;  %v820_v31 = vmul.f32 0.0, %v4509_v61 }
 0x26b   : > { %845 = vrot.lane.b32.xlu1 %v3849_v35, %s4258_s12  ;;  %v4513_v3 = vadd.f32 0.5, %v805_v57 }
 0x26c   : > { %v4517_v7 = vadd.f32 0.5, %v806_v62 }
 0x26d   : > { %v821_v35 = vmul.f32 0.0, %v4513_v3 }
 0x26e   : > { %v822_v39 = vmul.f32 0.0, %v4517_v7 }
 0x2cd   : > { %v834_v40 = vpop.permute.xlu0 %833 }
 0x2ce   : > { %v856_v41 = vmul.f32 %v834_v40, %v4490_v37 }
 0x2d0   : > { %873 = vrot.lane.b32.xlu0 %v856_v41, %s4259_s13 }
 0x2d1   : > { %v838_v47 = vpop.permute.xlu1 %837  ;;  %v832_v48 = vpop.permute.xlu0 %831 }
 0x2d2   : > { %v858_v49 = vmul.f32 %v838_v47, %v4494_v42  ;;  %v855_v50 = vmul.f32 %v832_v48, %v4496_v43 }
 0x2d4   : > { %877 = vrot.lane.b32.xlu1 %v858_v49, %s4259_s13  ;;  %871 = vrot.lane.b32.xlu0 %v855_v50, %s4259_s13 }
 0x2d5   : > { %v836_v54 = vpop.permute.xlu1 %835 }
 0x2d6   : > { %v857_v55 = vmul.f32 %v836_v54, %v4502_v52 }
 0x2d7   : > { %v840_v58 = vpop.permute.xlu0 %839 }
 0x2d8   : > { %v859_v59 = vmul.f32 %v840_v58, %v4505_v56  ;;  %875 = vrot.lane.b32.xlu1 %v857_v55, %s4259_s13 }
 0x2d9   : > { %v842_v63 = vpop.permute.xlu1 %841 }
 0x2da   : > { %v860_v1 = vmul.f32 %v842_v63, %v4509_v61  ;;  %879 = vrot.lane.b32.xlu0 %v859_v59, %s4259_s13 }
 0x2db   : > { %v844_v4 = vpop.permute.xlu0 %843 }
 0x2dc   : > { %v861_v5 = vmul.f32 %v844_v4, %v4513_v3  ;;  %881 = vrot.lane.b32.xlu1 %v860_v1, %s4259_s13 }
 0x2dd   : > { %v846_v8 = vpop.permute.xlu1 %845 }
 0x2de   : > { %v862_v10 = vmul.f32 %v846_v8, %v4517_v7  ;;  %883 = vrot.lane.b32.xlu0 %v861_v5, %s4259_s13 }
 0x2e0   : > { %885 = vrot.lane.b32.xlu1 %v862_v10, %s4259_s13 }
 0x342   : > { %v874_v12 = vpop.permute.xlu0 %873 }
 0x343   : > { %v4523_v13 = vadd.f32 %v874_v12, %v816_v11 }
 0x345   : > { %3850 = vtanh.f32 %v4523_v13 }
 0x346   : > { %v878_v19 = vpop.permute.xlu1 %877  ;;  %v872_v20 = vpop.permute.xlu0 %871 }
 0x347   : > { %v4528_v21 = vadd.f32 %v878_v19, %v818_v15  ;;  %v4530_v22 = vadd.f32 %v872_v20, %v815_v18 }
 0x349   : > { %3852 = vtanh.f32 %v4528_v21 }
 0x34a   : > { %3854 = vtanh.f32 %v4530_v22  ;;  %v876_v25 = vpop.permute.xlu1 %875 }
 0x34b   : > { %v4535_v26 = vadd.f32 %v876_v25, %v817_v24 }
 0x34c   : > { %v880_v28 = vpop.permute.xlu0 %879 }
 0x34d   : > { %3856 = vtanh.f32 %v4535_v26  ;;  %v4539_v29 = vadd.f32 %v880_v28, %v819_v27 }
 0x34e   : > { %v882_v33 = vpop.permute.xlu1 %881 }
 0x34f   : > { %3858 = vtanh.f32 %v4539_v29  ;;  %v4543_v34 = vadd.f32 %v882_v33, %v820_v31 }
 0x350   : > { %v884_v36 = vpop.permute.xlu0 %883 }
 0x351   : > { %3860 = vtanh.f32 %v4543_v34  ;;  %v4547_v38 = vadd.f32 %v884_v36, %v821_v35 }
 0x352   : > { %v3851_v40 = vpop.eup %3850  ;;  %v886_v41 = vpop.permute.xlu1 %885 }
 0x353   : > { %3862 = vtanh.f32 %v4547_v38  ;;  %v4551_v44 = vadd.f32 %v886_v41, %v822_v39  ;;  %921 = vrot.lane.b32.xlu0 %v3851_v40, %s4258_s12 }
 0x355   : > { %3864 = vtanh.f32 %v4551_v44 }
 0x356   : > { %v3853_v47 = vpop.eup %3852 }
 0x357   : > { %v3855_v48 = vpop.eup %3854  ;;  %925 = vrot.lane.b32.xlu1 %v3853_v47, %s4258_s12 }
 0x358   : > { %919 = vrot.lane.b32.xlu0 %v3855_v48, %s4258_s12 }
 0x35a   : > { %v3857_v49 = vpop.eup %3856 }
 0x35b   : > { %923 = vrot.lane.b32.xlu1 %v3857_v49, %s4258_s12 }
 0x35c   : > { %v3859_v50 = vpop.eup %3858 }
 0x35d   : > { %927 = vrot.lane.b32.xlu0 %v3859_v50, %s4258_s12 }
 0x35e   : > { %v3861_v51 = vpop.eup %3860 }
 0x35f   : > { %929 = vrot.lane.b32.xlu1 %v3861_v51, %s4258_s12 }
 0x360   : > { %v3863_v53 = vpop.eup %3862 }
 0x361   : > { %931 = vrot.lane.b32.xlu0 %v3863_v53, %s4258_s12 }
 0x362   : > { %v3865_v54 = vpop.eup %3864 }
 0x363   : > { %933 = vrot.lane.b32.xlu1 %v3865_v54, %s4258_s12 }
 0x3c5   : > { %v922_v55 = vpop.permute.xlu0 %921 }
 0x3c6   : > { %v4563_v59 = vmul.f32 %v922_v55, %v4490_v37 }
 0x3c8   : > { %v959_v5 = vrot.slane %v4563_v59, 7 }
 0x3c9   : > { %v926_v57 = vpop.permute.xlu1 %925 }
 0x3ca   : > { %v920_v58 = vpop.permute.xlu0 %919  ;;  %v4566_v62 = vmul.f32 %v926_v57, %v4494_v42 }
 0x3cb   : > { %v4569_v63 = vmul.f32 %v920_v58, %v4496_v43 }
 0x3cc   : > { %v965_v42 = vrot.slane %v4566_v62, 5 }
 0x3cd   : > { %v924_v1 = vpop.permute.xlu1 %923  ;;  %v961_v43 = vsel %vm960_vm11, %v959_v5, %v4569_v63 }
 0x3ce   : > { %v4572_v4 = vmul.f32 %v924_v1, %v4502_v52 }
 0x3cf   : > { %v928_v8 = vpop.permute.xlu0 %927 }
 0x3d0   : > { %v962_v10 = vrot.slane %v4572_v4, 6  ;;  %v4577_v37 = vmul.f32 %v928_v8, %v4505_v56 }
 0x3d1   : > { %v930_v11 = vpop.permute.xlu1 %929 }
 0x3d2   : > { %v964_v52 = vsel %vm963_vm12, %v962_v10, %v961_v43  ;;  %v968_v12 = vrot.slane %v4577_v37, 4  ;;  %v4585_v15 = vmul.f32 %v930_v11, %v4509_v61 }
 0x3d3   : > { %v967_v18 = vsel %vm966_vm13, %v965_v42, %v964_v52  ;;  %v932_v19 = vpop.permute.xlu0 %931 }
 0x3d4   : > { %v970_v56 = vsel %vm969_vm14, %v968_v12, %v967_v18  ;;  %v971_v20 = vrot.slane %v4585_v15, 3  ;;  %v4591_v24 = vmul.f32 %v932_v19, %v4513_v3 }
 0x3d5   : > { %v934_v25 = vpop.permute.xlu1 %933 }
 0x3d6   : > { %v974_v27 = vrot.slane %v4591_v24, 2  ;;  %v4595_v28 = vmul.f32 %v934_v25, %v4517_v7  ;;  %v973_v61 = vsel %vm972_vm15, %v971_v20, %v970_v56 }
 0x3d8   : > { %v977_v31 = vrot.slane %v4595_v28, 1  ;;  %v976_v33 = vsel %vm975_vm0, %v974_v27, %v973_v61 }
 0x3da   : > { %v979_v35 = vsel %vm978_vm1, %v977_v31, %v976_v33 }
 0x3db   : > { %980 = vrot.lane.b32.xlu0 %v979_v35, %s4259_s13 }
 0x44d   : > { %v981_v3 = vpop.permute.xlu0 %980 }
 0x44e   : > { %3687 = vmatmul.mubr.msk.f32.vlgmr.msra.gmra.mxu1 %vm560_vm10, %v981_v3 }
 0x44f   : > { %3701 = vmatpush3.msra.mxu1 %v4397_v30  ;;  %3708 = vmatprep.mubr.msk.f32.mxu1 %vm4257_vm9, %v4256_v16 }
 0x450   : > { %3702 = vmatprep.subr.mxu1 %v4256_v16 }
 0x451   : > { %3703 = vmatpush3.msra.mxu1 %v4401_v32 }
 0x452   : > { %3704 = vmatprep.subr.mxu1 %v4256_v16 }
 0x453   : > { %3705 = vmatpush3.msra.mxu1 %v4418_v45 }
 0x454   : > { %3706 = vmatprep.subr.mxu1 %v4256_v16 }
 0x455   : > { %3707 = vmatpush3.msra.mxu1 %v4422_v46 }
 0x456   : > { %3722 = vmatprep.subr.mxu1 %v4256_v16 }
 0x50e   : > { %v1050_v7 = vpop.f32.mrf.mxu1 }
 0x50f   : > { %v1055_v36 = vrot.slane %v1050_v7, 7  ;;  %v1056_v39 = vrot.slane %v1050_v7, 1  ;;  %v1057_v40 = vrot.slane %v1050_v7, 2  ;;  %v1071_v41 = vadd.f32 %v1050_v7, %v4458_v60 }
 0x510   : > { %v3688_v47 = vpop.f32.mrf.mxu1  ;;  %v1058_v49 = vrot.slane %v1050_v7, 3  ;;  %v1059_v51 = vrot.slane %v1050_v7, 4  ;;  %v1060_v54 = vrot.slane %v1050_v7, 5  ;;  %v1061_v57 = vrot.slane %v1050_v7, 6 }
 0x511   : > { %v1072_v48 = vadd.f32 %v1056_v39, %v4466_v6  ;;  %v1070_v50 = vadd.f32 %v1055_v36, %v4461_v0  ;;  %3866 = vtanh.f32 %v1071_v41  ;;  %v1073_v53 = vadd.f32 %v1057_v40, %v4463_v2 }
 0x512   : > { %v1074_v55 = vadd.f32 %v1058_v49, %v4472_v14  ;;  %v1075_v58 = vadd.f32 %v1059_v51, %v4469_v9  ;;  %v1076_v1 = vadd.f32 %v1060_v54, %v4478_v23  ;;  %v1077_v5 = vadd.f32 %v1061_v57, %v4474_v17 }
 0x513   : > { %3868 = vtanh.f32 %v1072_v48 }
 0x514   : > { %3870 = vtanh.f32 %v1070_v50 }
 0x515   : > { %3872 = vtanh.f32 %v1073_v53 }
 0x516   : > { %3874 = vtanh.f32 %v1074_v55 }
 0x517   : > { %3876 = vtanh.f32 %v1075_v58 }
 0x518   : > { %3878 = vtanh.f32 %v1076_v1 }
 0x519   : > { %3880 = vtanh.f32 %v1077_v5 }
 0x51e   : > { %v3867_v8 = vpop.eup %3866 }
 0x51f   : > { %1144 = vrot.lane.b32.xlu1 %v3867_v8, %s4258_s12  ;;  %v1087_v19 = vmul.f32 0.5, %v3867_v8 }
 0x520   : > { %v3869_v10 = vpop.eup %3868 }
 0x521   : > { %1146 = vrot.lane.b32.xlu0 %v3869_v10, %s4258_s12  ;;  %v3871_v42 = vpop.eup %3870  ;;  %v1088_v56 = vmul.f32 0.5, %v3869_v10  ;;  %v4629_v20 = vadd.f32 0.5, %v1087_v19 }
 0x522   : > { %v3873_v43 = vpop.eup %3872  ;;  %v1086_v25 = vmul.f32 0.5, %v3871_v42 }
 0x523   : > { %1142 = vrot.lane.b32.xlu1 %v3871_v42, %s4258_s12  ;;  %v3875_v11 = vpop.eup %3874  ;;  %v4632_v31 = vadd.f32 0.5, %v1088_v56  ;;  %v1089_v33 = vmul.f32 0.5, %v3873_v43  ;;  %v1110_v56 = vrot.slane %v4530_v22, 7 }
 0x524   : > { %v3877_v52 = vpop.eup %3876  ;;  %v4636_v7 = vadd.f32 0.5, %v1086_v25  ;;  %v1090_v36 = vmul.f32 0.5, %v3875_v11 }
 0x525   : > { %1148 = vrot.lane.b32.xlu0 %v3873_v43, %s4258_s12  ;;  %v3879_v12 = vpop.eup %3878  ;;  %v4640_v41 = vadd.f32 0.5, %v1089_v33  ;;  %v1091_v47 = vmul.f32 0.5, %v3877_v52  ;;  %v1113_v33 = vrot.slane %v4528_v21, 7 }
 0x526   : > { %v3881_v18 = vpop.eup %3880  ;;  %v4644_v50 = vadd.f32 0.5, %v1090_v36  ;;  %v1092_v51 = vmul.f32 0.5, %v3879_v12 }
 0x527   : > { %1150 = vrot.lane.b32.xlu1 %v3875_v11, %s4258_s12  ;;  %v4648_v55 = vadd.f32 0.5, %v1091_v47  ;;  %v1093_v57 = vmul.f32 0.5, %v3881_v18  ;;  %v1129_v22 = vmul.f32 %v1113_v33, %v4640_v41 }
 0x528   : > { %v4652_v5 = vadd.f32 0.5, %v1092_v51 }
 0x529   : > { %1152 = vrot.lane.b32.xlu0 %v3877_v52, %s4258_s12  ;;  %v4656_v42 = vadd.f32 0.5, %v1093_v57  ;;  %v1111_v52 = vrot.slane %v4523_v13, 7  ;;  %v1126_v13 = vmul.f32 %v1110_v56, %v4636_v7 }
 0x52b   : > { %1154 = vrot.lane.b32.xlu1 %v3879_v12, %s4258_s12  ;;  %v1112_v12 = vrot.slane %v4535_v26, 7  ;;  %v1114_v26 = vrot.slane %v4539_v29, 7 }
 0x52d   : > { %1156 = vrot.lane.b32.xlu0 %v3881_v18, %s4258_s12  ;;  %v1127_v18 = vmul.f32 %v1111_v52, %v4629_v20  ;;  %v1130_v47 = vmul.f32 %v1114_v26, %v4644_v50 }
 0x591   : > { %v1145_v27 = vpop.permute.xlu1 %1144 }
 0x592   : > { %v1167_v61 = vmul.f32 %v1145_v27, %v4629_v20  ;;  %v1128_v27 = vmul.f32 %v1112_v12, %v4632_v31 }
 0x593   : > { %v1147_v35 = vpop.permute.xlu0 %1146 }
 0x594   : > { %v1168_v3 = vmul.f32 %v1147_v35, %v4632_v31  ;;  %1184 = vrot.lane.b32.xlu1 %v1167_v61, %s4259_s13 }
 0x595   : > { %v1143_v39 = vpop.permute.xlu1 %1142 }
 0x596   : > { %v1166_v40 = vmul.f32 %v1143_v39, %v4636_v7  ;;  %1186 = vrot.lane.b32.xlu0 %v1168_v3, %s4259_s13 }
 0x597   : > { %v1149_v48 = vpop.permute.xlu0 %1148 }
 0x598   : > { %v1169_v49 = vmul.f32 %v1149_v48, %v4640_v41  ;;  %1182 = vrot.lane.b32.xlu1 %v1166_v40, %s4259_s13  ;;  %v1115_v40 = vrot.slane %v4543_v34, 7 }
 0x599   : > { %v1151_v53 = vpop.permute.xlu1 %1150 }
 0x59a   : > { %v1170_v54 = vmul.f32 %v1151_v53, %v4644_v50  ;;  %1188 = vrot.lane.b32.xlu0 %v1169_v49, %s4259_s13  ;;  %v1116_v49 = vrot.slane %v4547_v38, 7  ;;  %v1131_v51 = vmul.f32 %v1115_v40, %v4648_v55 }
 0x59b   : > { %v1153_v58 = vpop.permute.xlu0 %1152 }
 0x59c   : > { %v1171_v1 = vmul.f32 %v1153_v58, %v4648_v55  ;;  %1190 = vrot.lane.b32.xlu1 %v1170_v54, %s4259_s13  ;;  %v1117_v54 = vrot.slane %v4551_v44, 7  ;;  %v1132_v57 = vmul.f32 %v1116_v49, %v4652_v5 }
 0x59d   : > { %v1155_v8 = vpop.permute.xlu1 %1154 }
 0x59e   : > { %v1172_v10 = vmul.f32 %v1155_v8, %v4652_v5  ;;  %1192 = vrot.lane.b32.xlu0 %v1171_v1, %s4259_s13  ;;  %v1133_v38 = vmul.f32 %v1117_v54, %v4656_v42 }
 0x59f   : > { %v1157_v43 = vpop.permute.xlu0 %1156 }
 0x5a0   : > { %v1173_v11 = vmul.f32 %v1157_v43, %v4656_v42  ;;  %1194 = vrot.lane.b32.xlu1 %v1172_v10, %s4259_s13 }
 0x5a2   : > { %1196 = vrot.lane.b32.xlu0 %v1173_v11, %s4259_s13 }
 0x606   : > { %v1185_v19 = vpop.permute.xlu1 %1184 }
 0x607   : > { %v4665_v25 = vadd.f32 %v1185_v19, %v1127_v18 }
 0x608   : > { %v1187_v61 = vpop.permute.xlu0 %1186 }
 0x609   : > { %3882 = vtanh.f32 %v4665_v25  ;;  %v4670_v35 = vadd.f32 %v1187_v61, %v1128_v27 }
 0x60a   : > { %v1183_v3 = vpop.permute.xlu1 %1182 }
 0x60b   : > { %3884 = vtanh.f32 %v4670_v35  ;;  %v4675_v36 = vadd.f32 %v1183_v3, %v1126_v13 }
 0x60c   : > { %v1189_v39 = vpop.permute.xlu0 %1188 }
 0x60d   : > { %3886 = vtanh.f32 %v4675_v36  ;;  %v4680_v21 = vadd.f32 %v1189_v39, %v1129_v22 }
 0x60e   : > { %v1191_v48 = vpop.permute.xlu1 %1190 }
 0x60f   : > { %3888 = vtanh.f32 %v4680_v21  ;;  %v4685_v29 = vadd.f32 %v1191_v48, %v1130_v47 }
 0x610   : > { %v1193_v53 = vpop.permute.xlu0 %1192 }
 0x611   : > { %3890 = vtanh.f32 %v4685_v29  ;;  %v4690_v34 = vadd.f32 %v1193_v53, %v1131_v51 }
 0x612   : > { %v1195_v58 = vpop.permute.xlu1 %1194 }
 0x613   : > { %3892 = vtanh.f32 %v4690_v34  ;;  %v4694_v1 = vadd.f32 %v1195_v58, %v1132_v57 }
 0x614   : > { %v1197_v8 = vpop.permute.xlu0 %1196 }
 0x615   : > { %3894 = vtanh.f32 %v4694_v1  ;;  %v4698_v10 = vadd.f32 %v1197_v8, %v1133_v38 }
 0x616   : > { %v3883_v43 = vpop.eup %3882 }
 0x617   : > { %3896 = vtanh.f32 %v4698_v10  ;;  %1232 = vrot.lane.b32.xlu1 %v3883_v43, %s4258_s12 }
 0x618   : > { %v3885_v44 = vpop.eup %3884 }
 0x619   : > { %1234 = vrot.lane.b32.xlu0 %v3885_v44, %s4258_s12 }
 0x61a   : > { %v3887_v11 = vpop.eup %3886 }
 0x61b   : > { %1230 = vrot.lane.b32.xlu1 %v3887_v11, %s4258_s12 }
 0x61c   : > { %v3889_v52 = vpop.eup %3888 }
 0x61d   : > { %1236 = vrot.lane.b32.xlu0 %v3889_v52, %s4258_s12 }
 0x61e   : > { %v3891_v12 = vpop.eup %3890 }
 0x61f   : > { %1238 = vrot.lane.b32.xlu1 %v3891_v12, %s4258_s12 }
 0x620   : > { %v3893_v18 = vpop.eup %3892 }
 0x621   : > { %1240 = vrot.lane.b32.xlu0 %v3893_v18, %s4258_s12 }
 0x622   : > { %v3895_v19 = vpop.eup %3894 }
 0x623   : > { %1242 = vrot.lane.b32.xlu1 %v3895_v19, %s4258_s12 }
 0x624   : > { %v3897_v56 = vpop.eup %3896 }
 0x625   : > { %1244 = vrot.lane.b32.xlu0 %v3897_v56, %s4258_s12 }
 0x689   : > { %v1233_v27 = vpop.permute.xlu1 %1232 }
 0x68a   : > { %v4716_v22 = vmul.f32 %v1233_v27, %v4629_v20 }
 0x68b   : > { %v1235_v61 = vpop.permute.xlu0 %1234 }
 0x68c   : > { %v4710_v33 = vmul.f32 %v1235_v61, %v4632_v31 }
 0x68d   : > { %v1231_v13 = vpop.permute.xlu1 %1230 }
 0x68e   : > { %v4713_v3 = vmul.f32 %v1231_v13, %v4636_v7  ;;  %v1272_v47 = vrot.slane %v4710_v33, 7 }
 0x68f   : > { %v1237_v26 = vpop.permute.xlu0 %1236 }
 0x690   : > { %v1270_v39 = vrot.slane %v4713_v3, 1  ;;  %v4720_v40 = vmul.f32 %v1237_v26, %v4640_v41 }
 0x691   : > { %v1239_v48 = vpop.permute.xlu1 %1238 }
 0x692   : > { %v1271_v31 = vsel %vm960_vm11, %v4716_v22, %v1270_v39  ;;  %v1274_v49 = vrot.slane %v4720_v40, 6  ;;  %v4727_v7 = vmul.f32 %v1239_v48, %v4644_v50 }
 0x693   : > { %v1273_v51 = vsel %vm963_vm12, %v1272_v47, %v1271_v31  ;;  %v1241_v20 = vpop.permute.xlu0 %1240 }
 0x694   : > { %v1275_v53 = vsel %vm966_vm13, %v1274_v49, %v1273_v51  ;;  %v1276_v54 = vrot.slane %v4727_v7, 5  ;;  %v4733_v41 = vmul.f32 %v1241_v20, %v4648_v55 }
 0x695   : > { %v1243_v57 = vpop.permute.xlu1 %1242 }
 0x696   : > { %v1277_v58 = vsel %vm969_vm14, %v1276_v54, %v1275_v53  ;;  %v1278_v38 = vrot.slane %v4733_v41, 4  ;;  %v4738_v8 = vmul.f32 %v1243_v57, %v4652_v5 }
 0x697   : > { %v1245_v50 = vpop.permute.xlu0 %1244 }
 0x698   : > { %v1280_v43 = vrot.slane %v4738_v8, 3  ;;  %v4742_v44 = vmul.f32 %v1245_v50, %v4656_v42  ;;  %v1279_v11 = vsel %vm972_vm15, %v1278_v38, %v1277_v58 }
 0x69a   : > { %v1282_v52 = vrot.slane %v4742_v44, 2  ;;  %v1281_v55 = vsel %vm975_vm0, %v1280_v43, %v1279_v11 }
 0x69c   : > { %v1283_v12 = vsel %vm978_vm1, %v1282_v52, %v1281_v55 }
 0x69d   : > { %1284 = vrot.lane.b32.xlu1 %v1283_v12, %s4259_s13 }
 0x70f   : > { %v1285_v18 = vpop.permute.xlu1 %1284 }
 0x710   : > { %3698 = vmatmul.mubr.msk.f32.vlgmr.msra.gmra.mxu0 %vm560_vm10, %v1285_v18 }
 0x711   : > { %3712 = vmatpush3.msra.mxu0 %v4397_v30  ;;  %3719 = vmatprep.mubr.msk.f32.mxu0 %vm4257_vm9, %v4256_v16 }
 0x712   : > { %3713 = vmatprep.subr.mxu0 %v4256_v16 }
 0x713   : > { %3714 = vmatpush3.msra.mxu0 %v4401_v32 }
 0x714   : > { %3715 = vmatprep.subr.mxu0 %v4256_v16 }
 0x715   : > { %3716 = vmatpush3.msra.mxu0 %v4418_v45 }
 0x716   : > { %3717 = vmatprep.subr.mxu0 %v4256_v16 }
 0x717   : > { %3718 = vmatpush3.msra.mxu0 %v4422_v46 }
 0x718   : > { %3733 = vmatprep.subr.mxu0 %v4256_v16 }
 0x7d0   : > { %v1354_v5 = vpop.f32.mrf.mxu0 }
 0x7d1   : > { %v1359_v42 = vrot.slane %v1354_v5, 6  ;;  %v1360_v30 = vrot.slane %v1354_v5, 7  ;;  %v1361_v19 = vrot.slane %v1354_v5, 1  ;;  %v1376_v56 = vadd.f32 %v1354_v5, %v4466_v6 }
 0x7d2   : > { %v3699_v27 = vpop.f32.mrf.mxu0  ;;  %v1363_v32 = vrot.slane %v1354_v5, 3  ;;  %v1362_v45 = vrot.slane %v1354_v5, 2  ;;  %v1365_v46 = vrot.slane %v1354_v5, 5  ;;  %v1364_v47 = vrot.slane %v1354_v5, 4 }
 0x7d3   : > { %v1374_v61 = vadd.f32 %v1359_v42, %v4461_v0  ;;  %v1375_v13 = vadd.f32 %v1360_v30, %v4458_v60  ;;  %3898 = vtanh.f32 %v1376_v56  ;;  %v1377_v26 = vadd.f32 %v1361_v19, %v4463_v2 }
 0x7d4   : > { %v1379_v39 = vadd.f32 %v1363_v32, %v4469_v9  ;;  %v1378_v48 = vadd.f32 %v1362_v45, %v4472_v14  ;;  %v1381_v31 = vadd.f32 %v1365_v46, %v4474_v17  ;;  %v1380_v49 = vadd.f32 %v1364_v47, %v4478_v23 }
 0x7d5   : > { %3900 = vtanh.f32 %v1374_v61 }
 0x7d6   : > { %3902 = vtanh.f32 %v1375_v13 }
 0x7d7   : > { %3904 = vtanh.f32 %v1377_v26 }
 0x7d8   : > { %3906 = vtanh.f32 %v1379_v39 }
 0x7d9   : > { %3908 = vtanh.f32 %v1378_v48 }
 0x7da   : > { %3910 = vtanh.f32 %v1381_v31 }
 0x7db   : > { %3912 = vtanh.f32 %v1380_v49 }
 0x7e0   : > { %v3899_v51 = vpop.eup %3898 }
 0x7e1   : > { %1450 = vrot.lane.b32.xlu1 %v3899_v51, %s4258_s12  ;;  %v1392_v43 = vmul.f32 0.5, %v3899_v51 }
 0x7e2   : > { %v3901_v20 = vpop.eup %3900 }
 0x7e3   : > { %1446 = vrot.lane.b32.xlu0 %v3901_v20, %s4258_s12  ;;  %v3903_v53 = vpop.eup %3902  ;;  %v1390_v11 = vmul.f32 0.5, %v3901_v20  ;;  %v4776_v52 = vadd.f32 0.5, %v1392_v43 }
 0x7e4   : > { %v3905_v54 = vpop.eup %3904  ;;  %v1391_v55 = vmul.f32 0.5, %v3903_v53 }
 0x7e5   : > { %1448 = vrot.lane.b32.xlu1 %v3903_v53, %s4258_s12  ;;  %v3907_v57 = vpop.eup %3906  ;;  %v4778_v18 = vadd.f32 0.5, %v1390_v11  ;;  %v1393_v5 = vmul.f32 0.5, %v3905_v54 }
 0x7e6   : > { %v3909_v58 = vpop.eup %3908  ;;  %v4783_v56 = vadd.f32 0.5, %v1391_v55  ;;  %v1395_v27 = vmul.f32 0.5, %v3907_v57  ;;  %v1414_v55 = vrot.slane %v4675_v36, 7 }
 0x7e7   : > { %1452 = vrot.lane.b32.xlu0 %v3905_v54, %s4258_s12  ;;  %v3911_v38 = vpop.eup %3910  ;;  %v4786_v32 = vadd.f32 0.5, %v1393_v5  ;;  %v1394_v13 = vmul.f32 0.5, %v3909_v58 }
 0x7e8   : > { %v3913_v50 = vpop.eup %3912  ;;  %v4791_v39 = vadd.f32 0.5, %v1395_v27  ;;  %v1397_v47 = vmul.f32 0.5, %v3911_v38 }
 0x7e9   : > { %1456 = vrot.lane.b32.xlu1 %v3907_v57, %s4258_s12  ;;  %v4794_v31 = vadd.f32 0.5, %v1394_v13  ;;  %v1396_v49 = vmul.f32 0.5, %v3913_v50 }
 0x7ea   : > { %v4799_v54 = vadd.f32 0.5, %v1397_v47  ;;  %v1418_v47 = vrot.slane %v4685_v29, 7 }
 0x7eb   : > { %1454 = vrot.lane.b32.xlu0 %v3909_v58, %s4258_s12  ;;  %v4802_v58 = vadd.f32 0.5, %v1396_v49 }
 0x7ed   : > { %1460 = vrot.lane.b32.xlu1 %v3911_v38, %s4258_s12 }
 0x7ef   : > { %1458 = vrot.lane.b32.xlu0 %v3913_v50, %s4258_s12  ;;  %v1416_v50 = vrot.slane %v4670_v35, 7 }
 0x853   : > { %v1451_v12 = vpop.permute.xlu1 %1450 }
 0x854   : > { %v1472_v42 = vmul.f32 %v1451_v12, %v4776_v52  ;;  %v1432_v12 = vmul.f32 %v1416_v50, %v4776_v52 }
 0x855   : > { %v1447_v30 = vpop.permute.xlu0 %1446 }
 0x856   : > { %v1470_v19 = vmul.f32 %v1447_v30, %v4778_v18  ;;  %1490 = vrot.lane.b32.xlu1 %v1472_v42, %s4259_s13  ;;  %v1430_v42 = vmul.f32 %v1414_v55, %v4778_v18  ;;  %v1415_v30 = vrot.slane %v4665_v25, 7 }
 0x857   : > { %v1449_v61 = vpop.permute.xlu1 %1448 }
 0x858   : > { %1486 = vrot.lane.b32.xlu0 %v1470_v19, %s4259_s13  ;;  %v1471_v45 = vmul.f32 %v1449_v61, %v4783_v56  ;;  %v1417_v61 = vrot.slane %v4680_v21, 7  ;;  %v1431_v35 = vmul.f32 %v1415_v30, %v4783_v56 }
 0x859   : > { %v1453_v26 = vpop.permute.xlu0 %1452 }
 0x85a   : > { %v1473_v46 = vmul.f32 %v1453_v26, %v4786_v32  ;;  %1488 = vrot.lane.b32.xlu1 %v1471_v45, %s4259_s13  ;;  %v1433_v45 = vmul.f32 %v1417_v61, %v4786_v32  ;;  %v1419_v26 = vrot.slane %v4690_v34, 7 }
 0x85b   : > { %v1457_v48 = vpop.permute.xlu1 %1456 }
 0x85c   : > { %1492 = vrot.lane.b32.xlu0 %v1473_v46, %s4259_s13  ;;  %v1475_v51 = vmul.f32 %v1457_v48, %v4791_v39  ;;  %v1435_v21 = vmul.f32 %v1419_v26, %v4791_v39 }
 0x85d   : > { %v1455_v20 = vpop.permute.xlu0 %1454 }
 0x85e   : > { %v1474_v53 = vmul.f32 %v1455_v20, %v4794_v31  ;;  %1496 = vrot.lane.b32.xlu1 %v1475_v51, %s4259_s13  ;;  %v1434_v51 = vmul.f32 %v1418_v47, %v4794_v31  ;;  %v1421_v20 = vrot.slane %v4698_v10, 7 }
 0x85f   : > { %v1461_v57 = vpop.permute.xlu1 %1460 }
 0x860   : > { %1494 = vrot.lane.b32.xlu0 %v1474_v53, %s4259_s13  ;;  %v1477_v38 = vmul.f32 %v1461_v57, %v4799_v54  ;;  %v1420_v57 = vrot.slane %v4694_v1, 7  ;;  %v1437_v29 = vmul.f32 %v1421_v20, %v4799_v54 }
 0x861   : > { %v1459_v43 = vpop.permute.xlu0 %1458 }
 0x862   : > { %v1476_v11 = vmul.f32 %v1459_v43, %v4802_v58  ;;  %1500 = vrot.lane.b32.xlu1 %v1477_v38, %s4259_s13 }
 0x864   : > { %1498 = vrot.lane.b32.xlu0 %v1476_v11, %s4259_s13  ;;  %v1436_v11 = vmul.f32 %v1420_v57, %v4802_v58 }
 0x8c8   : > { %v1491_v5 = vpop.permute.xlu1 %1490 }
 0x8c9   : > { %v4813_v19 = vadd.f32 %v1491_v5, %v1432_v12 }
 0x8ca   : > { %v1487_v27 = vpop.permute.xlu0 %1486 }
 0x8cb   : > { %v4816_v13 = vadd.f32 %v1487_v27, %v1430_v42  ;;  %3914 = vtanh.f32 %v4813_v19 }
 0x8cc   : > { %v1489_v36 = vpop.permute.xlu1 %1488 }
 0x8cd   : > { %3916 = vtanh.f32 %v4816_v13  ;;  %v4823_v46 = vadd.f32 %v1489_v36, %v1431_v35 }
 0x8ce   : > { %v1493_v25 = vpop.permute.xlu0 %1492 }
 0x8cf   : > { %v4826_v48 = vadd.f32 %v1493_v25, %v1433_v45  ;;  %3918 = vtanh.f32 %v4823_v46  ;;  %v3089_v25 = vsel %vm3086_vm3, %v4572_v4, %v4710_v33  ;;  %v3088_v4 = vsel %vm3086_vm3, %v4563_v59, %v4716_v22 }
 0x8d0   : > { %v1497_v49 = vpop.permute.xlu1 %1496 }
 0x8d1   : > { %3920 = vtanh.f32 %v4826_v48  ;;  %v4833_v53 = vadd.f32 %v1497_v49, %v1435_v21  ;;  %v3087_v21 = vsel %vm3086_vm3, %v4569_v63, %v4713_v3  ;;  %v3090_v63 = vsel %vm3086_vm3, %v4566_v62, %v4720_v40 }
 0x8d2   : > { %v1495_v34 = vpop.permute.xlu0 %1494 }
 0x8d3   : > { %v4836_v38 = vadd.f32 %v1495_v34, %v1434_v51  ;;  %3922 = vtanh.f32 %v4833_v53 }
 0x8d4   : > { %v1501_v43 = vpop.permute.xlu1 %1500 }
 0x8d5   : > { %3924 = vtanh.f32 %v4836_v38  ;;  %v4842_v50 = vadd.f32 %v1501_v43, %v1437_v29 }
 0x8d6   : > { %v1499_v55 = vpop.permute.xlu0 %1498 }
 0x8d7   : > { %v4844_v10 = vadd.f32 %v1499_v55, %v1436_v11  ;;  %3926 = vtanh.f32 %v4842_v50  ;;  %v3091_v55 = vsel %vm3086_vm3, %v4577_v37, %v4727_v7  ;;  %v3093_v7 = vsel %vm3086_vm3, %v4591_v24, %v4738_v8  ;;  %v4921_v24 = vld [vmem:[#allocation6 + $0x18] sm:$0xff]  ;;  %v4927_v8 = vld [vmem:[#allocation6 + $0x10] sm:$0xff] }
 0x8d8   : > { %v3915_v12 = vpop.eup %3914 }
 0x8d9   : > { %3928 = vtanh.f32 %v4844_v10  ;;  %1538 = vrot.lane.b32.xlu1 %v3915_v12, %s4258_s12 }
 0x8da   : > { %v3917_v1 = vpop.eup %3916 }
 0x8db   : > { %1534 = vrot.lane.b32.xlu0 %v3917_v1, %s4258_s12 }
 0x8dc   : > { %v3919_v5 = vpop.eup %3918 }
 0x8dd   : > { %1536 = vrot.lane.b32.xlu1 %v3919_v5, %s4258_s12 }
 0x8de   : > { %v3921_v42 = vpop.eup %3920 }
 0x8df   : > { %1540 = vrot.lane.b32.xlu0 %v3921_v42, %s4258_s12 }
 0x8e0   : > { %v3923_v30 = vpop.eup %3922 }
 0x8e1   : > { %1544 = vrot.lane.b32.xlu1 %v3923_v30, %s4258_s12 }
 0x8e2   : > { %v3925_v27 = vpop.eup %3924 }
 0x8e3   : > { %1542 = vrot.lane.b32.xlu0 %v3925_v27, %s4258_s12 }
 0x8e4   : > { %v3927_v61 = vpop.eup %3926 }
 0x8e5   : > { %1548 = vrot.lane.b32.xlu1 %v3927_v61, %s4258_s12 }
 0x8e6   : > { %v3929_v35 = vpop.eup %3928 }
 0x8e7   : > { %1546 = vrot.lane.b32.xlu0 %v3929_v35, %s4258_s12 }
 0x94b   : > { %v1539_v36 = vpop.permute.xlu1 %1538 }
 0x94c   : > { %v1560_v45 = vmul.f32 %v1539_v36, %v4776_v52 }
 0x94d   : > { %v1535_v26 = vpop.permute.xlu0 %1534 }
 0x94e   : > { %v1558_v47 = vmul.f32 %v1535_v26, %v4778_v18  ;;  %v4865_v49 = vsel %vm3095_vm2, %v3089_v25, %v1560_v45  ;;  %v4931_v26 = vld [vmem:[#allocation6 + $0x8] sm:$0xff]  ;;  %v4935_v25 = vld [vmem:[#allocation6] sm:$0xff] }
 0x94f   : > { %v1537_v20 = vpop.permute.xlu1 %1536 }
 0x950   : > { %v4868_v51 = vsel %vm3095_vm2, %v3087_v21, %v1558_v47  ;;  %v1559_v52 = vmul.f32 %v1537_v20, %v4783_v56  ;;  %v1574_v3 = vrot.slane %v1558_v47, 2 }
 0x951   : > { %v1541_v34 = vpop.permute.xlu0 %1540 }
 0x952   : > { %v1561_v33 = vmul.f32 %v1541_v34, %v4786_v32  ;;  %v1575_v18 = vrot.slane %v1559_v52, 1  ;;  %v4879_v57 = vsel %vm3095_vm2, %v3088_v4, %v1559_v52  ;;  %v3092_v32 = vsel %vm3086_vm3, %v4585_v15, %v4733_v41 }
 0x953   : > { %v1545_v56 = vpop.permute.xlu1 %1544 }
 0x954   : > { %v4882_v29 = vsel %vm3095_vm2, %v3090_v63, %v1561_v33  ;;  %v1576_v43 = vsel %vm960_vm11, %v1575_v18, %v1574_v3  ;;  %v1578_v11 = vrot.slane %v1561_v33, 7  ;;  %v1563_v59 = vmul.f32 %v1545_v56, %v4791_v39 }
 0x955   : > { %v1543_v22 = vpop.permute.xlu0 %1542  ;;  %v1577_v62 = vsel %vm963_vm12, %v1560_v45, %v1576_v43 }
 0x956   : > { %v1562_v40 = vmul.f32 %v1543_v22, %v4794_v31  ;;  %v4895_v12 = vsel %vm3095_vm2, %v3092_v32, %v1563_v59  ;;  %v1579_v42 = vsel %vm966_vm13, %v1578_v11, %v1577_v62  ;;  %v3094_v31 = vsel %vm3086_vm3, %v4595_v28, %v4742_v44 }
 0x957   : > { %v1549_v39 = vpop.permute.xlu1 %1548  ;;  %v1582_v27 = vrot.slane %v1563_v59, 5 }
 0x958   : > { %v1580_v1 = vrot.slane %v1562_v40, 6  ;;  %v4898_v5 = vsel %vm3095_vm2, %v3091_v55, %v1562_v40  ;;  %v1565_v15 = vmul.f32 %v1549_v39, %v4799_v54 }
 0x959   : > { %v1547_v41 = vpop.permute.xlu0 %1546 }
 0x95a   : > { %v1581_v30 = vsel %vm969_vm14, %v1580_v1, %v1579_v42  ;;  %v1564_v37 = vmul.f32 %v1547_v41, %v4802_v58  ;;  %v4911_v61 = vsel %vm3095_vm2, %v3094_v31, %v1565_v15  ;;  %v1586_v36 = vrot.slane %v1565_v15, 3 }
 0x95b   : > { %v1583_v45 = vsel %vm972_vm15, %v1582_v27, %v1581_v30 }
 0x95c   : > { %v1584_v35 = vrot.slane %v1564_v37, 4  ;;  %v4914_v54 = vsel %vm3095_vm2, %v3093_v7, %v1564_v37 }
 0x95e   : > { %v1585_v28 = vsel %vm975_vm0, %v1584_v35, %v1583_v45 }
 0x95f   : > { %v1587_v44 = vsel %vm978_vm1, %v1586_v36, %v1585_v28 }
 0x960   : > { %1588 = vrot.lane.b32.xlu0 %v1587_v44, %s4259_s13 }
 0x9d2   : > { %v1589_v58 = vpop.permute.xlu0 %1588 }
 0x9d3   : > { %3709 = vmatmul.mubr.msk.f32.vlgmr.msra.gmra.mxu1 %vm560_vm10, %v1589_v58 }
 0x9d4   : > { %3723 = vmatpush3.msra.mxu1 %v4921_v24  ;;  %3730 = vmatprep.mubr.msk.f32.mxu1 %vm4257_vm9, %v4256_v16 }
 0x9d5   : > { %3724 = vmatprep.subr.mxu1 %v4256_v16 }
 0x9d6   : > { %3725 = vmatpush3.msra.mxu1 %v4927_v8 }
 0x9d7   : > { %3726 = vmatprep.subr.mxu1 %v4256_v16 }
 0x9d8   : > { %3727 = vmatpush3.msra.mxu1 %v4931_v26 }
 0x9d9   : > { %3728 = vmatprep.subr.mxu1 %v4256_v16 }
 0x9da   : > { %3729 = vmatpush3.msra.mxu1 %v4935_v25 }
 0x9db   : > { %3744 = vmatprep.subr.mxu1 %v4256_v16 }
 0xa93   : > { %v1658_v47 = vpop.f32.mrf.mxu1 }
 0xa94   : > { %v1663_v21 = vrot.slane %v1658_v47, 5  ;;  %v1664_v20 = vrot.slane %v1658_v47, 6  ;;  %v1666_v52 = vrot.slane %v1658_v47, 1  ;;  %v1681_v34 = vadd.f32 %v1658_v47, %v4463_v2 }
 0xa95   : > { %v3710_v4 = vpop.f32.mrf.mxu1  ;;  %v1665_v63 = vrot.slane %v1658_v47, 7  ;;  %v1667_v18 = vrot.slane %v1658_v47, 2  ;;  %v1668_v43 = vrot.slane %v1658_v47, 3  ;;  %v1669_v59 = vrot.slane %v1658_v47, 4 }
 0xa96   : > { %v1679_v33 = vadd.f32 %v1664_v20, %v4458_v60  ;;  %v1678_v3 = vadd.f32 %v1663_v21, %v4461_v0  ;;  %3930 = vtanh.f32 %v1681_v34  ;;  %v1682_v56 = vadd.f32 %v1666_v52, %v4472_v14 }
 0xa97   : > { %v1680_v11 = vadd.f32 %v1665_v63, %v4466_v6  ;;  %v1683_v22 = vadd.f32 %v1667_v18, %v4469_v9  ;;  %v1684_v32 = vadd.f32 %v1668_v43, %v4478_v23  ;;  %v1685_v62 = vadd.f32 %v1669_v59, %v4474_v17 }
 0xa98   : > { %3932 = vtanh.f32 %v1679_v33 }
 0xa99   : > { %3934 = vtanh.f32 %v1678_v3 }
 0xa9a   : > { %3936 = vtanh.f32 %v1682_v56 }
 0xa9b   : > { %3938 = vtanh.f32 %v1680_v11 }
 0xa9c   : > { %3940 = vtanh.f32 %v1683_v22 }
 0xa9d   : > { %3942 = vtanh.f32 %v1684_v32 }
 0xa9e   : > { %3944 = vtanh.f32 %v1685_v62 }
 0xaa3   : > { %v3931_v40 = vpop.eup %3930 }
 0xaa4   : > { %1756 = vrot.lane.b32.xlu1 %v3931_v40, %s4258_s12  ;;  %v1697_v30 = vmul.f32 0.5, %v3931_v40 }
 0xaa5   : > { %v3933_v55 = vpop.eup %3932 }
 0xaa6   : > { %1752 = vrot.lane.b32.xlu0 %v3933_v55, %s4258_s12  ;;  %v3935_v1 = vpop.eup %3934  ;;  %v1695_v37 = vmul.f32 0.5, %v3933_v55  ;;  %v4955_v7 = vadd.f32 0.5, %v1697_v30 }
 0xaa7   : > { %v3937_v39 = vpop.eup %3936  ;;  %v1694_v27 = vmul.f32 0.5, %v3935_v1 }
 0xaa8   : > { %1750 = vrot.lane.b32.xlu1 %v3935_v1, %s4258_s12  ;;  %v3939_v42 = vpop.eup %3938  ;;  %v4958_v45 = vadd.f32 0.5, %v1695_v37  ;;  %v1698_v28 = vmul.f32 0.5, %v3937_v39  ;;  %v1718_v37 = vrot.slane %v4816_v13, 7 }
 0xaa9   : > { %v3941_v15 = vpop.eup %3940  ;;  %v4962_v47 = vadd.f32 0.5, %v1694_v27  ;;  %v1696_v21 = vmul.f32 0.5, %v3939_v42 }
 0xaaa   : > { %1758 = vrot.lane.b32.xlu0 %v3937_v39, %s4258_s12  ;;  %v3943_v41 = vpop.eup %3942  ;;  %v4966_v34 = vadd.f32 0.5, %v1698_v28  ;;  %v1699_v4 = vmul.f32 0.5, %v3941_v15  ;;  %v1722_v28 = vrot.slane %v4836_v38, 7 }
 0xaab   : > { %v3945_v31 = vpop.eup %3944  ;;  %v4970_v3 = vadd.f32 0.5, %v1696_v21  ;;  %v1700_v18 = vmul.f32 0.5, %v3943_v41 }
 0xaac   : > { %1754 = vrot.lane.b32.xlu1 %v3939_v42, %s4258_s12  ;;  %v4974_v11 = vadd.f32 0.5, %v1699_v4  ;;  %v1701_v59 = vmul.f32 0.5, %v3945_v31  ;;  %v1738_v13 = vmul.f32 %v1722_v28, %v4966_v34 }
 0xaad   : > { %v4978_v62 = vadd.f32 0.5, %v1700_v18 }
 0xaae   : > { %1760 = vrot.lane.b32.xlu0 %v3941_v15, %s4258_s12  ;;  %v4982_v1 = vadd.f32 0.5, %v1701_v59  ;;  %v1721_v15 = vrot.slane %v4826_v48, 7  ;;  %v1734_v48 = vmul.f32 %v1718_v37, %v4962_v47 }
 0xab0   : > { %1762 = vrot.lane.b32.xlu1 %v3943_v41, %s4258_s12  ;;  %v1719_v41 = vrot.slane %v4823_v46, 7  ;;  %v1720_v46 = vrot.slane %v4813_v19, 7 }
 0xab2   : > { %1764 = vrot.lane.b32.xlu0 %v3945_v31, %s4258_s12  ;;  %v1737_v31 = vmul.f32 %v1721_v15, %v4955_v7  ;;  %v1736_v4 = vmul.f32 %v1720_v46, %v4970_v3 }
 0xb16   : > { %v1757_v35 = vpop.permute.xlu1 %1756 }
 0xb17   : > { %v1777_v36 = vmul.f32 %v1757_v35, %v4955_v7  ;;  %v1735_v35 = vmul.f32 %v1719_v41, %v4958_v45 }
 0xb18   : > { %v1753_v44 = vpop.permute.xlu0 %1752 }
 0xb19   : > { %v1775_v58 = vmul.f32 %v1753_v44, %v4958_v45  ;;  %1796 = vrot.lane.b32.xlu1 %v1777_v36, %s4259_s13 }
 0xb1a   : > { %v1751_v20 = vpop.permute.xlu1 %1750 }
 0xb1b   : > { %v1774_v52 = vmul.f32 %v1751_v20, %v4962_v47  ;;  %1792 = vrot.lane.b32.xlu0 %v1775_v58, %s4259_s13 }
 0xb1c   : > { %v1759_v33 = vpop.permute.xlu0 %1758 }
 0xb1d   : > { %v1778_v63 = vmul.f32 %v1759_v33, %v4966_v34  ;;  %1790 = vrot.lane.b32.xlu1 %v1774_v52, %s4259_s13  ;;  %v1723_v52 = vrot.slane %v4833_v53, 7 }
 0xb1e   : > { %v1755_v56 = vpop.permute.xlu1 %1754 }
 0xb1f   : > { %v1776_v43 = vmul.f32 %v1755_v56, %v4970_v3  ;;  %1798 = vrot.lane.b32.xlu0 %v1778_v63, %s4259_s13  ;;  %v1724_v63 = vrot.slane %v4844_v10, 7  ;;  %v1739_v18 = vmul.f32 %v1723_v52, %v4974_v11 }
 0xb20   : > { %v1761_v22 = vpop.permute.xlu0 %1760 }
 0xb21   : > { %v1779_v32 = vmul.f32 %v1761_v22, %v4974_v11  ;;  %1794 = vrot.lane.b32.xlu1 %v1776_v43, %s4259_s13  ;;  %v1725_v43 = vrot.slane %v4842_v50, 7  ;;  %v1740_v59 = vmul.f32 %v1724_v63, %v4978_v62 }
 0xb22   : > { %v1763_v40 = vpop.permute.xlu1 %1762 }
 0xb23   : > { %v1780_v55 = vmul.f32 %v1763_v40, %v4978_v62  ;;  %1800 = vrot.lane.b32.xlu0 %v1779_v32, %s4259_s13  ;;  %v1741_v10 = vmul.f32 %v1725_v43, %v4982_v1 }
 0xb24   : > { %v1765_v39 = vpop.permute.xlu0 %1764 }
 0xb25   : > { %v1781_v42 = vmul.f32 %v1765_v39, %v4982_v1  ;;  %1802 = vrot.lane.b32.xlu1 %v1780_v55, %s4259_s13 }
 0xb27   : > { %1804 = vrot.lane.b32.xlu0 %v1781_v42, %s4259_s13 }
 0xb8b   : > { %v1797_v30 = vpop.permute.xlu1 %1796 }
 0xb8c   : > { %v4991_v27 = vadd.f32 %v1797_v30, %v1737_v31 }
 0xb8d   : > { %v1793_v36 = vpop.permute.xlu0 %1792 }
 0xb8e   : > { %3946 = vtanh.f32 %v4991_v27  ;;  %v4996_v44 = vadd.f32 %v1793_v36, %v1735_v35 }
 0xb8f   : > { %v1791_v58 = vpop.permute.xlu1 %1790 }
 0xb90   : > { %3948 = vtanh.f32 %v4996_v44  ;;  %v5001_v21 = vadd.f32 %v1791_v58, %v1734_v48 }
 0xb91   : > { %v1799_v20 = vpop.permute.xlu0 %1798 }
 0xb92   : > { %3950 = vtanh.f32 %v5001_v21  ;;  %v5006_v38 = vadd.f32 %v1799_v20, %v1738_v13 }
 0xb93   : > { %v1795_v33 = vpop.permute.xlu1 %1794 }
 0xb94   : > { %3952 = vtanh.f32 %v5006_v38  ;;  %v5011_v19 = vadd.f32 %v1795_v33, %v1736_v4 }
 0xb95   : > { %v1801_v56 = vpop.permute.xlu0 %1800 }
 0xb96   : > { %3954 = vtanh.f32 %v5011_v19  ;;  %v5016_v53 = vadd.f32 %v1801_v56, %v1739_v18 }
 0xb97   : > { %v1803_v22 = vpop.permute.xlu1 %1802 }
 0xb98   : > { %3956 = vtanh.f32 %v5016_v53  ;;  %v5020_v32 = vadd.f32 %v1803_v22, %v1740_v59 }
 0xb99   : > { %v1805_v40 = vpop.permute.xlu0 %1804 }
 0xb9a   : > { %3958 = vtanh.f32 %v5020_v32  ;;  %v5024_v55 = vadd.f32 %v1805_v40, %v1741_v10 }
 0xb9b   : > { %v3947_v39 = vpop.eup %3946 }
 0xb9c   : > { %3960 = vtanh.f32 %v5024_v55  ;;  %1844 = vrot.lane.b32.xlu1 %v3947_v39, %s4258_s12 }
 0xb9d   : > { %v3949_v50 = vpop.eup %3948 }
 0xb9e   : > { %1840 = vrot.lane.b32.xlu0 %v3949_v50, %s4258_s12 }
 0xb9f   : > { %v3951_v42 = vpop.eup %3950 }
 0xba0   : > { %1838 = vrot.lane.b32.xlu1 %v3951_v42, %s4258_s12 }
 0xba1   : > { %v3953_v15 = vpop.eup %3952 }
 0xba2   : > { %1846 = vrot.lane.b32.xlu0 %v3953_v15, %s4258_s12 }
 0xba3   : > { %v3955_v41 = vpop.eup %3954 }
 0xba4   : > { %1842 = vrot.lane.b32.xlu1 %v3955_v41, %s4258_s12 }
 0xba5   : > { %v3957_v31 = vpop.eup %3956 }
 0xba6   : > { %1848 = vrot.lane.b32.xlu0 %v3957_v31, %s4258_s12 }
 0xba7   : > { %v3959_v30 = vpop.eup %3958 }
 0xba8   : > { %1850 = vrot.lane.b32.xlu1 %v3959_v30, %s4258_s12 }
 0xba9   : > { %v3961_v37 = vpop.eup %3960 }
 0xbaa   : > { %1852 = vrot.lane.b32.xlu0 %v3961_v37, %s4258_s12 }
 0xc0e   : > { %v1845_v35 = vpop.permute.xlu1 %1844 }
 0xc0f   : > { %v1865_v36 = vmul.f32 %v1845_v35, %v4955_v7 }
 0xc10   : > { %v1841_v28 = vpop.permute.xlu0 %1840 }
 0xc11   : > { %v5038_v48 = vsel %vm3104_vm4, %v4882_v29, %v1865_v36  ;;  %v1863_v58 = vmul.f32 %v1841_v28, %v4958_v45 }
 0xc12   : > { %v1839_v46 = vpop.permute.xlu1 %1838 }
 0xc13   : > { %v5043_v13 = vsel %vm3104_vm4, %v4879_v57, %v1863_v58  ;;  %v1862_v20 = vmul.f32 %v1839_v46, %v4962_v47  ;;  %v1879_v18 = vrot.slane %v1863_v58, 2 }
 0xc14   : > { %v1847_v52 = vpop.permute.xlu0 %1846 }
 0xc15   : > { %v5048_v4 = vsel %vm3104_vm4, %v4868_v51, %v1862_v20  ;;  %v1866_v7 = vmul.f32 %v1847_v52, %v4966_v34  ;;  %v1878_v33 = vrot.slane %v1862_v20, 3 }
 0xc16   : > { %v1843_v63 = vpop.permute.xlu1 %1842 }
 0xc17   : > { %v5053_v29 = vsel %vm3104_vm4, %v4898_v5, %v1866_v7  ;;  %v1864_v45 = vmul.f32 %v1843_v63, %v4970_v3  ;;  %v1880_v43 = vsel %vm960_vm11, %v1879_v18, %v1878_v33  ;;  %v1884_v34 = vrot.slane %v1866_v7, 7 }
 0xc18   : > { %v1849_v57 = vpop.permute.xlu0 %1848 }
 0xc19   : > { %v1881_v56 = vrot.slane %v1864_v45, 1  ;;  %v5058_v47 = vsel %vm3104_vm4, %v4865_v49, %v1864_v45  ;;  %v1867_v51 = vmul.f32 %v1849_v57, %v4974_v11 }
 0xc1a   : > { %v1851_v59 = vpop.permute.xlu1 %1850 }
 0xc1b   : > { %v1882_v22 = vsel %vm963_vm12, %v1881_v56, %v1880_v43  ;;  %v1886_v10 = vrot.slane %v1867_v51, 6  ;;  %v5065_v5 = vsel %vm3104_vm4, %v4895_v12, %v1867_v51  ;;  %v1868_v3 = vmul.f32 %v1851_v59, %v4978_v62 }
 0xc1c   : > { %v1883_v40 = vsel %vm966_vm13, %v1865_v36, %v1882_v22  ;;  %v1853_v39 = vpop.permute.xlu0 %1852 }
 0xc1d   : > { %v1888_v49 = vrot.slane %v1868_v3, 5  ;;  %v5071_v11 = vsel %vm3104_vm4, %v4914_v54, %v1868_v3  ;;  %v1869_v50 = vmul.f32 %v1853_v39, %v4982_v1  ;;  %v1885_v42 = vsel %vm969_vm14, %v1884_v34, %v1883_v40 }
 0xc1e   : > { %v1887_v15 = vsel %vm972_vm15, %v1886_v10, %v1885_v42 }
 0xc1f   : > { %v1890_v41 = vrot.slane %v1869_v50, 4  ;;  %v5078_v12 = vsel %vm3104_vm4, %v4911_v61, %v1869_v50  ;;  %v1889_v62 = vsel %vm975_vm0, %v1888_v49, %v1887_v15 }
 0xc21   : > { %v1891_v31 = vsel %vm978_vm1, %v1890_v41, %v1889_v62 }
 0xc22   : > { %1892 = vrot.lane.b32.xlu1 %v1891_v31, %s4259_s13 }
 0xc94   : > { %v1893_v30 = vpop.permute.xlu1 %1892 }
 0xc95   : > { %3720 = vmatmul.mubr.msk.f32.vlgmr.msra.gmra.mxu0 %vm560_vm10, %v1893_v30 }
 0xc96   : > { %3734 = vmatpush3.msra.mxu0 %v4921_v24  ;;  %3741 = vmatprep.mubr.msk.f32.mxu0 %vm4257_vm9, %v4256_v16 }
 0xc97   : > { %3735 = vmatprep.subr.mxu0 %v4256_v16 }
 0xc98   : > { %3736 = vmatpush3.msra.mxu0 %v4927_v8 }
 0xc99   : > { %3737 = vmatprep.subr.mxu0 %v4256_v16 }
 0xc9a   : > { %3738 = vmatpush3.msra.mxu0 %v4931_v26 }
 0xc9b   : > { %3739 = vmatprep.subr.mxu0 %v4256_v16 }
 0xc9c   : > { %3740 = vmatpush3.msra.mxu0 %v4935_v25 }
 0xd55   : > { %v1962_v61 = vpop.f32.mrf.mxu0 }
 0xd56   : > { %v1967_v54 = vrot.slane %v1962_v61, 4  ;;  %v1968_v1 = vrot.slane %v1962_v61, 5  ;;  %v1969_v37 = vrot.slane %v1962_v61, 6  ;;  %v1986_v35 = vadd.f32 %v1962_v61, %v4472_v14 }
 0xd57   : > { %v3721_v36 = vpop.f32.mrf.mxu0  ;;  %v1970_v58 = vrot.slane %v1962_v61, 7  ;;  %v1971_v20 = vrot.slane %v1962_v61, 1  ;;  %v1973_v7 = vrot.slane %v1962_v61, 3  ;;  %v1972_v63 = vrot.slane %v1962_v61, 2 }
 0xd58   : > { %v1982_v28 = vadd.f32 %v1967_v54, %v4461_v0  ;;  %v1983_v46 = vadd.f32 %v1968_v1, %v4458_v60  ;;  %3962 = vtanh.f32 %v1986_v35  ;;  %v1984_v52 = vadd.f32 %v1969_v37, %v4466_v6 }
 0xd59   : > { %v1985_v33 = vadd.f32 %v1970_v58, %v4463_v2  ;;  %v1987_v45 = vadd.f32 %v1971_v20, %v4469_v9  ;;  %v1989_v18 = vadd.f32 %v1973_v7, %v4474_v17  ;;  %v1988_v57 = vadd.f32 %v1972_v63, %v4478_v23 }
 0xd5a   : > { %3964 = vtanh.f32 %v1982_v28 }
 0xd5b   : > { %3966 = vtanh.f32 %v1983_v46 }
 0xd5c   : > { %3968 = vtanh.f32 %v1984_v52 }
 0xd5d   : > { %3970 = vtanh.f32 %v1985_v33 }
 0xd5e   : > { %3972 = vtanh.f32 %v1987_v45 }
 0xd5f   : > { %3974 = vtanh.f32 %v1989_v18 }
 0xd60   : > { %3976 = vtanh.f32 %v1988_v57 }
 0xd65   : > { %v3963_v56 = vpop.eup %3962 }
 0xd66   : > { %2062 = vrot.lane.b32.xlu1 %v3963_v56, %s4258_s12  ;;  %v2002_v40 = vmul.f32 0.5, %v3963_v56 }
 0xd67   : > { %v3965_v51 = vpop.eup %3964 }
 0xd68   : > { %2054 = vrot.lane.b32.xlu0 %v3965_v51, %s4258_s12  ;;  %v3967_v43 = vpop.eup %3966  ;;  %v1998_v39 = vmul.f32 0.5, %v3965_v51  ;;  %v5109_v49 = vadd.f32 0.5, %v2002_v40 }
 0xd69   : > { %v3969_v34 = vpop.eup %3968  ;;  %v1999_v50 = vmul.f32 0.5, %v3967_v43 }
 0xd6a   : > { %2056 = vrot.lane.b32.xlu1 %v3967_v43, %s4258_s12  ;;  %v3971_v59 = vpop.eup %3970  ;;  %v5111_v15 = vadd.f32 0.5, %v1998_v39  ;;  %v2000_v41 = vmul.f32 0.5, %v3969_v34 }
 0xd6b   : > { %v3973_v22 = vpop.eup %3972  ;;  %v5116_v61 = vadd.f32 0.5, %v1999_v50  ;;  %v2001_v54 = vmul.f32 0.5, %v3971_v59  ;;  %v2023_v50 = vrot.slane %v4996_v44, 7 }
 0xd6c   : > { %2058 = vrot.lane.b32.xlu0 %v3969_v34, %s4258_s12  ;;  %v3975_v10 = vpop.eup %3974  ;;  %v5119_v37 = vadd.f32 0.5, %v2000_v41  ;;  %v2003_v35 = vmul.f32 0.5, %v3973_v22 }
 0xd6d   : > { %v3977_v3 = vpop.eup %3976  ;;  %v5124_v46 = vadd.f32 0.5, %v2001_v54  ;;  %v2005_v20 = vmul.f32 0.5, %v3975_v10  ;;  %v2025_v54 = vrot.slane %v4991_v27, 7 }
 0xd6e   : > { %2060 = vrot.lane.b32.xlu1 %v3971_v59, %s4258_s12  ;;  %v5127_v7 = vadd.f32 0.5, %v2003_v35  ;;  %v2004_v33 = vmul.f32 0.5, %v3977_v3  ;;  %v2027_v35 = vrot.slane %v5016_v53, 7 }
 0xd6f   : > { %v5132_v57 = vadd.f32 0.5, %v2005_v20  ;;  %v2029_v20 = vrot.slane %v5024_v55, 7 }
 0xd70   : > { %2064 = vrot.lane.b32.xlu0 %v3973_v22, %s4258_s12  ;;  %v5135_v51 = vadd.f32 0.5, %v2004_v33  ;;  %v2026_v22 = vrot.slane %v5006_v38, 7  ;;  %v2039_v38 = vmul.f32 %v2023_v50, %v5116_v61  ;;  %v2028_v33 = vrot.slane %v5020_v32, 7 }
 0xd71   : > { %v2045_v53 = vmul.f32 %v2029_v20, %v5132_v57 }
 0xd72   : > { %2068 = vrot.lane.b32.xlu1 %v3975_v10, %s4258_s12  ;;  %v2022_v10 = vrot.slane %v5001_v21, 7 }
 0xd74   : > { %2066 = vrot.lane.b32.xlu0 %v3977_v3, %s4258_s12  ;;  %v2042_v3 = vmul.f32 %v2026_v22, %v5109_v49  ;;  %v2038_v39 = vmul.f32 %v2022_v10, %v5111_v15 }
 0xdd8   : > { %v2063_v42 = vpop.permute.xlu1 %2062 }
 0xdd9   : > { %v2082_v62 = vmul.f32 %v2063_v42, %v5109_v49 }
 0xdda   : > { %v2055_v31 = vpop.permute.xlu0 %2054 }
 0xddb   : > { %v2078_v30 = vmul.f32 %v2055_v31, %v5111_v15  ;;  %2102 = vrot.lane.b32.xlu1 %v2082_v62, %s4259_s13  ;;  %v2024_v62 = vrot.slane %v5011_v19, 7  ;;  %v2041_v19 = vmul.f32 %v2025_v54, %v5124_v46 }
 0xddc   : > { %v2057_v1 = vpop.permute.xlu1 %2056 }
 0xddd   : > { %2094 = vrot.lane.b32.xlu0 %v2078_v30, %s4259_s13  ;;  %v2079_v36 = vmul.f32 %v2057_v1, %v5116_v61  ;;  %v2040_v30 = vmul.f32 %v2024_v62, %v5119_v37 }
 0xdde   : > { %v2059_v28 = vpop.permute.xlu0 %2058 }
 0xddf   : > { %v2080_v58 = vmul.f32 %v2059_v28, %v5119_v37  ;;  %2096 = vrot.lane.b32.xlu1 %v2079_v36, %s4259_s13 }
 0xde0   : > { %v2061_v52 = vpop.permute.xlu1 %2060 }
 0xde1   : > { %2098 = vrot.lane.b32.xlu0 %v2080_v58, %s4259_s13  ;;  %v2081_v63 = vmul.f32 %v2061_v52, %v5124_v46  ;;  %v2043_v58 = vmul.f32 %v2027_v35, %v5127_v7 }
 0xde2   : > { %v2065_v45 = vpop.permute.xlu0 %2064 }
 0xde3   : > { %v2083_v18 = vmul.f32 %v2065_v45, %v5127_v7  ;;  %2100 = vrot.lane.b32.xlu1 %v2081_v63, %s4259_s13 }
 0xde4   : > { %v2069_v56 = vpop.permute.xlu1 %2068 }
 0xde5   : > { %2104 = vrot.lane.b32.xlu0 %v2083_v18, %s4259_s13  ;;  %v2085_v43 = vmul.f32 %v2069_v56, %v5132_v57  ;;  %v2044_v18 = vmul.f32 %v2028_v33, %v5135_v51 }
 0xde6   : > { %v2067_v34 = vpop.permute.xlu0 %2066 }
 0xde7   : > { %v2084_v59 = vmul.f32 %v2067_v34, %v5135_v51  ;;  %2108 = vrot.lane.b32.xlu1 %v2085_v43, %s4259_s13 }
 0xde9   : > { %2106 = vrot.lane.b32.xlu0 %v2084_v59, %s4259_s13 }
 0xe4d   : > { %v2103_v40 = vpop.permute.xlu1 %2102 }
 0xe4e   : > { %v5146_v42 = vadd.f32 %v2103_v40, %v2042_v3 }
 0xe4f   : > { %v2095_v41 = vpop.permute.xlu0 %2094 }
 0xe50   : > { %v5149_v31 = vadd.f32 %v2095_v41, %v2038_v39  ;;  %3978 = vtanh.f32 %v5146_v42 }
 0xe51   : > { %v2097_v21 = vpop.permute.xlu1 %2096 }
 0xe52   : > { %3980 = vtanh.f32 %v5149_v31  ;;  %v5156_v1 = vadd.f32 %v2097_v21, %v2039_v38 }
 0xe53   : > { %v2099_v44 = vpop.permute.xlu0 %2098 }
 0xe54   : > { %v5159_v36 = vadd.f32 %v2099_v44, %v2040_v30  ;;  %3982 = vtanh.f32 %v5156_v1 }
 0xe55   : > { %v2101_v28 = vpop.permute.xlu1 %2100 }
 0xe56   : > { %3984 = vtanh.f32 %v5159_v36  ;;  %v5166_v52 = vadd.f32 %v2101_v28, %v2041_v19 }
 0xe57   : > { %v2105_v27 = vpop.permute.xlu0 %2104 }
 0xe58   : > { %v5169_v63 = vadd.f32 %v2105_v27, %v2043_v58  ;;  %3986 = vtanh.f32 %v5166_v52 }
 0xe59   : > { %v2109_v45 = vpop.permute.xlu1 %2108 }
 0xe5a   : > { %3988 = vtanh.f32 %v5169_v63  ;;  %v5175_v56 = vadd.f32 %v2109_v45, %v2045_v53 }
 0xe5b   : > { %v2107_v43 = vpop.permute.xlu0 %2106 }
 0xe5c   : > { %v5177_v55 = vadd.f32 %v2107_v43, %v2044_v18  ;;  %3990 = vtanh.f32 %v5175_v56 }
 0xe5d   : > { %v3979_v34 = vpop.eup %3978 }
 0xe5e   : > { %3992 = vtanh.f32 %v5177_v55  ;;  %2150 = vrot.lane.b32.xlu1 %v3979_v34, %s4258_s12 }
 0xe5f   : > { %v3981_v32 = vpop.eup %3980 }
 0xe60   : > { %2142 = vrot.lane.b32.xlu0 %v3981_v32, %s4258_s12 }
 0xe61   : > { %v3983_v59 = vpop.eup %3982 }
 0xe62   : > { %2144 = vrot.lane.b32.xlu1 %v3983_v59, %s4258_s12 }
 0xe63   : > { %v3985_v22 = vpop.eup %3984 }
 0xe64   : > { %2146 = vrot.lane.b32.xlu0 %v3985_v22, %s4258_s12 }
 0xe65   : > { %v3987_v10 = vpop.eup %3986 }
 0xe66   : > { %2148 = vrot.lane.b32.xlu1 %v3987_v10, %s4258_s12 }
 0xe67   : > { %v3989_v3 = vpop.eup %3988 }
 0xe68   : > { %2152 = vrot.lane.b32.xlu0 %v3989_v3, %s4258_s12 }
 0xe69   : > { %v3991_v40 = vpop.eup %3990 }
 0xe6a   : > { %2156 = vrot.lane.b32.xlu1 %v3991_v40, %s4258_s12 }
 0xe6b   : > { %v3993_v39 = vpop.eup %3992 }
 0xe6c   : > { %2154 = vrot.lane.b32.xlu0 %v3993_v39, %s4258_s12 }
 0xed0   : > { %v2151_v50 = vpop.permute.xlu1 %2150 }
 0xed1   : > { %v2170_v41 = vmul.f32 %v2151_v50, %v5109_v49 }
 0xed2   : > { %v2143_v62 = vpop.permute.xlu0 %2142 }
 0xed3   : > { %v2166_v38 = vmul.f32 %v2143_v62, %v5111_v15  ;;  %v5193_v21 = vsel %vm3113_vm5, %v5053_v29, %v2170_v41 }
 0xed4   : > { %v2145_v54 = vpop.permute.xlu1 %2144 }
 0xed5   : > { %v5197_v30 = vsel %vm3113_vm5, %v5048_v4, %v2166_v38  ;;  %v2167_v44 = vmul.f32 %v2145_v54, %v5116_v61  ;;  %v2182_v28 = vrot.slane %v2166_v38, 4 }
 0xed6   : > { %v2147_v35 = vpop.permute.xlu0 %2146 }
 0xed7   : > { %v2168_v19 = vmul.f32 %v2147_v35, %v5119_v37  ;;  %v2183_v58 = vrot.slane %v2167_v44, 3  ;;  %v5203_v49 = vsel %vm3113_vm5, %v5043_v13, %v2167_v44 }
 0xed8   : > { %v2149_v20 = vpop.permute.xlu1 %2148 }
 0xed9   : > { %v2185_v15 = vrot.slane %v2168_v19, 2  ;;  %v5207_v29 = vsel %vm3113_vm5, %v5058_v47, %v2168_v19  ;;  %v2184_v4 = vsel %vm960_vm11, %v2183_v58, %v2182_v28  ;;  %v2169_v27 = vmul.f32 %v2149_v20, %v5124_v46 }
 0xeda   : > { %v2153_v61 = vpop.permute.xlu0 %2152 }
 0xedb   : > { %v2186_v33 = vsel %vm963_vm12, %v2185_v15, %v2184_v4  ;;  %v2171_v37 = vmul.f32 %v2153_v61, %v5127_v7  ;;  %v2187_v53 = vrot.slane %v2169_v27, 1  ;;  %v5215_v13 = vsel %vm3113_vm5, %v5038_v48, %v2169_v27 }
 0xedc   : > { %v2157_v47 = vpop.permute.xlu1 %2156 }
 0xedd   : > { %v5219_v45 = vsel %vm3113_vm5, %v5065_v5, %v2171_v37  ;;  %v2188_v18 = vsel %vm966_vm13, %v2187_v53, %v2186_v33  ;;  %v2190_v43 = vrot.slane %v2171_v37, 7  ;;  %v2173_v46 = vmul.f32 %v2157_v47, %v5132_v57 }
 0xede   : > { %v2155_v34 = vpop.permute.xlu0 %2154  ;;  %v2189_v7 = vsel %vm969_vm14, %v2170_v41, %v2188_v18 }
 0xedf   : > { %v2172_v32 = vmul.f32 %v2155_v34, %v5135_v51  ;;  %v5227_v59 = vsel %vm3113_vm5, %v5078_v12, %v2173_v46  ;;  %v2194_v22 = vrot.slane %v2173_v46, 5  ;;  %v2191_v10 = vsel %vm972_vm15, %v2190_v43, %v2189_v7 }
 0xee1   : > { %v2192_v48 = vrot.slane %v2172_v32, 6  ;;  %v5231_v5 = vsel %vm3113_vm5, %v5071_v11, %v2172_v32 }
 0xee3   : > { %v2193_v3 = vsel %vm975_vm0, %v2192_v48, %v2191_v10 }
 0xee4   : > { %v2195_v57 = vsel %vm978_vm1, %v2194_v22, %v2193_v3 }
 0xee5   : > { %2196 = vrot.lane.b32.xlu0 %v2195_v57, %s4259_s13 }
 0xf57   : > { %v2197_v51 = vpop.permute.xlu0 %2196 }
 0xf58   : > { %3731 = vmatmul.mubr.msk.f32.vlgmr.msra.gmra.mxu1 %vm560_vm10, %v2197_v51 }
 0xf59   : > { %3745 = vmatpush3.msra.mxu1 %v4921_v24  ;;  %3752 = vmatprep.mubr.msk.f32.mxu1 %vm4257_vm9, %v4256_v16 }
 0xf5a   : > { %3746 = vmatprep.subr.mxu1 %v4256_v16 }
 0xf5b   : > { %3747 = vmatpush3.msra.mxu1 %v4927_v8 }
 0xf5c   : > { %3748 = vmatprep.subr.mxu1 %v4256_v16 }
 0xf5d   : > { %3749 = vmatpush3.msra.mxu1 %v4931_v26 }
 0xf5e   : > { %3750 = vmatprep.subr.mxu1 %v4256_v16 }
 0xf5f   : > { %3751 = vmatpush3.msra.mxu1 %v4935_v25 }
0x1018   : > { %v2266_v11 = vpop.f32.mrf.mxu1 }
0x1019   : > { %v2271_v12 = vrot.slane %v2266_v11, 3  ;;  %v2272_v40 = vrot.slane %v2266_v11, 4  ;;  %v2273_v39 = vrot.slane %v2266_v11, 5  ;;  %v2274_v24 = vrot.slane %v2266_v11, 6 }
0x101a   : > { %v3732_v50 = vpop.f32.mrf.mxu1  ;;  %v2275_v38 = vrot.slane %v2266_v11, 7  ;;  %v2276_v54 = vrot.slane %v2266_v11, 1  ;;  %v2277_v25 = vrot.slane %v2266_v11, 2  ;;  %v2291_v35 = vadd.f32 %v2266_v11, %v4469_v9 }
0x101b   : > { %v2286_v41 = vadd.f32 %v2271_v12, %v4461_v0  ;;  %v2287_v62 = vadd.f32 %v2272_v40, %v4458_v60  ;;  %v2288_v8 = vadd.f32 %v2273_v39, %v4466_v6  ;;  %v2289_v26 = vadd.f32 %v2274_v24, %v4463_v2 }
0x101c   : > { %v2290_v16 = vadd.f32 %v2275_v38, %v4472_v14  ;;  %v2292_v44 = vadd.f32 %v2276_v54, %v4478_v23  ;;  %v2293_v19 = vadd.f32 %v2277_v25, %v4474_v17 }
0x101d   : > { %3994 = vtanh.f32 %v2286_v41 }
0x101e   : > { %3996 = vtanh.f32 %v2287_v62 }
0x101f   : > { %3998 = vtanh.f32 %v2288_v8 }
0x1020   : > { %4000 = vtanh.f32 %v2289_v26 }
0x1021   : > { %4002 = vtanh.f32 %v2290_v16 }
0x1022   : > { %4004 = vtanh.f32 %v2292_v44 }
0x1023   : > { %4006 = vtanh.f32 %v2291_v35 }
0x1024   : > { %4008 = vtanh.f32 %v2293_v19 }
0x102a   : > { %v3995_v28 = vpop.eup %3994 }
0x102b   : > { %v3997_v58 = vpop.eup %3996  ;;  %2358 = vrot.lane.b32.xlu1 %v3995_v28, %s4258_s12  ;;  %v2302_v37 = vmul.f32 0.5, %v3995_v28  ;;  %v2326_v28 = vrot.slane %v5149_v31, 7 }
0x102c   : > { %2360 = vrot.lane.b32.xlu0 %v3997_v58, %s4258_s12  ;;  %v3999_v15 = vpop.eup %3998  ;;  %v2303_v53 = vmul.f32 0.5, %v3997_v58  ;;  %v2327_v58 = vrot.slane %v5156_v1, 7 }
0x102d   : > { %v4001_v20 = vpop.eup %4000  ;;  %v5263_v47 = vadd.f32 0.5, %v2302_v37  ;;  %v2304_v18 = vmul.f32 0.5, %v3999_v15  ;;  %v2329_v37 = vrot.slane %v5166_v52, 7 }
0x102e   : > { %v4003_v4 = vpop.eup %4002  ;;  %v5265_v43 = vadd.f32 0.5, %v2303_v53  ;;  %v2305_v34 = vmul.f32 0.5, %v4001_v20 }
0x102f   : > { %2362 = vrot.lane.b32.xlu1 %v3999_v15, %s4258_s12  ;;  %v4005_v27 = vpop.eup %4004  ;;  %v5270_v22 = vadd.f32 0.5, %v2304_v18  ;;  %v2306_v10 = vmul.f32 0.5, %v4003_v4  ;;  %v2342_v15 = vmul.f32 %v2326_v28, %v5263_v47 }
0x1030   : > { %2364 = vrot.lane.b32.xlu0 %v4001_v20, %s4258_s12  ;;  %v4007_v61 = vpop.eup %4006  ;;  %v5273_v3 = vadd.f32 0.5, %v2305_v34  ;;  %v2308_v51 = vmul.f32 0.5, %v4005_v27  ;;  %v2343_v20 = vmul.f32 %v2327_v58, %v5265_v43 }
0x1031   : > { %v4009_v33 = vpop.eup %4008  ;;  %v5278_v39 = vadd.f32 0.5, %v2306_v10  ;;  %v2307_v24 = vmul.f32 0.5, %v4007_v61 }
0x1032   : > { %v5281_v50 = vadd.f32 0.5, %v2308_v51  ;;  %v2309_v62 = vmul.f32 0.5, %v4009_v33  ;;  %v2345_v1 = vmul.f32 %v2329_v37, %v5273_v3 }
0x1033   : > { %2366 = vrot.lane.b32.xlu1 %v4003_v4, %s4258_s12  ;;  %v5286_v26 = vadd.f32 0.5, %v2307_v24 }
0x1034   : > { %2370 = vrot.lane.b32.xlu0 %v4005_v27, %s4258_s12  ;;  %v5289_v16 = vadd.f32 0.5, %v2309_v62  ;;  %v2328_v27 = vrot.slane %v5159_v36, 7 }
0x1036   : > { %v2344_v31 = vmul.f32 %v2328_v27, %v5270_v22 }
0x1037   : > { %2368 = vrot.lane.b32.xlu1 %v4007_v61, %s4258_s12 }
0x1038   : > { %2372 = vrot.lane.b32.xlu0 %v4009_v33, %s4258_s12 }
0x109d   : > { %v2359_v46 = vpop.permute.xlu1 %2358 }
0x109e   : > { %v2361_v32 = vpop.permute.xlu0 %2360  ;;  %v2382_v7 = vmul.f32 %v2359_v46, %v5263_v47  ;;  %v2330_v46 = vrot.slane %v5146_v42, 7 }
0x109f   : > { %v2383_v48 = vmul.f32 %v2361_v32, %v5265_v43  ;;  %v2332_v32 = vrot.slane %v5177_v55, 7 }
0x10a0   : > { %2398 = vrot.lane.b32.xlu1 %v2382_v7, %s4259_s13  ;;  %v2346_v52 = vmul.f32 %v2330_v46, %v5278_v39 }
0x10a1   : > { %2400 = vrot.lane.b32.xlu0 %v2383_v48, %s4259_s13  ;;  %v2363_v57 = vpop.permute.xlu1 %2362  ;;  %v2348_v48 = vmul.f32 %v2332_v32, %v5281_v50 }
0x10a2   : > { %v2365_v11 = vpop.permute.xlu0 %2364  ;;  %v2384_v12 = vmul.f32 %v2363_v57, %v5270_v22  ;;  %v2331_v57 = vrot.slane %v5169_v63, 7 }
0x10a3   : > { %v2385_v40 = vmul.f32 %v2365_v11, %v5273_v3  ;;  %v2333_v11 = vrot.slane %v5175_v56, 7 }
0x10a4   : > { %2402 = vrot.lane.b32.xlu1 %v2384_v12, %s4259_s13  ;;  %v2347_v55 = vmul.f32 %v2331_v57, %v5286_v26 }
0x10a5   : > { %2404 = vrot.lane.b32.xlu0 %v2385_v40, %s4259_s13  ;;  %v2367_v41 = vpop.permute.xlu1 %2366  ;;  %v2349_v40 = vmul.f32 %v2333_v11, %v5289_v16 }
0x10a6   : > { %v2371_v38 = vpop.permute.xlu0 %2370  ;;  %v2386_v8 = vmul.f32 %v2367_v41, %v5278_v39 }
0x10a7   : > { %v2388_v54 = vmul.f32 %v2371_v38, %v5281_v50 }
0x10a8   : > { %2406 = vrot.lane.b32.xlu1 %v2386_v8, %s4259_s13 }
0x10a9   : > { %2410 = vrot.lane.b32.xlu0 %v2388_v54, %s4259_s13  ;;  %v2369_v25 = vpop.permute.xlu1 %2368 }
0x10aa   : > { %v2373_v44 = vpop.permute.xlu0 %2372  ;;  %v2387_v35 = vmul.f32 %v2369_v25, %v5286_v26 }
0x10ab   : > { %v2389_v19 = vmul.f32 %v2373_v44, %v5289_v16 }
0x10ac   : > { %2408 = vrot.lane.b32.xlu1 %v2387_v35, %s4259_s13 }
0x10ad   : > { %2412 = vrot.lane.b32.xlu0 %v2389_v19, %s4259_s13 }
0x1112   : > { %v2399_v4 = vpop.permute.xlu1 %2398 }
0x1113   : > { %v2401_v61 = vpop.permute.xlu0 %2400  ;;  %v5300_v33 = vadd.f32 %v2399_v4, %v2342_v15 }
0x1114   : > { %v5303_v53 = vadd.f32 %v2401_v61, %v2343_v20 }
0x1115   : > { %4010 = vtanh.f32 %v5300_v33 }
0x1116   : > { %4012 = vtanh.f32 %v5303_v53  ;;  %v2403_v18 = vpop.permute.xlu1 %2402 }
0x1117   : > { %v2405_v34 = vpop.permute.xlu0 %2404  ;;  %v5310_v36 = vadd.f32 %v2403_v18, %v2344_v31 }
0x1118   : > { %v5313_v7 = vadd.f32 %v2405_v34, %v2345_v1 }
0x1119   : > { %4014 = vtanh.f32 %v5310_v36 }
0x111a   : > { %4016 = vtanh.f32 %v5313_v7  ;;  %v2407_v10 = vpop.permute.xlu1 %2406 }
0x111b   : > { %v2411_v51 = vpop.permute.xlu0 %2410  ;;  %v5320_v42 = vadd.f32 %v2407_v10, %v2346_v52 }
0x111c   : > { %v5323_v12 = vadd.f32 %v2411_v51, %v2348_v48 }
0x111d   : > { %4018 = vtanh.f32 %v5320_v42 }
0x111e   : > { %4020 = vtanh.f32 %v5323_v12  ;;  %v2409_v24 = vpop.permute.xlu1 %2408 }
0x111f   : > { %v2413_v41 = vpop.permute.xlu0 %2412  ;;  %v5329_v62 = vadd.f32 %v2409_v24, %v2347_v55 }
0x1120   : > { %v5331_v63 = vadd.f32 %v2413_v41, %v2349_v40 }
0x1121   : > { %4022 = vtanh.f32 %v5329_v62 }
0x1122   : > { %v4011_v38 = vpop.eup %4010  ;;  %4024 = vtanh.f32 %v5331_v63 }
0x1123   : > { %v4013_v56 = vpop.eup %4012  ;;  %2446 = vrot.lane.b32.xlu1 %v4011_v38, %s4258_s12 }
0x1124   : > { %2448 = vrot.lane.b32.xlu0 %v4013_v56, %s4258_s12 }
0x1126   : > { %v4015_v8 = vpop.eup %4014 }
0x1127   : > { %v4017_v54 = vpop.eup %4016  ;;  %2450 = vrot.lane.b32.xlu1 %v4015_v8, %s4258_s12 }
0x1128   : > { %2452 = vrot.lane.b32.xlu0 %v4017_v54, %s4258_s12 }
0x112a   : > { %v4019_v25 = vpop.eup %4018 }
0x112b   : > { %v4021_v44 = vpop.eup %4020  ;;  %2454 = vrot.lane.b32.xlu1 %v4019_v25, %s4258_s12 }
0x112c   : > { %2458 = vrot.lane.b32.xlu0 %v4021_v44, %s4258_s12 }
0x112e   : > { %v4023_v35 = vpop.eup %4022 }
0x112f   : > { %v4025_v19 = vpop.eup %4024  ;;  %2456 = vrot.lane.b32.xlu1 %v4023_v35, %s4258_s12 }
0x1130   : > { %2460 = vrot.lane.b32.xlu0 %v4025_v19, %s4258_s12 }
0x1195   : > { %v2447_v28 = vpop.permute.xlu1 %2446 }
0x1196   : > { %v2449_v58 = vpop.permute.xlu0 %2448  ;;  %v2470_v15 = vmul.f32 %v2447_v28, %v5263_v47 }
0x1197   : > { %v2471_v20 = vmul.f32 %v2449_v58, %v5265_v43 }
0x1198   : > { %v5347_v4 = vsel %vm3122_vm6, %v5197_v30, %v2470_v15  ;;  %v2486_v37 = vrot.slane %v2470_v15, 5 }
0x1199   : > { %v2487_v27 = vrot.slane %v2471_v20, 4  ;;  %v5351_v61 = vsel %vm3122_vm6, %v5203_v49, %v2471_v20  ;;  %v2451_v31 = vpop.permute.xlu1 %2450 }
0x119a   : > { %v2453_v1 = vpop.permute.xlu0 %2452  ;;  %v2472_v18 = vmul.f32 %v2451_v31, %v5270_v22 }
0x119b   : > { %v2473_v46 = vmul.f32 %v2453_v1, %v5273_v3  ;;  %v2488_v30 = vsel %vm960_vm11, %v2487_v27, %v2486_v37 }
0x119c   : > { %v2489_v34 = vrot.slane %v2472_v18, 3  ;;  %v5357_v47 = vsel %vm3122_vm6, %v5207_v29, %v2472_v18 }
0x119d   : > { %v2491_v43 = vrot.slane %v2473_v46, 2  ;;  %v5362_v32 = vsel %vm3122_vm6, %v5215_v13, %v2473_v46  ;;  %v2455_v49 = vpop.permute.xlu1 %2454 }
0x119e   : > { %v2490_v52 = vsel %vm963_vm12, %v2489_v34, %v2488_v30  ;;  %v2459_v48 = vpop.permute.xlu0 %2458  ;;  %v2474_v22 = vmul.f32 %v2455_v49, %v5278_v39 }
0x119f   : > { %v2476_v3 = vmul.f32 %v2459_v48, %v5281_v50  ;;  %v2492_v13 = vsel %vm966_vm13, %v2491_v43, %v2490_v52 }
0x11a0   : > { %v2493_v10 = vrot.slane %v2474_v22, 1  ;;  %v5369_v29 = vsel %vm3122_vm6, %v5193_v21, %v2474_v22 }
0x11a1   : > { %v5373_v57 = vsel %vm3122_vm6, %v5231_v5, %v2476_v3  ;;  %v2457_v51 = vpop.permute.xlu1 %2456  ;;  %v2496_v39 = vrot.slane %v2476_v3, 7 }
0x11a2   : > { %v2494_v11 = vsel %vm969_vm14, %v2493_v10, %v2492_v13  ;;  %v2461_v55 = vpop.permute.xlu0 %2460  ;;  %v2475_v40 = vmul.f32 %v2457_v51, %v5286_v26 }
0x11a3   : > { %v2477_v50 = vmul.f32 %v2461_v55, %v5289_v16 }
0x11a4   : > { %v2495_v24 = vsel %vm972_vm15, %v2475_v40, %v2494_v11  ;;  %v5382_v21 = vsel %vm3122_vm6, %v5219_v45, %v2475_v40 }
0x11a5   : > { %v2498_v41 = vrot.slane %v2477_v50, 6  ;;  %v5386_v5 = vsel %vm3122_vm6, %v5227_v59, %v2477_v50  ;;  %v2497_v38 = vsel %vm975_vm0, %v2496_v39, %v2495_v24 }
0x11a7   : > { %v2499_v56 = vsel %vm978_vm1, %v2498_v41, %v2497_v38 }
0x11a8   : > { %2500 = vrot.lane.b32.xlu1 %v2499_v56, %s4259_s13 }
0x121a   : > { %v2501_v26 = vpop.permute.xlu1 %2500 }
0x121b   : > { %3742 = vmatmul.mubr.msk.f32.vlgmr.msra.gmra.mxu0 %vm560_vm10, %v2501_v26 }
0x12db   : > { %v2570_v16 = vpop.f32.mrf.mxu0 }
0x12dc   : > { %v2575_v8 = vrot.slane %v2570_v16, 2  ;;  %v2576_v54 = vrot.slane %v2570_v16, 3  ;;  %v2577_v25 = vrot.slane %v2570_v16, 4  ;;  %v2578_v45 = vrot.slane %v2570_v16, 5 }
0x12dd   : > { %v3743_v44 = vpop.f32.mrf.mxu0  ;;  %v2579_v19 = vrot.slane %v2570_v16, 6  ;;  %v2580_v58 = vrot.slane %v2570_v16, 7  ;;  %v2581_v20 = vrot.slane %v2570_v16, 1  ;;  %v2596_v1 = vadd.f32 %v2570_v16, %v4478_v23 }
0x12de   : > { %v2590_v35 = vadd.f32 %v2575_v8, %v4461_v0  ;;  %v2591_v59 = vadd.f32 %v2576_v54, %v4458_v60  ;;  %v2592_v28 = vadd.f32 %v2577_v25, %v4466_v6  ;;  %v2593_v15 = vadd.f32 %v2578_v45, %v4463_v2 }
0x12df   : > { %v2594_v27 = vadd.f32 %v2579_v19, %v4472_v14  ;;  %v2595_v37 = vadd.f32 %v2580_v58, %v4469_v9  ;;  %v2597_v31 = vadd.f32 %v2581_v20, %v4474_v17 }
0x12e0   : > { %4026 = vtanh.f32 %v2590_v35 }
0x12e1   : > { %4028 = vtanh.f32 %v2591_v59 }
0x12e2   : > { %4030 = vtanh.f32 %v2592_v28 }
0x12e3   : > { %4032 = vtanh.f32 %v2593_v15 }
0x12e4   : > { %4034 = vtanh.f32 %v2594_v27 }
0x12e5   : > { %4036 = vtanh.f32 %v2595_v37 }
0x12e6   : > { %4038 = vtanh.f32 %v2597_v31 }
0x12e7   : > { %4040 = vtanh.f32 %v2596_v1 }
0x12ed   : > { %v4027_v18 = vpop.eup %4026 }
0x12ee   : > { %v4029_v46 = vpop.eup %4028  ;;  %2662 = vrot.lane.b32.xlu0 %v4027_v18, %s4258_s12  ;;  %v2606_v22 = vmul.f32 0.5, %v4027_v18  ;;  %v2630_v18 = vrot.slane %v5300_v33, 7 }
0x12ef   : > { %2664 = vrot.lane.b32.xlu1 %v4029_v46, %s4258_s12  ;;  %v4031_v34 = vpop.eup %4030  ;;  %v2607_v3 = vmul.f32 0.5, %v4029_v46  ;;  %v2631_v46 = vrot.slane %v5303_v53, 7 }
0x12f0   : > { %v4033_v30 = vpop.eup %4032  ;;  %v5408_v10 = vadd.f32 0.5, %v2606_v22  ;;  %v2608_v13 = vmul.f32 0.5, %v4031_v34  ;;  %v2633_v22 = vrot.slane %v5313_v7, 7 }
0x12f1   : > { %v4035_v43 = vpop.eup %4034  ;;  %v5410_v51 = vadd.f32 0.5, %v2607_v3  ;;  %v2609_v55 = vmul.f32 0.5, %v4033_v30 }
0x12f2   : > { %2666 = vrot.lane.b32.xlu0 %v4031_v34, %s4258_s12  ;;  %v4037_v49 = vpop.eup %4036  ;;  %v5415_v24 = vadd.f32 0.5, %v2608_v13  ;;  %v2610_v41 = vmul.f32 0.5, %v4035_v43  ;;  %v2646_v34 = vmul.f32 %v2630_v18, %v5408_v10 }
0x12f3   : > { %2668 = vrot.lane.b32.xlu1 %v4033_v30, %s4258_s12  ;;  %v4039_v52 = vpop.eup %4038  ;;  %v5418_v38 = vadd.f32 0.5, %v2609_v55  ;;  %v2611_v26 = vmul.f32 0.5, %v4037_v49  ;;  %v2647_v30 = vmul.f32 %v2631_v46, %v5410_v51 }
0x12f4   : > { %v4041_v48 = vpop.eup %4040  ;;  %v5423_v25 = vadd.f32 0.5, %v2610_v41  ;;  %v2613_v45 = vmul.f32 0.5, %v4039_v52 }
0x12f5   : > { %v5426_v44 = vadd.f32 0.5, %v2611_v26  ;;  %v2612_v59 = vmul.f32 0.5, %v4041_v48  ;;  %v2649_v53 = vmul.f32 %v2633_v22, %v5418_v38 }
0x12f6   : > { %2670 = vrot.lane.b32.xlu0 %v4035_v43, %s4258_s12  ;;  %v5431_v15 = vadd.f32 0.5, %v2613_v45 }
0x12f7   : > { %2672 = vrot.lane.b32.xlu1 %v4037_v49, %s4258_s12  ;;  %v5434_v20 = vadd.f32 0.5, %v2612_v59  ;;  %v2632_v49 = vrot.slane %v5310_v36, 7 }
0x12f9   : > { %v2648_v33 = vmul.f32 %v2632_v49, %v5415_v24 }
0x12fa   : > { %2676 = vrot.lane.b32.xlu0 %v4039_v52, %s4258_s12 }
0x12fb   : > { %2674 = vrot.lane.b32.xlu1 %v4041_v48, %s4258_s12 }
0x1360   : > { %v2663_v11 = vpop.permute.xlu0 %2662 }
0x1361   : > { %v2665_v40 = vpop.permute.xlu1 %2664  ;;  %v2686_v39 = vmul.f32 %v2663_v11, %v5408_v10  ;;  %v2634_v11 = vrot.slane %v5320_v42, 7 }
0x1362   : > { %v2687_v50 = vmul.f32 %v2665_v40, %v5410_v51  ;;  %v2635_v40 = vrot.slane %v5329_v62, 7 }
0x1363   : > { %2702 = vrot.lane.b32.xlu0 %v2686_v39, %s4259_s13  ;;  %v2650_v7 = vmul.f32 %v2634_v11, %v5423_v25 }
0x1364   : > { %2704 = vrot.lane.b32.xlu1 %v2687_v50, %s4259_s13  ;;  %v2667_v56 = vpop.permute.xlu0 %2666  ;;  %v2651_v50 = vmul.f32 %v2635_v40, %v5426_v44 }
0x1365   : > { %v2669_v16 = vpop.permute.xlu1 %2668  ;;  %v2688_v8 = vmul.f32 %v2667_v56, %v5415_v24  ;;  %v2637_v56 = vrot.slane %v5331_v63, 7 }
0x1366   : > { %v2689_v54 = vmul.f32 %v2669_v16, %v5418_v38  ;;  %v2636_v16 = vrot.slane %v5323_v12, 7 }
0x1367   : > { %2706 = vrot.lane.b32.xlu0 %v2688_v8, %s4259_s13  ;;  %v2653_v62 = vmul.f32 %v2637_v56, %v5431_v15 }
0x1368   : > { %2708 = vrot.lane.b32.xlu1 %v2689_v54, %s4259_s13  ;;  %v2671_v35 = vpop.permute.xlu0 %2670  ;;  %v2652_v54 = vmul.f32 %v2636_v16, %v5434_v20 }
0x1369   : > { %v2673_v19 = vpop.permute.xlu1 %2672  ;;  %v2690_v28 = vmul.f32 %v2671_v35, %v5423_v25 }
0x136a   : > { %v2691_v58 = vmul.f32 %v2673_v19, %v5426_v44 }
0x136b   : > { %2710 = vrot.lane.b32.xlu0 %v2690_v28, %s4259_s13 }
0x136c   : > { %2712 = vrot.lane.b32.xlu1 %v2691_v58, %s4259_s13  ;;  %v2677_v27 = vpop.permute.xlu0 %2676 }
0x136d   : > { %v2675_v37 = vpop.permute.xlu1 %2674  ;;  %v2693_v31 = vmul.f32 %v2677_v27, %v5431_v15 }
0x136e   : > { %v2692_v1 = vmul.f32 %v2675_v37, %v5434_v20 }
0x136f   : > { %2716 = vrot.lane.b32.xlu0 %v2693_v31, %s4259_s13 }
0x1370   : > { %2714 = vrot.lane.b32.xlu1 %v2692_v1, %s4259_s13 }
0x13d5   : > { %v2703_v43 = vpop.permute.xlu0 %2702 }
0x13d6   : > { %v2705_v52 = vpop.permute.xlu1 %2704  ;;  %v5445_v48 = vadd.f32 %v2703_v43, %v2646_v34 }
0x13d7   : > { %v5448_v3 = vadd.f32 %v2705_v52, %v2647_v30 }
0x13d8   : > { %4042 = vtanh.f32 %v5445_v48 }
0x13d9   : > { %4044 = vtanh.f32 %v5448_v3  ;;  %v2707_v13 = vpop.permute.xlu0 %2706 }
0x13da   : > { %v2709_v55 = vpop.permute.xlu1 %2708  ;;  %v5455_v36 = vadd.f32 %v2707_v13, %v2648_v33 }
0x13db   : > { %v5458_v39 = vadd.f32 %v2709_v55, %v2649_v53 }
0x13dc   : > { %4046 = vtanh.f32 %v5455_v36 }
0x13dd   : > { %4048 = vtanh.f32 %v5458_v39  ;;  %v2711_v41 = vpop.permute.xlu0 %2710 }
0x13de   : > { %v2713_v26 = vpop.permute.xlu1 %2712  ;;  %v5465_v42 = vadd.f32 %v2711_v41, %v2650_v7 }
0x13df   : > { %v5468_v8 = vadd.f32 %v2713_v26, %v2651_v50 }
0x13e0   : > { %4050 = vtanh.f32 %v5465_v42 }
0x13e1   : > { %4052 = vtanh.f32 %v5468_v8  ;;  %v2717_v45 = vpop.permute.xlu0 %2716 }
0x13e2   : > { %v2715_v35 = vpop.permute.xlu1 %2714  ;;  %v5474_v59 = vadd.f32 %v2717_v45, %v2653_v62 }
0x13e3   : > { %v5476_v63 = vadd.f32 %v2715_v35, %v2652_v54 }
0x13e4   : > { %4054 = vtanh.f32 %v5474_v59 }
0x13e5   : > { %v4043_v19 = vpop.eup %4042  ;;  %4056 = vtanh.f32 %v5476_v63 }
0x13e6   : > { %v4045_v12 = vpop.eup %4044  ;;  %2750 = vrot.lane.b32.xlu0 %v4043_v19, %s4258_s12 }
0x13e7   : > { %2752 = vrot.lane.b32.xlu1 %v4045_v12, %s4258_s12 }
0x13e9   : > { %v4047_v28 = vpop.eup %4046 }
0x13ea   : > { %v4049_v58 = vpop.eup %4048  ;;  %2754 = vrot.lane.b32.xlu0 %v4047_v28, %s4258_s12 }
0x13eb   : > { %2756 = vrot.lane.b32.xlu1 %v4049_v58, %s4258_s12 }
0x13ed   : > { %v4051_v27 = vpop.eup %4050 }
0x13ee   : > { %v4053_v37 = vpop.eup %4052  ;;  %2758 = vrot.lane.b32.xlu0 %v4051_v27, %s4258_s12 }
0x13ef   : > { %2760 = vrot.lane.b32.xlu1 %v4053_v37, %s4258_s12 }
0x13f1   : > { %v4055_v31 = vpop.eup %4054 }
0x13f2   : > { %v4057_v1 = vpop.eup %4056  ;;  %2764 = vrot.lane.b32.xlu0 %v4055_v31, %s4258_s12 }
0x13f3   : > { %2762 = vrot.lane.b32.xlu1 %v4057_v1, %s4258_s12 }
0x1458   : > { %v2751_v18 = vpop.permute.xlu0 %2750 }
0x1459   : > { %v2753_v46 = vpop.permute.xlu1 %2752  ;;  %v2774_v34 = vmul.f32 %v2751_v18, %v5408_v10 }
0x145a   : > { %v2775_v30 = vmul.f32 %v2753_v46, %v5410_v51 }
0x145b   : > { %v5492_v43 = vsel %vm3131_vm7, %v5347_v4, %v2774_v34  ;;  %v2790_v22 = vrot.slane %v2774_v34, 6 }
0x145c   : > { %v2791_v49 = vrot.slane %v2775_v30, 5  ;;  %v5496_v52 = vsel %vm3131_vm7, %v5351_v61, %v2775_v30  ;;  %v2755_v33 = vpop.permute.xlu0 %2754 }
0x145d   : > { %v2757_v53 = vpop.permute.xlu1 %2756  ;;  %v2776_v13 = vmul.f32 %v2755_v33, %v5415_v24 }
0x145e   : > { %v2777_v11 = vmul.f32 %v2757_v53, %v5418_v38  ;;  %v2792_v4 = vsel %vm960_vm11, %v2791_v49, %v2790_v22 }
0x145f   : > { %v2793_v55 = vrot.slane %v2776_v13, 4  ;;  %v5502_v10 = vsel %vm3131_vm7, %v5357_v47, %v2776_v13 }
0x1460   : > { %v2795_v51 = vrot.slane %v2777_v11, 3  ;;  %v5507_v40 = vsel %vm3131_vm7, %v5362_v32, %v2777_v11  ;;  %v2759_v61 = vpop.permute.xlu0 %2758 }
0x1461   : > { %v2794_v7 = vsel %vm963_vm12, %v2793_v55, %v2792_v4  ;;  %v2761_v50 = vpop.permute.xlu1 %2760  ;;  %v2778_v24 = vmul.f32 %v2759_v61, %v5423_v25 }
0x1462   : > { %v2779_v38 = vmul.f32 %v2761_v50, %v5426_v44  ;;  %v2796_v32 = vsel %vm966_vm13, %v2795_v51, %v2794_v7 }
0x1463   : > { %v2797_v41 = vrot.slane %v2778_v24, 2  ;;  %v5514_v47 = vsel %vm3131_vm7, %v5369_v29, %v2778_v24 }
0x1464   : > { %v2799_v56 = vrot.slane %v2779_v38, 1  ;;  %v5518_v26 = vsel %vm3131_vm7, %v5382_v21, %v2779_v38  ;;  %v2765_v16 = vpop.permute.xlu0 %2764 }
0x1465   : > { %v2798_v62 = vsel %vm969_vm14, %v2797_v41, %v2796_v32  ;;  %v2763_v54 = vpop.permute.xlu1 %2762  ;;  %v2781_v25 = vmul.f32 %v2765_v16, %v5431_v15 }
0x1466   : > { %v2780_v44 = vmul.f32 %v2763_v54, %v5434_v20  ;;  %v2800_v45 = vsel %vm972_vm15, %v2799_v56, %v2798_v62 }
0x1467   : > { %v2802_v35 = vrot.slane %v2781_v25, 7  ;;  %v5527_v29 = vsel %vm3131_vm7, %v5386_v5, %v2781_v25 }
0x1468   : > { %v2801_v21 = vsel %vm975_vm0, %v2780_v44, %v2800_v45  ;;  %v5532_v19 = vsel %vm3131_vm7, %v5373_v57, %v2780_v44 }
0x1469   : > { %v2803_v12 = vsel %vm978_vm1, %v2802_v35, %v2801_v21 }
0x146a   : > { %2804 = vrot.lane.b32.xlu0 %v2803_v12, %s4259_s13 }
0x14dc   : > { %v2805_v15 = vpop.permute.xlu0 %2804 }
0x14dd   : > { %3753 = vmatmul.mubr.msk.f32.vlgmr.msra.gmra.mxu1 %vm560_vm10, %v2805_v15 }
0x159d   : > { %v2874_v20 = vpop.f32.mrf.mxu1 }
0x159e   : > { %v2879_v28 = vrot.slane %v2874_v20, 1  ;;  %v2880_v58 = vrot.slane %v2874_v20, 2  ;;  %v2881_v27 = vrot.slane %v2874_v20, 3  ;;  %v2882_v37 = vrot.slane %v2874_v20, 4 }
0x159f   : > { %v3754_v5 = vpop.f32.mrf.mxu1  ;;  %v2883_v18 = vrot.slane %v2874_v20, 5  ;;  %v2884_v46 = vrot.slane %v2874_v20, 6  ;;  %v2885_v30 = vrot.slane %v2874_v20, 7 }
0x15a0   : > { %v2894_v31 = vadd.f32 %v2879_v28, %v4461_v0  ;;  %v2895_v1 = vadd.f32 %v2880_v58, %v4458_v60  ;;  %v2896_v57 = vadd.f32 %v2881_v27, %v4466_v6  ;;  %v2897_v34 = vadd.f32 %v2882_v37, %v4463_v2 }
0x15a1   : > { %v2898_v49 = vadd.f32 %v2883_v18, %v4472_v14  ;;  %v2899_v22 = vadd.f32 %v2884_v46, %v4469_v9  ;;  %v2900_v33 = vadd.f32 %v2885_v30, %v4478_v23  ;;  %v2901_v60 = vadd.f32 %v2874_v20, %v4474_v17 }
0x15a2   : > { %4058 = vtanh.f32 %v2894_v31  ;;  %v2935_v46 = vrot.slane %v5448_v3, 7  ;;  %v2938_v3 = vrot.slane %v5465_v42, 7 }
0x15a3   : > { %4060 = vtanh.f32 %v2895_v1 }
0x15a4   : > { %4062 = vtanh.f32 %v2896_v57  ;;  %v2934_v57 = vrot.slane %v5445_v48, 7 }
0x15a5   : > { %4064 = vtanh.f32 %v2897_v34 }
0x15a6   : > { %4066 = vtanh.f32 %v2898_v49 }
0x15a7   : > { %4068 = vtanh.f32 %v2899_v22  ;;  %v2936_v22 = vrot.slane %v5455_v36, 7 }
0x15a8   : > { %4070 = vtanh.f32 %v2900_v33 }
0x15a9   : > { %4072 = vtanh.f32 %v2901_v60 }
0x15af   : > { %v4059_v0 = vpop.eup %4058 }
0x15b0   : > { %v4061_v6 = vpop.eup %4060  ;;  %2966 = vrot.lane.b32.xlu1 %v4059_v0, %s4258_s12  ;;  %v2910_v13 = vmul.f32 0.5, %v4059_v0  ;;  %v2937_v0 = vrot.slane %v5458_v39, 7 }
0x15b1   : > { %2968 = vrot.lane.b32.xlu0 %v4061_v6, %s4258_s12  ;;  %v4063_v2 = vpop.eup %4062  ;;  %v2911_v11 = vmul.f32 0.5, %v4061_v6 }
0x15b2   : > { %v4065_v14 = vpop.eup %4064  ;;  %v5553_v55 = vadd.f32 0.5, %v2910_v13  ;;  %v2912_v4 = vmul.f32 0.5, %v4063_v2 }
0x15b3   : > { %v4067_v9 = vpop.eup %4066  ;;  %v5555_v51 = vadd.f32 0.5, %v2911_v11  ;;  %v2913_v7 = vmul.f32 0.5, %v4065_v14  ;;  %v2940_v11 = vrot.slane %v5476_v63, 7  ;;  %v3152_v63 = vld [vmem:[%s5758_s5 + $0x18] sm:$0xff] }
0x15b4   : > { %2970 = vrot.lane.b32.xlu1 %v4063_v2, %s4258_s12  ;;  %v4069_v23 = vpop.eup %4068  ;;  %v5560_v41 = vadd.f32 0.5, %v2912_v4  ;;  %v2914_v56 = vmul.f32 0.5, %v4067_v9  ;;  %v2950_v34 = vmul.f32 %v2934_v57, %v5553_v55  ;;  %3755 = vmatprep.subr.mxu0 %v3152_v63 }
0x15b5   : > { %2972 = vrot.lane.b32.xlu0 %v4065_v14, %s4258_s12  ;;  %v4071_v17 = vpop.eup %4070  ;;  %v5563_v32 = vadd.f32 0.5, %v2913_v7  ;;  %v2915_v62 = vmul.f32 0.5, %v4069_v23  ;;  %v2951_v30 = vmul.f32 %v2935_v46, %v5555_v51  ;;  %v2941_v7 = vrot.slane %v5474_v59, 7  ;;  %3756 = vmatpush3.msra.mxu0 %v3152_v63 }
0x15b6   : > { %v4073_v53 = vpop.eup %4072  ;;  %v5568_v45 = vadd.f32 0.5, %v2914_v56  ;;  %v2916_v35 = vmul.f32 0.5, %v4071_v17  ;;  %v2952_v2 = vmul.f32 %v2936_v22, %v5560_v41 }
0x15b7   : > { %v5571_v21 = vadd.f32 0.5, %v2915_v62  ;;  %v2917_v15 = vmul.f32 0.5, %v4073_v53  ;;  %v2953_v48 = vmul.f32 %v2937_v0, %v5563_v32 }
0x15b8   : > { %2974 = vrot.lane.b32.xlu1 %v4067_v9, %s4258_s12  ;;  %v5576_v27 = vadd.f32 0.5, %v2916_v35  ;;  %v2954_v36 = vmul.f32 %v2938_v3, %v5568_v45  ;;  %v3150_v35 = vld [vmem:[%s5758_s5 + $0x8] sm:$0xff] }
0x15b9   : > { %2976 = vrot.lane.b32.xlu0 %v4069_v23, %s4258_s12  ;;  %v5579_v37 = vadd.f32 0.5, %v2917_v15  ;;  %v3149_v15 = vld [vmem:[%s5758_s5] sm:$0xff] }
0x15ba   : > { %v2956_v42 = vmul.f32 %v2940_v11, %v5576_v27 }
0x15bc   : > { %2978 = vrot.lane.b32.xlu1 %v4071_v17, %s4258_s12  ;;  %v2939_v17 = vrot.slane %v5468_v8, 7  ;;  %v2957_v8 = vmul.f32 %v2941_v7, %v5579_v37 }
0x15bd   : > { %2980 = vrot.lane.b32.xlu0 %v4073_v53, %s4258_s12 }
0x15be   : > { %v2955_v39 = vmul.f32 %v2939_v17, %v5571_v21 }
0x1622   : > { %v2967_v61 = vpop.permute.xlu1 %2966 }
0x1623   : > { %v2969_v50 = vpop.permute.xlu0 %2968  ;;  %v2990_v24 = vmul.f32 %v2967_v61, %v5553_v55 }
0x1624   : > { %v2991_v38 = vmul.f32 %v2969_v50, %v5555_v51 }
0x1625   : > { %3006 = vrot.lane.b32.xlu1 %v2990_v24, %s4259_s13 }
0x1626   : > { %3008 = vrot.lane.b32.xlu0 %v2991_v38, %s4259_s13  ;;  %v2971_v16 = vpop.permute.xlu1 %2970 }
0x1627   : > { %v2973_v54 = vpop.permute.xlu0 %2972  ;;  %v2992_v25 = vmul.f32 %v2971_v16, %v5560_v41 }
0x1628   : > { %v2993_v44 = vmul.f32 %v2973_v54, %v5563_v32 }
0x1629   : > { %3010 = vrot.lane.b32.xlu1 %v2992_v25, %s4259_s13  ;;  %v3151_v25 = vld [vmem:[%s5758_s5 + $0x10] sm:$0xff] }
0x162a   : > { %3012 = vrot.lane.b32.xlu0 %v2993_v44, %s4259_s13  ;;  %v2975_v12 = vpop.permute.xlu1 %2974  ;;  %3757 = vmatprep.subr.mxu0 %v3151_v25 }
0x162b   : > { %v2977_v20 = vpop.permute.xlu0 %2976  ;;  %v2994_v28 = vmul.f32 %v2975_v12, %v5568_v45  ;;  %3758 = vmatpush3.msra.mxu0 %v3151_v25 }
0x162c   : > { %v2995_v58 = vmul.f32 %v2977_v20, %v5571_v21  ;;  %3759 = vmatprep.subr.mxu0 %v3150_v35 }
0x162d   : > { %3014 = vrot.lane.b32.xlu1 %v2994_v28, %s4259_s13  ;;  %3760 = vmatpush3.msra.mxu0 %v3150_v35 }
0x162e   : > { %3016 = vrot.lane.b32.xlu0 %v2995_v58, %s4259_s13  ;;  %v2979_v5 = vpop.permute.xlu1 %2978  ;;  %3761 = vmatprep.subr.mxu0 %v3149_v15 }
0x162f   : > { %v2981_v31 = vpop.permute.xlu0 %2980  ;;  %v2996_v1 = vmul.f32 %v2979_v5, %v5576_v27  ;;  %3762 = vmatpush3.msra.mxu0 %v3149_v15 }
0x1630   : > { %v2997_v18 = vmul.f32 %v2981_v31, %v5579_v37 }
0x1631   : > { %3018 = vrot.lane.b32.xlu1 %v2996_v1, %s4259_s13 }
0x1632   : > { %3020 = vrot.lane.b32.xlu0 %v2997_v18, %s4259_s13 }
0x1697   : > { %v3007_v49 = vpop.permute.xlu1 %3006 }
0x1698   : > { %v3009_v33 = vpop.permute.xlu0 %3008  ;;  %v3030_v60 = vadd.f32 %v3007_v49, %v2950_v34 }
0x1699   : > { %v3031_v6 = vadd.f32 %v3009_v33, %v2951_v30 }
0x169a   : > { %4074 = vtanh.f32 %v3030_v60 }
0x169b   : > { %4076 = vtanh.f32 %v3031_v6  ;;  %v3011_v14 = vpop.permute.xlu1 %3010 }
0x169c   : > { %v3013_v9 = vpop.permute.xlu0 %3012  ;;  %v3032_v23 = vadd.f32 %v3011_v14, %v2952_v2  ;;  %v3546_v14 = vld [vmem:[%s5759_s6] ss:$0 sm:$0xff] }
0x169d   : > { %v3033_v53 = vadd.f32 %v3013_v9, %v2953_v48 }
0x169e   : > { %4078 = vtanh.f32 %v3032_v23 }
0x169f   : > { %4080 = vtanh.f32 %v3033_v53  ;;  %v3015_v13 = vpop.permute.xlu1 %3014 }
0x16a0   : > { %v3017_v4 = vpop.permute.xlu0 %3016  ;;  %v3034_v61 = vadd.f32 %v3015_v13, %v2954_v36 }
0x16a1   : > { %v3035_v50 = vadd.f32 %v3017_v4, %v2955_v39 }
0x16a2   : > { %4082 = vtanh.f32 %v3034_v61 }
0x16a3   : > { %4084 = vtanh.f32 %v3035_v50  ;;  %v3019_v24 = vpop.permute.xlu1 %3018 }
0x16a4   : > { %v3021_v38 = vpop.permute.xlu0 %3020  ;;  %v3036_v56 = vadd.f32 %v3019_v24, %v2956_v42 }
0x16a5   : > { %v3037_v16 = vadd.f32 %v3021_v38, %v2957_v8 }
0x16a6   : > { %4086 = vtanh.f32 %v3036_v56 }
0x16a7   : > { %v4075_v62 = vpop.eup %4074  ;;  %4088 = vtanh.f32 %v3037_v16 }
0x16a8   : > { %v4077_v54 = vpop.eup %4076  ;;  %3054 = vrot.lane.b32.xlu1 %v4075_v62, %s4258_s12 }
0x16a9   : > { %3056 = vrot.lane.b32.xlu0 %v4077_v54, %s4258_s12 }
0x16ab   : > { %v4079_v59 = vpop.eup %4078 }
0x16ac   : > { %v4081_v44 = vpop.eup %4080  ;;  %3058 = vrot.lane.b32.xlu1 %v4079_v59, %s4258_s12 }
0x16ad   : > { %3060 = vrot.lane.b32.xlu0 %v4081_v44, %s4258_s12 }
0x16af   : > { %v4083_v12 = vpop.eup %4082 }
0x16b0   : > { %v4085_v20 = vpop.eup %4084  ;;  %3062 = vrot.lane.b32.xlu1 %v4083_v12, %s4258_s12 }
0x16b1   : > { %3064 = vrot.lane.b32.xlu0 %v4085_v20, %s4258_s12 }
0x16b3   : > { %v4087_v28 = vpop.eup %4086 }
0x16b4   : > { %v4089_v58 = vpop.eup %4088  ;;  %3066 = vrot.lane.b32.xlu1 %v4087_v28, %s4258_s12 }
0x16b5   : > { %3068 = vrot.lane.b32.xlu0 %v4089_v58, %s4258_s12 }
0x171a   : > { %v3055_v5 = vpop.permute.xlu1 %3054 }
0x171b   : > { %v3057_v31 = vpop.permute.xlu0 %3056  ;;  %v3078_v1 = vmul.f32 %v3055_v5, %v5553_v55 }
0x171c   : > { %v3079_v18 = vmul.f32 %v3057_v31, %v5555_v51 }
0x171d   : > { %v3141_v57 = vsel %vm3140_vm8, %v5492_v43, %v3078_v1 }
0x171e   : > { %v3142_v46 = vsel %vm3140_vm8, %v5496_v52, %v3079_v18  ;;  %3168 = vrot.lane.b32.xlu1 %v3141_v57, %s4259_s13  ;;  %v3059_v34 = vpop.permute.xlu1 %3058 }
0x171f   : > { %3170 = vrot.lane.b32.xlu0 %v3142_v46, %s4259_s13  ;;  %v3061_v30 = vpop.permute.xlu0 %3060  ;;  %v3080_v49 = vmul.f32 %v3059_v34, %v5560_v41 }
0x1720   : > { %v3081_v22 = vmul.f32 %v3061_v30, %v5563_v32 }
0x1721   : > { %v3143_v55 = vsel %vm3140_vm8, %v5502_v10, %v3080_v49 }
0x1722   : > { %v3144_v51 = vsel %vm3140_vm8, %v5507_v40, %v3081_v22  ;;  %3172 = vrot.lane.b32.xlu1 %v3143_v55, %s4259_s13  ;;  %v3063_v43 = vpop.permute.xlu1 %3062 }
0x1723   : > { %3174 = vrot.lane.b32.xlu0 %v3144_v51, %s4259_s13  ;;  %v3065_v52 = vpop.permute.xlu0 %3064  ;;  %v3082_v33 = vmul.f32 %v3063_v43, %v5568_v45 }
0x1724   : > { %v3083_v60 = vmul.f32 %v3065_v52, %v5571_v21 }
0x1725   : > { %v3145_v41 = vsel %vm3140_vm8, %v5514_v47, %v3082_v33 }
0x1726   : > { %v3146_v32 = vsel %vm3140_vm8, %v5518_v26, %v3083_v60  ;;  %3176 = vrot.lane.b32.xlu1 %v3145_v41, %s4259_s13  ;;  %v3067_v10 = vpop.permute.xlu1 %3066 }
0x1727   : > { %3178 = vrot.lane.b32.xlu0 %v3146_v32, %s4259_s13  ;;  %v3069_v40 = vpop.permute.xlu0 %3068  ;;  %v3084_v0 = vmul.f32 %v3067_v10, %v5576_v27 }
0x1728   : > { %v3085_v6 = vmul.f32 %v3069_v40, %v5579_v37 }
0x1729   : > { %v3147_v45 = vsel %vm3140_vm8, %v5532_v19, %v3084_v0 }
0x172a   : > { %v3148_v21 = vsel %vm3140_vm8, %v5527_v29, %v3085_v6  ;;  %3180 = vrot.lane.b32.xlu1 %v3147_v45, %s4259_s13 }
0x172b   : > { %3182 = vrot.lane.b32.xlu0 %v3148_v21, %s4259_s13 }
0x1790   : > { %v3169_v47 = vpop.permute.xlu1 %3168 }
0x1791   : > { %v3171_v26 = vpop.permute.xlu0 %3170  ;;  %3763 = vmatprep.mubr.msk.f32.mxu0 %vm560_vm10, %v3169_v47 }
0x1792   : > { %3764 = vmatmul.mubr.msk.f32.vlgmr.msra.gmra.mxu0 %vm560_vm10, %v3171_v26 }
0x1794   : > { %v3173_v2 = vpop.permute.xlu1 %3172 }
0x1795   : > { %v3175_v27 = vpop.permute.xlu0 %3174  ;;  %3766 = vmatprep.mubr.msk.f32.mxu0 %vm560_vm10, %v3173_v2 }
0x1796   : > { %3767 = vmatmul.mubr.msk.f32.gmra.mxu0 %vm560_vm10, %v3175_v27 }
0x1798   : > { %v3177_v19 = vpop.permute.xlu1 %3176 }
0x1799   : > { %v3179_v37 = vpop.permute.xlu0 %3178  ;;  %3769 = vmatprep.mubr.msk.f32.mxu0 %vm560_vm10, %v3177_v19 }
0x179a   : > { %3770 = vmatmul.mubr.msk.f32.gmra.mxu0 %vm560_vm10, %v3179_v37 }
0x179c   : > { %v3181_v29 = vpop.permute.xlu1 %3180 }
0x179d   : > { %v3183_v48 = vpop.permute.xlu0 %3182  ;;  %3772 = vmatprep.mubr.msk.f32.mxu0 %vm560_vm10, %v3181_v29 }
0x179e   : > { %3773 = vmatmul.mubr.msk.f32.gmra.mxu0 %vm560_vm10, %v3183_v48 }
0x1852   : > { %v3765_v3 = vpop.f32.mrf.mxu0 }
0x1853   : > { %v5664_v9 = vadd.f32 %v3765_v3, %v3546_v14 }
0x1854   : > { %v3266_v23 = vpop.f32.mrf.mxu0 }
0x1855   : > { %v5666_v17 = vadd.f32 %v3546_v14, %v3266_v23  ;;  %3307 = vmax.xlane.f32.xlu0 %v5664_v9 }
0x1856   : > { %v3768_v53 = vpop.f32.mrf.mxu0 }
0x1857   : > { %3305 = vmax.xlane.f32.xlu1 %v5666_v17  ;;  %v5670_v39 = vadd.f32 %v3768_v53, %v3546_v14 }
0x1858   : > { %v3276_v36 = vpop.f32.mrf.mxu0 }
0x1859   : > { %v5672_v13 = vadd.f32 %v3546_v14, %v3276_v36 }
0x185a   : > { %v3771_v11 = vpop.f32.mrf.mxu0 }
0x185b   : > { %3311 = vmax.xlane.f32.xlu1 %v5670_v39  ;;  %3309 = vmax.xlane.f32.xlu0 %v5672_v13  ;;  %v5676_v61 = vadd.f32 %v3771_v11, %v3546_v14 }
0x185c   : > { %v3286_v4 = vpop.f32.mrf.mxu0 }
0x185d   : > { %v5678_v7 = vadd.f32 %v3546_v14, %v3286_v4 }
0x185e   : > { %v3774_v50 = vpop.f32.mrf.mxu0 }
0x185f   : > { %3315 = vmax.xlane.f32.xlu1 %v5676_v61  ;;  %3313 = vmax.xlane.f32.xlu0 %v5678_v7  ;;  %v5682_v8 = vadd.f32 %v3774_v50, %v3546_v14 }
0x1860   : > { %v3296_v42 = vpop.f32.mrf.mxu0 }
0x1861   : > { %v5684_v24 = vadd.f32 %v3546_v14, %v3296_v42 }
0x1863   : > { %3319 = vmax.xlane.f32.xlu1 %v5682_v8  ;;  %3317 = vmax.xlane.f32.xlu0 %v5684_v24 }
0x18de   : > { %v5688_v38 = vpop.xlane.xlu0 %3307 }
0x18df   : > { %v3322_v56 = vsub.f32 %v5664_v9, %v5688_v38 }
0x18e0   : > { %v5692_v16 = vpop.xlane.xlu1 %3305 }
0x18e1   : > { %v3331_v62 = vmul.f32 1.442695, %v3322_v56  ;;  %v3321_v54 = vsub.f32 %v5666_v17, %v5692_v16 }
0x18e3   : > { %4090 = vpow2.f32 %v3331_v62  ;;  %v3329_v59 = vmul.f32 1.442695, %v3321_v54 }
0x18e4   : > { %v5696_v63 = vpop.xlane.xlu0 %3309  ;;  %v5698_v25 = vpop.xlane.xlu1 %3311 }
0x18e5   : > { %4092 = vpow2.f32 %v3329_v59  ;;  %v3323_v44 = vsub.f32 %v5672_v13, %v5696_v63  ;;  %v3324_v35 = vsub.f32 %v5670_v39, %v5698_v25 }
0x18e7   : > { %v3333_v12 = vmul.f32 1.442695, %v3323_v44  ;;  %v3335_v15 = vmul.f32 1.442695, %v3324_v35 }
0x18e8   : > { %v5704_v20 = vpop.xlane.xlu0 %3313  ;;  %v5706_v28 = vpop.xlane.xlu1 %3315 }
0x18e9   : > { %4094 = vpow2.f32 %v3333_v12  ;;  %v3325_v58 = vsub.f32 %v5678_v7, %v5704_v20  ;;  %v3326_v5 = vsub.f32 %v5676_v61, %v5706_v28 }
0x18ea   : > { %4096 = vpow2.f32 %v3335_v15 }
0x18eb   : > { %v3337_v31 = vmul.f32 1.442695, %v3325_v58  ;;  %v3339_v1 = vmul.f32 1.442695, %v3326_v5 }
0x18ec   : > { %v5712_v18 = vpop.xlane.xlu0 %3317  ;;  %v5714_v57 = vpop.xlane.xlu1 %3319 }
0x18ed   : > { %4098 = vpow2.f32 %v3337_v31  ;;  %v3327_v46 = vsub.f32 %v5684_v24, %v5712_v18  ;;  %v3328_v34 = vsub.f32 %v5682_v8, %v5714_v57 }
0x18ee   : > { %4100 = vpow2.f32 %v3339_v1 }
0x18ef   : > { %v3341_v30 = vmul.f32 1.442695, %v3327_v46  ;;  %v3343_v49 = vmul.f32 1.442695, %v3328_v34 }
0x18f0   : > { %v4091_v22 = vpop.eup %4090 }
0x18f1   : > { %4102 = vpow2.f32 %v3341_v30  ;;  %3347 = vadd.xlane.f32.xlu1 %v4091_v22 }
0x18f2   : > { %v4093_v55 = vpop.eup %4092  ;;  %4104 = vpow2.f32 %v3343_v49 }
0x18f3   : > { %3345 = vadd.xlane.f32.xlu0 %v4093_v55 }
0x18f6   : > { %v4095_v51 = vpop.eup %4094 }
0x18f7   : > { %v4097_v43 = vpop.eup %4096  ;;  %3349 = vadd.xlane.f32.xlu0 %v4095_v51 }
0x18f8   : > { %3351 = vadd.xlane.f32.xlu1 %v4097_v43 }
0x18fa   : > { %v4099_v52 = vpop.eup %4098 }
0x18fb   : > { %v4101_v33 = vpop.eup %4100  ;;  %3353 = vadd.xlane.f32.xlu0 %v4099_v52 }
0x18fc   : > { %3355 = vadd.xlane.f32.xlu1 %v4101_v33 }
0x18fe   : > { %v4103_v60 = vpop.eup %4102 }
0x18ff   : > { %v4105_v41 = vpop.eup %4104  ;;  %3357 = vadd.xlane.f32.xlu0 %v4103_v60 }
0x1900   : > { %3359 = vadd.xlane.f32.xlu1 %v4105_v41 }
0x197a   : > { %v3348_v32 = vpop.xlane.xlu1 %3347 }
0x197b   : > { %4106 = vlog2.f32 %v3348_v32 }
0x197c   : > { %v3346_v10 = vpop.xlane.xlu0 %3345 }
0x197d   : > { %4108 = vlog2.f32 %v3346_v10 }
0x1980   : > { %v3350_v40 = vpop.xlane.xlu0 %3349 }
0x1981   : > { %4110 = vlog2.f32 %v3350_v40  ;;  %v3352_v0 = vpop.xlane.xlu1 %3351 }
0x1982   : > { %4112 = vlog2.f32 %v3352_v0 }
0x1984   : > { %v3354_v6 = vpop.xlane.xlu0 %3353 }
0x1985   : > { %4114 = vlog2.f32 %v3354_v6  ;;  %v3356_v45 = vpop.xlane.xlu1 %3355 }
0x1986   : > { %4116 = vlog2.f32 %v3356_v45 }
0x1988   : > { %v4107_v21 = vpop.eup %4106  ;;  %v3358_v47 = vpop.xlane.xlu0 %3357 }
0x1989   : > { %v3364_v26 = vmul.f32 0.6931472, %v4107_v21  ;;  %4118 = vlog2.f32 %v3358_v47  ;;  %v3360_v2 = vpop.xlane.xlu1 %3359 }
0x198a   : > { %v4109_v27 = vpop.eup %4108  ;;  %4120 = vlog2.f32 %v3360_v2 }
0x198b   : > { %v3378_v19 = vadd.f32 %v3364_v26, %v5688_v38  ;;  %v3362_v37 = vmul.f32 0.6931472, %v4109_v27 }
0x198d   : > { %v3386_v29 = vsub.f32 %v5664_v9, %v3378_v19  ;;  %v3377_v48 = vadd.f32 %v3362_v37, %v5692_v16 }
0x198e   : > { %v4111_v14 = vpop.eup %4110 }
0x198f   : > { %v4113_v3 = vpop.eup %4112  ;;  %3394 = vst [vmem:[%s5725_s30 + $0x8] sm:$0xff] %v3386_v29  ;;  %v3385_v23 = vsub.f32 %v5666_v17, %v3377_v48  ;;  %v3366_v53 = vmul.f32 0.6931472, %v4111_v14 }
0x1990   : > { %v3368_v36 = vmul.f32 0.6931472, %v4113_v3 }
0x1991   : > { %3393 = vst [vmem:[%s5725_s30] sm:$0xff] %v3385_v23  ;;  %v3379_v11 = vadd.f32 %v3366_v53, %v5696_v63 }
0x1992   : > { %v4115_v4 = vpop.eup %4114  ;;  %v3380_v50 = vadd.f32 %v3368_v36, %v5698_v25 }
0x1993   : > { %v4117_v42 = vpop.eup %4116  ;;  %v3387_v9 = vsub.f32 %v5672_v13, %v3379_v11  ;;  %v3370_v38 = vmul.f32 0.6931472, %v4115_v4 }
0x1994   : > { %v3388_v56 = vsub.f32 %v5670_v39, %v3380_v50  ;;  %v3372_v16 = vmul.f32 0.6931472, %v4117_v42 }
0x1995   : > { %3395 = vst [vmem:[%s5725_s30 + $0x10] sm:$0xff] %v3387_v9  ;;  %v3381_v17 = vadd.f32 %v3370_v38, %v5704_v20 }
0x1996   : > { %v4119_v62 = vpop.eup %4118  ;;  %3396 = vst [vmem:[%s5725_s30 + $0x18] sm:$0xff] %v3388_v56  ;;  %v3382_v54 = vadd.f32 %v3372_v16, %v5706_v28 }
0x1997   : > { %v4121_v59 = vpop.eup %4120  ;;  %v3389_v63 = vsub.f32 %v5678_v7, %v3381_v17  ;;  %v3374_v25 = vmul.f32 0.6931472, %v4119_v62 }
0x1998   : > { %v3390_v13 = vsub.f32 %v5676_v61, %v3382_v54  ;;  %v3376_v44 = vmul.f32 0.6931472, %v4121_v59 }
0x1999   : > { %3397 = vst [vmem:[%s5725_s30 + $0x20] sm:$0xff] %v3389_v63  ;;  %v3383_v39 = vadd.f32 %v3374_v25, %v5712_v18 }
0x199a   : > { %3398 = vst [vmem:[%s5725_s30 + $0x28] sm:$0xff] %v3390_v13  ;;  %v3384_v35 = vadd.f32 %v3376_v44, %v5714_v57 }
0x199b   : > { %v3391_v12 = vsub.f32 %v5684_v24, %v3383_v39 }
0x199c   : > { %v3392_v15 = vsub.f32 %v5682_v8, %v3384_v35 }
0x199d   : > { %3399 = vst [vmem:[%s5725_s30 + $0x30] sm:$0xff] %v3391_v12 }
0x199e   : > { %3400 = vst [vmem:[%s5725_s30 + $0x38] sm:$0xff] %v3392_v15 }
0x199f PF: > { %s20_s24 = sadd.s32 1, %s4248_s24  }
0x19a0   : > { %p17_p5 = scmp.ge.s32.totalorder %s20_s24, 4  }
0x19a2   :  { %19 = sbr.rel (!%p17_p5) target bundleno = 3 (0x3), region = 95 }
0x19a7   :  { %3423 = vsyncpa [#allocation3], 1 }
0x19a8   :  { %3425 = vsyncpa [#allocation3 + $0x1], 1 }
0x19a9   :  { %3426 = vsyncpa [#allocation5], 1 }
0x19aa   :  { %3427 = vsyncpa [#allocation8], 1 }

</bundles_post_ra>
